<compile_context>
chip_gen: v5e
topology: v5e:2x2
jax: 0.10.0
libtpu: 0.0.40
codegen_flags: <defaults>
</compile_context>

<pallas_src>
import jax
import jax.numpy as jnp
from jax import lax
from jax.experimental import pallas as pl
from jax.experimental.pallas import tpu as pltpu

FEATURE = 64
NEG_SLOPE = 0.2


def _leaky_relu(x):
    return jnp.where(x >= 0, x, NEG_SLOPE * x)


# --------------------------- fused Pallas kernel -----------------------------
def _make_resblock_kernel(H, W):
    """Builds the fused ResBlock kernel for a fixed spatial size (H, W)."""
    Wp = W + 2                    # padded row length
    P = (H + 2) * Wp              # flattened padded-image length
    s = Wp + 1                    # max |flat offset| of a 3x3 tap  (= W + 3)
    L1 = P + 2 * s                # window over which r1 is produced
    L2 = P                        # window over which r2 is produced
    L3 = P - 2 * s                # window over which the output is produced
    F = FEATURE

    # flat slice starts of the 9 taps (dy-major, dx-minor), all in [0, 2*s]
    starts = [dy * Wp + dx for dy in range(3) for dx in range(3)]

    def im2col(u, length):
        # u: (C, Lu) with Lu >= 2*s + length.  Returns (9*C, length).
        cols = [u[:, st:st + length] for st in starts]
        return jnp.concatenate(cols, axis=0)

    def kernel(mask_ref, x_ref, w1x_ref, b1_ref, w2_ref, b2_ref,
               w3r_ref, b3_ref, o_ref):
        nb = x_ref.shape[0]                     # static batch block

        # ---- per-grid-step invariants (hoisted out of the batch loop)
        mask1 = mask_ref[...] > 0.5             # (1, L1) interior mask (r1)
        mask2 = mask1[:, s:s + L2]              # (1, L2) interior mask (r2)
        w1x = w1x_ref[...]                      # (F + cout, 9*cinp)
        w2 = w2_ref[...]                        # (F, 9F)
        w3r = w3r_ref[...]                      # (cout, 9F)
        b1 = b1_ref[...]                        # (F, 1)
        b2 = b2_ref[...]                        # (F, 1)
        b3 = b3_ref[...]                        # (cout, 1)

        for b in range(nb):
            x = x_ref[b]                        # (cinp, Lx)

            # ---- conv1 and conv3_x fused: one matmul over the shared im2col
            cols_x = im2col(x, L1)                                # (9*cinp, L1)
            acc1x = jnp.dot(w1x, cols_x,
                            preferred_element_type=jnp.float32)   # (F+cout, L1)
            r1 = jnp.where(mask1, _leaky_relu(acc1x[:F] + b1), 0.0)  # (F, L1)
            c3x = acc1x[F:, 2 * s:2 * s + L3]                     # (cout, L3)

            # ---- conv2 + LeakyReLU  (K = 9*64 = 576)
            cols1 = im2col(r1, L2)                                # (9F, L2)
            acc2 = jnp.dot(w2, cols1,
                           preferred_element_type=jnp.float32)    # (F, L2)
            r2 = jnp.where(mask2, _leaky_relu(acc2 + b2), 0.0)    # (F, L2)

            # ---- conv3, residual half
            cols2 = im2col(r2, L3)                                # (9F, L3)
            acc3 = jnp.dot(w3r, cols2,
                           preferred_element_type=jnp.float32)    # (cout, L3)

            o_ref[b] = (c3x + acc3 + b3).astype(o_ref.dtype)

    return kernel


# ------------------------------- wrapper --------------------------------------
def _pick_batch_block(n, max_block=4):
    divs = [b for b in range(1, min(n, max_block) + 1) if n % b == 0]
    two_step = [b for b in divs if n // b >= 2]   # keep >=2 steps for megacore
    return max(two_step) if two_step else max(divs)


def _flatten_conv_weight(w_oihw):
    # (O, I, 3, 3) -> (O, 9*I) with K index = (ky*3 + kx)*I + ci  (tap-major)
    o, i = w_oihw.shape[0], w_oihw.shape[1]
    return jnp.transpose(w_oihw, (0, 2, 3, 1)).reshape(o, 9 * i)


def resblock_pallas_nchw(x_nchw, params, *, batch_block=None):
    """ResBlock forward. x: (N, Cin, H, W) f32 -> (N, Cout, H, W) f32.

    params = (w1, b1, w2, b2, w3, b3) in PyTorch layouts:
      w1: (64, Cin, 3, 3)  b1: (64,)
      w2: (64, 64, 3, 3)   b2: (64,)
      w3: (Cout, Cin+64, 3, 3)  b3: (Cout,)   (cat order: x channels first)
    """
    w1, b1, w2, b2, w3, b3 = params
    N, cin, H, W = x_nchw.shape
    cout = w3.shape[0]
    f = FEATURE

    Wp = W + 2
    P = (H + 2) * Wp
    s = Wp + 1
    Lx = P + 4 * s
    L1 = P + 2 * s
    L3 = P - 2 * s

    # pad input channels to a multiple of 8 so the im2col sublane concat stays
    # tile-aligned (zero channels contribute nothing).
    cinp = ((cin + 7) // 8) * 8

    nb = batch_block or _pick_batch_block(N)
    assert N % nb == 0

    # ---- input: channel-pad, spatial zero-pad, flatten, flat-extend by 2*s.
    x_p = jnp.pad(x_nchw, ((0, 0), (0, cinp - cin), (1, 1), (1, 1)))
    x_ext = jnp.pad(x_p.reshape(N, cinp, P),
                    ((0, 0), (0, 0), (2 * s, 2 * s)))            # (N, cinp, Lx)

    # ---- weights: split conv3 along input channels (removes the cat), pad the
    #      x-side input channels like the input, flatten tap-major, and stack
    #      conv1 with conv3_x so they share one matmul.
    w3x = w3[:, :cin]
    w3r = w3[:, cin:]
    w1_p = jnp.pad(w1, ((0, 0), (0, cinp - cin), (0, 0), (0, 0)))
    w3x_p = jnp.pad(w3x, ((0, 0), (0, cinp - cin), (0, 0), (0, 0)))
    w1x_flat = jnp.concatenate(
        [_flatten_conv_weight(w1_p), _flatten_conv_weight(w3x_p)], axis=0)
    w2_flat = _flatten_conv_weight(w2)                           # (64, 576)
    w3r_flat = _flatten_conv_weight(w3r)                         # (cout, 576)
    b1c = b1.reshape(f, 1)
    b2c = b2.reshape(f, 1)
    b3c = b3.reshape(cout, 1)

    # ---- interior mask over the r1 window (r2's mask is an in-kernel slice).
    row = jnp.arange(H + 2)
    col = jnp.arange(W + 2)
    m2d = (((row >= 1) & (row <= H))[:, None]
           & ((col >= 1) & (col <= W))[None, :])
    mask = jnp.pad(m2d.reshape(P), (s, s)).astype(jnp.float32).reshape(1, L1)

    out_flat = pl.pallas_call(
        _make_resblock_kernel(H, W),
        out_shape=jax.ShapeDtypeStruct((N, cout, L3), jnp.float32),
        grid_spec=pltpu.PrefetchScalarGridSpec(
            num_scalar_prefetch=0,
            grid=(N // nb,),
            in_specs=[
                pl.BlockSpec((1, L1), lambda n: (0, 0)),
                pl.BlockSpec((nb, cinp, Lx), lambda n: (n, 0, 0)),
                pl.BlockSpec((f + cout, 9 * cinp), lambda n: (0, 0)),
                pl.BlockSpec((f, 1), lambda n: (0, 0)),
                pl.BlockSpec((f, 9 * f), lambda n: (0, 0)),
                pl.BlockSpec((f, 1), lambda n: (0, 0)),
                pl.BlockSpec((cout, 9 * f), lambda n: (0, 0)),
                pl.BlockSpec((cout, 1), lambda n: (0, 0)),
            ],
            out_specs=pl.BlockSpec((nb, cout, L3), lambda n: (n, 0, 0)),
        ),
        compiler_params=pltpu.CompilerParams(
            dimension_semantics=("parallel",),
            vmem_limit_bytes=32 * 1024 * 1024),
    )(mask, x_ext, w1x_flat, b1c, w2_flat, b2c, w3r_flat, b3c)

    # ---- the lane-dense kernel output covers flat padded positions [s, P-s);
    #      crop back to the (H, W) interior in plain XLA.
    out_p = jnp.pad(out_flat, ((0, 0), (0, 0), (s, s)))          # (N, cout, P)
    return out_p.reshape(N, cout, H + 2, W + 2)[:, :, 1:H + 1, 1:W + 1]


# -------------------- plain-JAX reference (mirrors the torch module) ---------
def _conv3x3_nchw(x, w, b):
    y = lax.conv_general_dilated(
        x, w, window_strides=(1, 1), padding="SAME",
        dimension_numbers=("NCHW", "OIHW", "NCHW"),
        precision=lax.Precision.HIGHEST)
    return y + b.reshape(1, -1, 1, 1)


def resblock_ref_nchw(x, params):
    w1, b1, w2, b2, w3, b3 = params
    r = _leaky_relu(_conv3x3_nchw(x, w1, b1))
    r = _leaky_relu(_conv3x3_nchw(r, w2, b2))
    cat = jnp.concatenate([x, r], axis=1)         # torch.cat((x, residual), 1)
    return _conv3x3_nchw(cat, w3, b3)


# -------------------- deterministic parameter construction -------------------
def make_params(key, channel_in, channel_out):
    k1, k2, k3, kb1, kb2, kb3 = jax.random.split(key, 6)
    scale = 0.1
    w1 = scale * jax.random.normal(k1, (FEATURE, channel_in, 3, 3), jnp.float32)
    w2 = scale * jax.random.normal(k2, (FEATURE, FEATURE, 3, 3), jnp.float32)
    w3 = scale * jax.random.normal(
        k3, (channel_out, channel_in + FEATURE, 3, 3), jnp.float32)
    b1 = scale * jax.random.normal(kb1, (FEATURE,), jnp.float32)
    b2 = scale * jax.random.normal(kb2, (FEATURE,), jnp.float32)
    b3 = scale * jax.random.normal(kb3, (channel_out,), jnp.float32)
    return (w1, b1, w2, b2, w3, b3)


if __name__ == "__main__":
    N, Cin, Cout, H, W = 2, 4, 4, 16, 16

    key = jax.random.PRNGKey(0)
    kx, kp = jax.random.split(key)
    x = jax.random.normal(kx, (N, Cin, H, W), jnp.float32)
    params = make_params(kp, Cin, Cout)

    fwd = jax.jit(resblock_pallas_nchw)
    out = jax.block_until_ready(fwd(x, params))

    ref = resblock_ref_nchw(x, params)
    assert out.shape == (N, Cout, H, W)
    err = float(jnp.max(jnp.abs(out - ref)))
    # tolerance leaves headroom for MXU f32 accumulation-order differences;
    # an indexing/layout bug would produce O(1) errors.
    assert err < 3e-2, f"max abs err = {err}"

    print("KERNEL_OK")
</pallas_src>

<mosaic_0001>
module attributes {stable_mosaic.version = 11 : i64} {
  func.func @kernel(%arg0: i32, %arg1: memref<1x362xf32, #tpu.memory_space<vmem>>, %arg2: memref<1x8x400xf32, #tpu.memory_space<vmem>>, %arg3: memref<68x72xf32, #tpu.memory_space<vmem>>, %arg4: memref<64x1xf32, #tpu.memory_space<vmem>>, %arg5: memref<64x576xf32, #tpu.memory_space<vmem>>, %arg6: memref<64x1xf32, #tpu.memory_space<vmem>>, %arg7: memref<4x576xf32, #tpu.memory_space<vmem>>, %arg8: memref<4x1xf32, #tpu.memory_space<vmem>>, %arg9: memref<1x4x286xf32, #tpu.memory_space<vmem>>) attributes {dimension_semantics = [#tpu.dimension_semantics<parallel>], iteration_bounds = array<i64: 2>, scalar_prefetch = 0 : i64, scratch_operands = 0 : i64, tpu.core_type = #tpu.core_type<tc>, window_params = [{pipeline_mode = #tpu.pipeline_mode<synchronous>, transform_indices = @transform_0, window_bounds = array<i64: 1, 362>}, {transform_indices = @transform_1, window_bounds = array<i64: 1, 8, 400>}, {pipeline_mode = #tpu.pipeline_mode<synchronous>, transform_indices = @transform_2, window_bounds = array<i64: 68, 72>}, {pipeline_mode = #tpu.pipeline_mode<synchronous>, transform_indices = @transform_3, window_bounds = array<i64: 64, 1>}, {pipeline_mode = #tpu.pipeline_mode<synchronous>, transform_indices = @transform_4, window_bounds = array<i64: 64, 576>}, {pipeline_mode = #tpu.pipeline_mode<synchronous>, transform_indices = @transform_5, window_bounds = array<i64: 64, 1>}, {pipeline_mode = #tpu.pipeline_mode<synchronous>, transform_indices = @transform_6, window_bounds = array<i64: 4, 576>}, {pipeline_mode = #tpu.pipeline_mode<synchronous>, transform_indices = @transform_7, window_bounds = array<i64: 4, 1>}, {transform_indices = @transform_8, window_bounds = array<i64: 1, 4, 286>}]} {
    %c0 = arith.constant 0 : index
    %c0_0 = arith.constant 0 : index
    %0 = vector.load %arg1[%c0, %c0_0] : memref<1x362xf32, #tpu.memory_space<vmem>>, vector<1x362xf32>
    %cst = arith.constant 5.000000e-01 : f32
    %1 = vector.broadcast %cst : f32 to vector<1x362xf32>
    %2 = arith.cmpf ogt, %0, %1 : vector<1x362xf32>
    %3 = vector.extract_strided_slice %2 {offsets = [0, 19], sizes = [1, 324], strides = [1, 1]} : vector<1x362xi1> to vector<1x324xi1>
    %c0_1 = arith.constant 0 : index
    %c0_2 = arith.constant 0 : index
    %4 = vector.load %arg3[%c0_1, %c0_2] : memref<68x72xf32, #tpu.memory_space<vmem>>, vector<68x72xf32>
    %c0_3 = arith.constant 0 : index
    %c0_4 = arith.constant 0 : index
    %5 = vector.load %arg5[%c0_3, %c0_4] : memref<64x576xf32, #tpu.memory_space<vmem>>, vector<64x576xf32>
    %c0_5 = arith.constant 0 : index
    %c0_6 = arith.constant 0 : index
    %6 = vector.load %arg7[%c0_5, %c0_6] : memref<4x576xf32, #tpu.memory_space<vmem>>, vector<4x576xf32>
    %c0_7 = arith.constant 0 : index
    %c0_8 = arith.constant 0 : index
    %7 = vector.load %arg4[%c0_7, %c0_8] : memref<64x1xf32, #tpu.memory_space<vmem>>, vector<64x1xf32>
    %c0_9 = arith.constant 0 : index
    %c0_10 = arith.constant 0 : index
    %8 = vector.load %arg6[%c0_9, %c0_10] : memref<64x1xf32, #tpu.memory_space<vmem>>, vector<64x1xf32>
    %c0_11 = arith.constant 0 : index
    %c0_12 = arith.constant 0 : index
    %9 = vector.load %arg8[%c0_11, %c0_12] : memref<4x1xf32, #tpu.memory_space<vmem>>, vector<4x1xf32>
    %c0_13 = arith.constant 0 : index
    %c0_14 = arith.constant 0 : index
    %c0_15 = arith.constant 0 : index
    %10 = vector.load %arg2[%c0_13, %c0_14, %c0_15] : memref<1x8x400xf32, #tpu.memory_space<vmem>>, vector<1x8x400xf32>
    %11 = vector.shape_cast %10 : vector<1x8x400xf32> to vector<8x400xf32>
    %12 = vector.extract_strided_slice %11 {offsets = [0, 0], sizes = [8, 362], strides = [1, 1]} : vector<8x400xf32> to vector<8x362xf32>
    %13 = vector.extract_strided_slice %11 {offsets = [0, 1], sizes = [8, 362], strides = [1, 1]} : vector<8x400xf32> to vector<8x362xf32>
    %14 = vector.extract_strided_slice %11 {offsets = [0, 2], sizes = [8, 362], strides = [1, 1]} : vector<8x400xf32> to vector<8x362xf32>
    %15 = vector.extract_strided_slice %11 {offsets = [0, 18], sizes = [8, 362], strides = [1, 1]} : vector<8x400xf32> to vector<8x362xf32>
    %16 = vector.extract_strided_slice %11 {offsets = [0, 19], sizes = [8, 362], strides = [1, 1]} : vector<8x400xf32> to vector<8x362xf32>
    %17 = vector.extract_strided_slice %11 {offsets = [0, 20], sizes = [8, 362], strides = [1, 1]} : vector<8x400xf32> to vector<8x362xf32>
    %18 = vector.extract_strided_slice %11 {offsets = [0, 36], sizes = [8, 362], strides = [1, 1]} : vector<8x400xf32> to vector<8x362xf32>
    %19 = vector.extract_strided_slice %11 {offsets = [0, 37], sizes = [8, 362], strides = [1, 1]} : vector<8x400xf32> to vector<8x362xf32>
    %20 = vector.extract_strided_slice %11 {offsets = [0, 38], sizes = [8, 362], strides = [1, 1]} : vector<8x400xf32> to vector<8x362xf32>
    %21 = tpu.concatenate %12, %13, %14, %15, %16, %17, %18, %19, %20 in 0 : vector<8x362xf32>, vector<8x362xf32>, vector<8x362xf32>, vector<8x362xf32>, vector<8x362xf32>, vector<8x362xf32>, vector<8x362xf32>, vector<8x362xf32>, vector<8x362xf32> -> vector<72x362xf32>
    %cst_16 = arith.constant dense<0.000000e+00> : vector<68x362xf32>
    %22 = tpu.matmul %4, %21, %cst_16 {dimension_numbers = #tpu.dot_dimension_numbers<[1], [0], [0], [1], [0, 0, 1, 1], [], []>} : vector<68x72xf32>, vector<72x362xf32>, vector<68x362xf32> -> vector<68x362xf32>
    %23 = vector.extract_strided_slice %22 {offsets = [0, 0], sizes = [64, 362], strides = [1, 1]} : vector<68x362xf32> to vector<64x362xf32>
    %24 = vector.broadcast %7 : vector<64x1xf32> to vector<64x362xf32>
    %25 = arith.addf %23, %24 : vector<64x362xf32>
    %cst_17 = arith.constant 0.000000e+00 : f32
    %26 = vector.broadcast %cst_17 : f32 to vector<64x362xf32>
    %27 = arith.cmpf oge, %25, %26 : vector<64x362xf32>
    %cst_18 = arith.constant 2.000000e-01 : f32
    %28 = vector.broadcast %cst_18 : f32 to vector<64x362xf32>
    %29 = arith.mulf %28, %25 : vector<64x362xf32>
    %30 = arith.select %27, %25, %29 : vector<64x362xi1>, vector<64x362xf32>
    %cst_19 = arith.constant 0.000000e+00 : f32
    %31 = vector.shape_cast %2 : vector<1x362xi1> to vector<1x362xi1>
    %32 = vector.broadcast %31 : vector<1x362xi1> to vector<64x362xi1>
    %33 = vector.broadcast %cst_19 : f32 to vector<64x362xf32>
    %34 = arith.select %32, %30, %33 : vector<64x362xi1>, vector<64x362xf32>
    %35 = vector.extract_strided_slice %22 {offsets = [64, 38], sizes = [4, 286], strides = [1, 1]} : vector<68x362xf32> to vector<4x286xf32>
    %36 = vector.extract_strided_slice %34 {offsets = [0, 0], sizes = [64, 324], strides = [1, 1]} : vector<64x362xf32> to vector<64x324xf32>
    %37 = vector.extract_strided_slice %34 {offsets = [0, 1], sizes = [64, 324], strides = [1, 1]} : vector<64x362xf32> to vector<64x324xf32>
    %38 = vector.extract_strided_slice %34 {offsets = [0, 2], sizes = [64, 324], strides = [1, 1]} : vector<64x362xf32> to vector<64x324xf32>
    %39 = vector.extract_strided_slice %34 {offsets = [0, 18], sizes = [64, 324], strides = [1, 1]} : vector<64x362xf32> to vector<64x324xf32>
    %40 = vector.extract_strided_slice %34 {offsets = [0, 19], sizes = [64, 324], strides = [1, 1]} : vector<64x362xf32> to vector<64x324xf32>
    %41 = vector.extract_strided_slice %34 {offsets = [0, 20], sizes = [64, 324], strides = [1, 1]} : vector<64x362xf32> to vector<64x324xf32>
    %42 = vector.extract_strided_slice %34 {offsets = [0, 36], sizes = [64, 324], strides = [1, 1]} : vector<64x362xf32> to vector<64x324xf32>
    %43 = vector.extract_strided_slice %34 {offsets = [0, 37], sizes = [64, 324], strides = [1, 1]} : vector<64x362xf32> to vector<64x324xf32>
    %44 = vector.extract_strided_slice %34 {offsets = [0, 38], sizes = [64, 324], strides = [1, 1]} : vector<64x362xf32> to vector<64x324xf32>
    %45 = tpu.concatenate %36, %37, %38, %39, %40, %41, %42, %43, %44 in 0 : vector<64x324xf32>, vector<64x324xf32>, vector<64x324xf32>, vector<64x324xf32>, vector<64x324xf32>, vector<64x324xf32>, vector<64x324xf32>, vector<64x324xf32>, vector<64x324xf32> -> vector<576x324xf32>
    %cst_20 = arith.constant dense<0.000000e+00> : vector<64x324xf32>
    %46 = tpu.matmul %5, %45, %cst_20 {dimension_numbers = #tpu.dot_dimension_numbers<[1], [0], [0], [1], [0, 0, 1, 1], [], []>} : vector<64x576xf32>, vector<576x324xf32>, vector<64x324xf32> -> vector<64x324xf32>
    %47 = vector.broadcast %8 : vector<64x1xf32> to vector<64x324xf32>
    %48 = arith.addf %46, %47 : vector<64x324xf32>
    %cst_21 = arith.constant 0.000000e+00 : f32
    %49 = vector.broadcast %cst_21 : f32 to vector<64x324xf32>
    %50 = arith.cmpf oge, %48, %49 : vector<64x324xf32>
    %cst_22 = arith.constant 2.000000e-01 : f32
    %51 = vector.broadcast %cst_22 : f32 to vector<64x324xf32>
    %52 = arith.mulf %51, %48 : vector<64x324xf32>
    %53 = arith.select %50, %48, %52 : vector<64x324xi1>, vector<64x324xf32>
    %cst_23 = arith.constant 0.000000e+00 : f32
    %54 = vector.shape_cast %3 : vector<1x324xi1> to vector<1x324xi1>
    %55 = vector.broadcast %54 : vector<1x324xi1> to vector<64x324xi1>
    %56 = vector.broadcast %cst_23 : f32 to vector<64x324xf32>
    %57 = arith.select %55, %53, %56 : vector<64x324xi1>, vector<64x324xf32>
    %58 = vector.extract_strided_slice %57 {offsets = [0, 0], sizes = [64, 286], strides = [1, 1]} : vector<64x324xf32> to vector<64x286xf32>
    %59 = vector.extract_strided_slice %57 {offsets = [0, 1], sizes = [64, 286], strides = [1, 1]} : vector<64x324xf32> to vector<64x286xf32>
    %60 = vector.extract_strided_slice %57 {offsets = [0, 2], sizes = [64, 286], strides = [1, 1]} : vector<64x324xf32> to vector<64x286xf32>
    %61 = vector.extract_strided_slice %57 {offsets = [0, 18], sizes = [64, 286], strides = [1, 1]} : vector<64x324xf32> to vector<64x286xf32>
    %62 = vector.extract_strided_slice %57 {offsets = [0, 19], sizes = [64, 286], strides = [1, 1]} : vector<64x324xf32> to vector<64x286xf32>
    %63 = vector.extract_strided_slice %57 {offsets = [0, 20], sizes = [64, 286], strides = [1, 1]} : vector<64x324xf32> to vector<64x286xf32>
    %64 = vector.extract_strided_slice %57 {offsets = [0, 36], sizes = [64, 286], strides = [1, 1]} : vector<64x324xf32> to vector<64x286xf32>
    %65 = vector.extract_strided_slice %57 {offsets = [0, 37], sizes = [64, 286], strides = [1, 1]} : vector<64x324xf32> to vector<64x286xf32>
    %66 = vector.extract_strided_slice %57 {offsets = [0, 38], sizes = [64, 286], strides = [1, 1]} : vector<64x324xf32> to vector<64x286xf32>
    %67 = tpu.concatenate %58, %59, %60, %61, %62, %63, %64, %65, %66 in 0 : vector<64x286xf32>, vector<64x286xf32>, vector<64x286xf32>, vector<64x286xf32>, vector<64x286xf32>, vector<64x286xf32>, vector<64x286xf32>, vector<64x286xf32>, vector<64x286xf32> -> vector<576x286xf32>
    %cst_24 = arith.constant dense<0.000000e+00> : vector<4x286xf32>
    %68 = tpu.matmul %6, %67, %cst_24 {dimension_numbers = #tpu.dot_dimension_numbers<[1], [0], [0], [1], [0, 0, 1, 1], [], []>} : vector<4x576xf32>, vector<576x286xf32>, vector<4x286xf32> -> vector<4x286xf32>
    %69 = arith.addf %35, %68 : vector<4x286xf32>
    %70 = vector.broadcast %9 : vector<4x1xf32> to vector<4x286xf32>
    %71 = arith.addf %69, %70 : vector<4x286xf32>
    %c0_25 = arith.constant 0 : index
    %c0_26 = arith.constant 0 : index
    %c0_27 = arith.constant 0 : index
    %72 = vector.load %arg9[%c0_25, %c0_26, %c0_27] : memref<1x4x286xf32, #tpu.memory_space<vmem>>, vector<1x4x286xf32>
    %73 = vector.shape_cast %72 : vector<1x4x286xf32> to vector<4x286xf32>
    %74 = vector.shape_cast %71 : vector<4x286xf32> to vector<1x4x286xf32>
    tpu.vector_store %arg9[%c0_25, %c0_26, %c0_27], %74 {strides = array<i32>} : memref<1x4x286xf32, #tpu.memory_space<vmem>>, vector<1x4x286xf32>,
    return
  }
  func.func @transform_0(%arg0: i32) -> (i32, i32) {
    %c0_i32 = arith.constant 0 : i32
    %c0_i32_0 = arith.constant 0 : i32
    %c0_i32_1 = arith.constant 0 : i32
    return %c0_i32, %c0_i32_0 : i32, i32
  }
  func.func @transform_1(%arg0: i32) -> (i32, i32, i32) {
    %c0_i32 = arith.constant 0 : i32
    %c0_i32_0 = arith.constant 0 : i32
    %c0_i32_1 = arith.constant 0 : i32
    return %arg0, %c0_i32, %c0_i32_0 : i32, i32, i32
  }
  func.func @transform_2(%arg0: i32) -> (i32, i32) {
    %c0_i32 = arith.constant 0 : i32
    %c0_i32_0 = arith.constant 0 : i32
    %c0_i32_1 = arith.constant 0 : i32
    return %c0_i32, %c0_i32_0 : i32, i32
  }
  func.func @transform_3(%arg0: i32) -> (i32, i32) {
    %c0_i32 = arith.constant 0 : i32
    %c0_i32_0 = arith.constant 0 : i32
    %c0_i32_1 = arith.constant 0 : i32
    return %c0_i32, %c0_i32_0 : i32, i32
  }
  func.func @transform_4(%arg0: i32) -> (i32, i32) {
    %c0_i32 = arith.constant 0 : i32
    %c0_i32_0 = arith.constant 0 : i32
    %c0_i32_1 = arith.constant 0 : i32
    return %c0_i32, %c0_i32_0 : i32, i32
  }
  func.func @transform_5(%arg0: i32) -> (i32, i32) {
    %c0_i32 = arith.constant 0 : i32
    %c0_i32_0 = arith.constant 0 : i32
    %c0_i32_1 = arith.constant 0 : i32
    return %c0_i32, %c0_i32_0 : i32, i32
  }
  func.func @transform_6(%arg0: i32) -> (i32, i32) {
    %c0_i32 = arith.constant 0 : i32
    %c0_i32_0 = arith.constant 0 : i32
    %c0_i32_1 = arith.constant 0 : i32
    return %c0_i32, %c0_i32_0 : i32, i32
  }
  func.func @transform_7(%arg0: i32) -> (i32, i32) {
    %c0_i32 = arith.constant 0 : i32
    %c0_i32_0 = arith.constant 0 : i32
    %c0_i32_1 = arith.constant 0 : i32
    return %c0_i32, %c0_i32_0 : i32, i32
  }
  func.func @transform_8(%arg0: i32) -> (i32, i32, i32) {
    %c0_i32 = arith.constant 0 : i32
    %c0_i32_0 = arith.constant 0 : i32
    %c0_i32_1 = arith.constant 0 : i32
    return %arg0, %c0_i32, %c0_i32_0 : i32, i32, i32
  }
}

</mosaic_0001>

<bundles_post_ra>
// kernel: resblock_pallas_nchw.1
= control target key start
LH: loop header
LB: loop body
LE: loop exit
PB: predicated region body
PF: predicated region fallthrough
CT: control target
= control target key end

     0   :  { %s5854_s27 = smov 0   ;;  %s10357_s0 = inlined_call_operand.vmem [shape: f32[1,362], index: 0, kind: input, shape index: {}]   ;;  %s10358_s1 = inlined_call_operand.vmem [shape: f32[2,8,400], index: 1, kind: input, shape index: {}]   ;;  %s10359_s2 = inlined_call_operand.vmem [shape: f32[68,72], index: 2, kind: input, shape index: {}]   ;;  %s10360_s3 = inlined_call_operand.vmem [shape: f32[64,1], index: 3, kind: input, shape index: {}]   ;;  %s10361_s4 = inlined_call_operand.vmem [shape: f32[64,576], index: 4, kind: input, shape index: {}]   ;;  %s10362_s5 = inlined_call_operand.vmem [shape: f32[64,1], index: 5, kind: input, shape index: {}]   ;;  %s10363_s6 = inlined_call_operand.vmem [shape: f32[4,576], index: 6, kind: input, shape index: {}]   ;;  %s10364_s7 = inlined_call_operand.vmem [shape: f32[4,1], index: 7, kind: input, shape index: {}]   ;;  %s10365_s8 = inlined_call_operand.vmem [shape: f32[2,4,286], index: 8, kind: output, shape index: {}]  }
   0x1 LB: > { %s4117_s28 = sadd.s32 4294967295, %s5796_s27   ;;  %p4121_p0 = scmp.ge.s32.totalorder %s5796_s27, 1  ;;  %s5796_s27 = sphi %s5854_s27, %s18_s27  }
   0x2   : > { %p262_p1 = scmp.lt.s32.totalorder %s5796_s27, 3 }
   0x4   : > { %p263_p2 = pnand %p4121_p0, %p262_p1 }
   0x6   : > { %266 = sbr.rel (%p263_p2) target bundleno = 2189 (0x88d), region = 52 }
   0xb   : > { %p296_p3 = scmp.lt.s32.totalorder %s4117_s28, 1  ;;  %s5798_s11 = smov 126   ;;  %vm483_vm0 = vcmask 736256   ;;  %v360_v22 = vld [vmem:[%s10360_s3] sm:$0xff]  ;;  %v5806_v25 = vmov 0   ;;  %vm468_vm1 = vcmask 744448  }
   0xc   : > { %s5799_s12 = smov 127   ;;  %s5800_s13 = smov 110   ;;  %4281 = vset.pattern.permute.xlu1 %v5806_v25  ;;  %4283 = vset.pattern.permute.xlu0 %v5806_v25  ;;  %vm10366_vm2 = vcmask 752640   ;;  %vm438_vm3 = vcmask 883712   ;;  %vm426_vm4 = vcmask 891904   ;;  %v363_v38 = vld [vmem:[%s10360_s3 + $0x18] sm:$0xff] }
   0xd   : > { %s11567_s28 = smov (!%p296_p3, %s4117_s28), 1  ;;  %s5801_s14 = smov 109   ;;  %4282 = vset.pattern.permute.xlu2 %v5806_v25  ;;  %vm414_vm5 = vcmask 900096   ;;  %vm402_vm6 = vcmask 1031168   ;;  %vm390_vm7 = vcmask 1039360   ;;  %v365_v58 = vld [vmem:[%s10360_s3 + $0x28] sm:$0xff] }
   0xe   : > { %s4205_s29 = sshll.u32 %s11567_s28, 5  ;;  %s5802_s15 = smov 108   ;;  %v308_v62 = vld [vmem:[%s10359_s2] sm:$0xff]  ;;  %vm490_vm8 = vcmask 588800  }
   0xf   : > { %s300_s10 = scalar_lea.vmem %s10358_s1, %s4205_s29  ;;  %s5803_s16 = smov 92  }
  0x10   : > { %v5868_v0 = vld [vmem:[%s300_s10] sm:$0xff]  ;;  %v5870_v1 = vld [vmem:[%s300_s10 + $0x8] sm:$0xff]  ;;  %v5877_v3 = vld [vmem:[%s300_s10 + $0x10] sm:$0xff]  ;;  %s5804_s17 = smov 91   ;;  %s5805_s18 = smov 90  }
  0x11   : > { %v4231_v2 = vpack.i.bf16 %v5870_v1, %v5868_v0  ;;  %v380_v4 = vld [vmem:[%s300_s10 + $0x18] sm:$0xff]  ;;  %s5807_s19 = smov 19   ;;  %s4206_s22 = smul.u32 12, %s11567_s28 }
  0x12   : > { %v4256_v5 = vpack.i.bf16 %v380_v4, %v5877_v3 }
  0x13   : > { %4232 = vrot.lane.b32.xlu1 %v4231_v2, %s5798_s11  ;;  %4227 = vrot.lane.b32.xlu0 %v4231_v2, %s5799_s12  ;;  %s305_s25 = scalar_lea.vmem %s10365_s8, %s4206_s22 }
  0x14   : > { %4237 = vrot.lane.b32.xlu2 %v4231_v2, %s5800_s13 }
  0x1b   : > { %400 = vrot.lane.b32.xlu1 %v5877_v3, %s5798_s11  ;;  %388 = vrot.lane.b32.xlu0 %v5877_v3, %s5799_s12 }
  0x1c   : > { %412 = vrot.lane.b32.xlu2 %v5877_v3, %s5800_s13 }
  0x23   : > { %424 = vrot.lane.b32.xlu1 %v5877_v3, %s5801_s14  ;;  %4242 = vrot.lane.b32.xlu0 %v4231_v2, %s5801_s14 }
  0x24   : > { %4247 = vrot.lane.b32.xlu2 %v4231_v2, %s5802_s15 }
  0x2b   : > { %4252 = vrot.lane.b32.xlu1 %v4231_v2, %s5803_s16  ;;  %436 = vrot.lane.b32.xlu0 %v5877_v3, %s5802_s15 }
  0x2c   : > { %4257 = vrot.lane.b32.xlu2 %v4256_v5, %s5803_s16 }
  0x33   : > { %4267 = vrot.lane.b32.xlu1 %v4256_v5, %s5804_s17  ;;  %4262 = vrot.lane.b32.xlu0 %v4231_v2, %s5804_s17 }
  0x34   : > { %4272 = vrot.lane.b32.xlu2 %v4231_v2, %s5805_s18 }
  0x3b   : > { %4277 = vrot.lane.b32.xlu0 %v4256_v5, %s5805_s18  ;;  %652 = vperm.xlu1 %4281, %v360_v22   ;;  %v309_v5 = vld [vmem:[%s10359_s2 + $0x8] sm:$0xff] }
  0x43   : > { %667 = vperm.xlu1 %4281, %v363_v38  }
  0x4b   : > { %677 = vperm.xlu1 %4281, %v365_v58  }
  0x6e   : > { %v5898_v6 = vpop.permute.xlu2 %4237 }
  0x6f   : > { %v4240_v35 = vunpack.i.h.bf16 %v5898_v6  ;;  %v4239_v36 = vunpack.i.l.bf16 %v5898_v6 }
  0x71   : > { %v415_v49 = vsel %vm414_vm5, %v4239_v36, %v4240_v35 }
  0x76   : > { %v5900_v7 = vpop.permute.xlu2 %412 }
  0x77   : > { %v416_v4 = vsel %vm414_vm5, %v4240_v35, %v5900_v7 }
  0x7e   : > { %v5902_v8 = vpop.permute.xlu2 %4247 }
  0x7f   : > { %v4249_v29 = vunpack.i.l.bf16 %v5902_v8  ;;  %v4250_v32 = vunpack.i.h.bf16 %v5902_v8  ;;  %v362_v8 = vld [vmem:[%s10360_s3 + $0x10] sm:$0xff] }
  0x80   : > { %662 = vperm.xlu0 %4283, %v362_v8  }
  0x81   : > { %v439_v39 = vsel %vm438_vm3, %v4249_v29, %v4250_v32  ;;  %v10765_v29 = vmov 0 }
  0x85   : > { %v5904_v9 = vpop.permute.xlu1 %4232  ;;  %v5906_v10 = vpop.permute.xlu0 %4227 }
  0x86   : > { %v5908_v11 = vpop.permute.xlu2 %4257  ;;  %v4235_v40 = vunpack.i.h.bf16 %v5904_v9  ;;  %v4234_v41 = vunpack.i.l.bf16 %v5904_v9  ;;  %v4230_v48 = vunpack.i.h.bf16 %v5906_v10  ;;  %v4229_v50 = vunpack.i.l.bf16 %v5906_v10  ;;  %v311_v9 = vld [vmem:[%s10359_s2 + $0x18] sm:$0xff]  ;;  %v366_v10 = vld [vmem:[%s10360_s3 + $0x30] sm:$0xff] }
  0x87   : > { %v4259_v51 = vunpack.i.l.bf16 %v5908_v11  ;;  %v4260_v54 = vunpack.i.h.bf16 %v5908_v11  ;;  %v367_v11 = vld [vmem:[%s10360_s3 + $0x38] sm:$0xff] }
  0x88   : > { %v403_v56 = vsel %vm402_vm6, %v4234_v41, %v4235_v40  ;;  %v391_v59 = vsel %vm390_vm7, %v4229_v50, %v4230_v48  ;;  %687 = vperm.xlu0 %4283, %v367_v11  }
  0x89   : > { %v456_v61 = vsel %vm10366_vm2, %v4259_v51, %v4260_v54 }
  0x8d   : > { %v5910_v12 = vpop.permute.xlu1 %400  ;;  %v5912_v13 = vpop.permute.xlu0 %388 }
  0x8e   : > { %v4273_v14 = vpop.permute.xlu2 %4272  ;;  %v392_v6 = vsel %vm390_vm7, %v4230_v48, %v5912_v13 }
  0x8f   : > { %v4275_v15 = vunpack.i.h.bf16 %v4273_v14  ;;  %v4274_v16 = vunpack.i.l.bf16 %v4273_v14  ;;  %v314_v14 = vld [vmem:[%s10359_s2 + $0x30] sm:$0xff] }
  0x91   : > { %v484_v17 = vsel %vm483_vm0, %v4274_v16, %v4275_v15  ;;  %v306_v16 = vld [vmem:[%s10357_s0] sm:$0x7] }
  0x92   : > { %525 = vmatpush.msra.mxu0 %v484_v17  ;;  %vm307_vm9 = vcmp.gt.f32.partialorder %v306_v16, 0.5 }
  0x95   : > { %v5915_v18 = vpop.permute.xlu0 %4242  ;;  %v5917_v19 = vpop.permute.xlu1 %424 }
  0x96   : > { %v4245_v33 = vunpack.i.h.bf16 %v5915_v18  ;;  %v4244_v34 = vunpack.i.l.bf16 %v5915_v18 }
  0x98   : > { %v427_v47 = vsel %vm426_vm4, %v4244_v34, %v4245_v33  ;;  %v428_v2 = vsel %vm426_vm4, %v4245_v33, %v5917_v19 }
  0x9d   : > { %v5919_v20 = vpop.permute.xlu0 %436  ;;  %v5921_v21 = vpop.permute.xlu1 %4252 }
  0x9e   : > { %v4255_v23 = vunpack.i.h.bf16 %v5921_v21  ;;  %v4254_v24 = vunpack.i.l.bf16 %v5921_v21  ;;  %v440_v63 = vsel %vm438_vm3, %v4250_v32, %v5919_v20  ;;  %v10768_v32 = vmov 0 }
  0xa0   : > { %v454_v31 = vsel %vm10366_vm2, %v4254_v24, %v4255_v23  ;;  %v455_v60 = vsel %vm10366_vm2, %v4255_v23, %v4259_v51 }
  0xa5   : > { %v4263_v26 = vpop.permute.xlu0 %4262  ;;  %v4268_v37 = vpop.permute.xlu1 %4267 }
  0xa6   : > { %v4265_v27 = vunpack.i.h.bf16 %v4263_v26  ;;  %v4264_v28 = vunpack.i.l.bf16 %v4263_v26  ;;  %v4270_v42 = vunpack.i.h.bf16 %v4268_v37  ;;  %v4269_v44 = vunpack.i.l.bf16 %v4268_v37 }
  0xa8   : > { %v469_v30 = vsel %vm468_vm1, %v4264_v28, %v4265_v27  ;;  %v471_v55 = vsel %vm468_vm1, %v4269_v44, %v4270_v42  ;;  %v470_v57 = vsel %vm468_vm1, %v4265_v27, %v4269_v44  ;;  %v10772_v44 = vmov 0 }
  0xa9   : > { %526 = vmatpush.msra.mxu0 %v469_v30 }
  0xab   : > { %527 = vmatpush.msra.mxu0 %v454_v31 }
  0xad   : > { %v4278_v43 = vpop.permute.xlu0 %4277  ;;  %528 = vmatpush.msra.mxu0 %v439_v39  ;;  %v653_v18 = vpop.permute.xlu1 %652 }
  0xae   : > { %v4280_v45 = vunpack.i.h.bf16 %v4278_v43  ;;  %v4279_v46 = vunpack.i.l.bf16 %v4278_v43 }
  0xaf   : > { %529 = vmatpush.msra.mxu0 %v427_v47 }
  0xb0   : > { %v485_v52 = vsel %vm483_vm0, %v4275_v15, %v4279_v46  ;;  %v486_v53 = vsel %vm483_vm0, %v4279_v46, %v4280_v45  ;;  %v315_v15 = vld [vmem:[%s10359_s2 + $0x38] sm:$0xff] }
  0xb1   : > { %530 = vmatpush.msra.mxu0 %v415_v49  ;;  %569 = vmatpush.msra.mxu1 %v485_v52 }
  0xb2   : > { %613 = vmatpush.msra.mxu2 %v486_v53 }
  0xb3   : > { %531 = vmatpush.msra.mxu0 %v403_v56  ;;  %570 = vmatpush.msra.mxu1 %v470_v57 }
  0xb4   : > { %614 = vmatpush.msra.mxu2 %v471_v55 }
  0xb5   : > { %532 = vmatpush.msra.mxu0 %v391_v59  ;;  %571 = vmatpush.msra.mxu1 %v455_v60 }
  0xb6   : > { %615 = vmatpush.msra.mxu2 %v456_v61 }
  0xb7   : > { %533 = vmatpush.msra.mxu0 %v5868_v0  ;;  %572 = vmatpush.msra.mxu1 %v440_v63  ;;  %v404_v0 = vsel %vm402_vm6, %v4235_v40, %v5910_v12 }
  0xb8   : > { %616 = vmatpush.msra.mxu2 %v5919_v20  ;;  %4125 = vmatmul.msk.f32.vlgmr.msra.gmra.mxu0 %vm490_vm8, %v308_v62  ;;  %v786_v20 = vsel %vm307_vm9, 1, %v5806_v25 }
  0xb9   : > { %573 = vmatpush.msra.mxu1 %v428_v2  ;;  %v787_v21 = vperm.slane %v786_v20, 0  ;;  %v788_v24 = vperm.slane %v786_v20, 1  ;;  %v789_v36 = vperm.slane %v786_v20, 2 }
  0xba   : > { %617 = vmatpush.msra.mxu2 %v5917_v19 }
  0xbb   : > { %574 = vmatpush.msra.mxu1 %v416_v4  ;;  %vm6047_vm11 = vcmp.eq.s32.totalorder %v787_v21, 1  ;;  %vm6053_vm12 = vcmp.eq.s32.totalorder %v788_v24, 1  ;;  %vm6073_vm15 = vcmp.eq.s32.totalorder %v789_v36, 1  ;;  %v6115_v4 = vpop.permute.xlu1 %667 }
  0xbc   : > { %618 = vmatpush.msra.mxu2 %v5900_v7  ;;  %v361_v7 = vld [vmem:[%s10360_s3 + $0x8] sm:$0xff]  ;;  %v10766_v29 = vsel %vm6047_vm11, 4294967295, %v10765_v29  ;;  %v10769_v32 = vsel %vm6053_vm12, 4294967295, %v10768_v32  ;;  %v10773_v44 = vsel %vm6073_vm15, 4294967295, %v10772_v44 }
  0xbd   : > { %575 = vmatpush.msra.mxu1 %v404_v0  ;;  %657 = vperm.xlu2 %4282, %v361_v7   ;;  %10767 = vst [vmem:[#allocation2_spill] sm:$0xff] %v10766_v29 }
  0xbe   : > { %619 = vmatpush.msra.mxu2 %v5910_v12  ;;  %v312_v12 = vld [vmem:[%s10359_s2 + $0x20] sm:$0xff]  ;;  %10770 = vst [vmem:[#allocation3_spill] sm:$0xff] %v10769_v32 }
  0xbf   : > { %576 = vmatpush.msra.mxu1 %v392_v6  ;;  %10774 = vst [vmem:[#allocation5_spill] sm:$0xff] %v10773_v44 }
  0xc0   : > { %620 = vmatpush.msra.mxu2 %v5912_v13  ;;  %4126 = vmatmul.msk.f32.gmra.mxu0 %vm490_vm8, %v309_v5  ;;  %v313_v13 = vld [vmem:[%s10359_s2 + $0x28] sm:$0xff] }
  0xc1   : > { %577 = vmatpush.msra.mxu1 %v5870_v1  ;;  %v310_v1 = vld [vmem:[%s10359_s2 + $0x10] sm:$0xff] }
  0xc2   : > { %621 = vmatpush.msra.mxu2 %v5877_v3  ;;  %4134 = vmatmul.msk.f32.vlgmr.msra.gmra.mxu1 %vm490_vm8, %v308_v62  ;;  %v364_v3 = vld [vmem:[%s10360_s3 + $0x20] sm:$0xff] }
  0xc3   : > { %4143 = vmatmul.msk.f32.vlgmr.msra.gmra.mxu2 %vm490_vm8, %v308_v62 }
  0xc5   : > { %672 = vperm.xlu2 %4282, %v364_v3  }
  0xc8   : > { %4127 = vmatmul.msk.f32.gmra.mxu0 %vm490_vm8, %v310_v1 }
  0xca   : > { %4135 = vmatmul.msk.f32.gmra.mxu1 %vm490_vm8, %v309_v5 }
  0xcb   : > { %4144 = vmatmul.msk.f32.gmra.mxu2 %vm490_vm8, %v309_v5 }
  0xcd   : > { %682 = vperm.xlu2 %4282, %v366_v10  }
  0xd0   : > { %4128 = vmatmul.msk.f32.gmra.mxu0 %vm490_vm8, %v311_v9 }
  0xd2   : > { %4136 = vmatmul.msk.f32.gmra.mxu1 %vm490_vm8, %v310_v1 }
  0xd3   : > { %4145 = vmatmul.msk.f32.gmra.mxu2 %vm490_vm8, %v310_v1 }
  0xd8   : > { %4129 = vmatmul.msk.f32.gmra.mxu0 %vm490_vm8, %v312_v12 }
  0xda   : > { %4137 = vmatmul.msk.f32.gmra.mxu1 %vm490_vm8, %v311_v9 }
  0xdb   : > { %4146 = vmatmul.msk.f32.gmra.mxu2 %vm490_vm8, %v311_v9 }
  0xe0   : > { %4130 = vmatmul.msk.f32.gmra.mxu0 %vm490_vm8, %v313_v13 }
  0xe2   : > { %4138 = vmatmul.msk.f32.gmra.mxu1 %vm490_vm8, %v312_v12 }
  0xe3   : > { %4147 = vmatmul.msk.f32.gmra.mxu2 %vm490_vm8, %v312_v12 }
  0xe8   : > { %4131 = vmatmul.msk.f32.gmra.mxu0 %vm490_vm8, %v314_v14 }
  0xea   : > { %4139 = vmatmul.msk.f32.gmra.mxu1 %vm490_vm8, %v313_v13 }
  0xeb   : > { %4148 = vmatmul.msk.f32.gmra.mxu2 %vm490_vm8, %v313_v13 }
  0xf0   : > { %4132 = vmatmul.msk.f32.gmra.mxu0 %vm490_vm8, %v315_v15 }
  0xf2   : > { %4140 = vmatmul.msk.f32.gmra.mxu1 %vm490_vm8, %v314_v14  ;;  %v6125_v10 = vpop.permute.xlu0 %662 }
  0xf3   : > { %4149 = vmatmul.msk.f32.gmra.mxu2 %vm490_vm8, %v314_v14 }
  0xfa   : > { %4141 = vmatmul.msk.f32.gmra.mxu1 %vm490_vm8, %v315_v15 }
  0xfb   : > { %4150 = vmatmul.msk.f32.gmra.mxu2 %vm490_vm8, %v315_v15  ;;  %v678_v15 = vpop.permute.xlu1 %677 }
 0x117   : > { %v658_v26 = vpop.permute.xlu2 %657 }
 0x11f   : > { %v673_v1 = vpop.permute.xlu2 %672 }
 0x127   : > { %v683_v24 = vpop.permute.xlu2 %682 }
 0x135   : > { %v535_v17 = vpop.f32.mrf.mxu0 }
 0x136   : > { %v690_v19 = vadd.f32 %v653_v18, %v535_v17 }
 0x138   : > { %v738_v22 = vmul.f32 0.2, %v690_v19  ;;  %vm714_vm10 = vcmp.ge.f32.partialorder %v690_v19, 0.0 }
 0x13a   : > { %v6051_v30 = vsel %vm714_vm10, %v690_v19, %v738_v22 }
 0x13b   : > { %v793_v33 = vsel %vm6047_vm11, %v6051_v30, 0.0 }
 0x13d   : > { %v538_v23 = vpop.f32.mrf.mxu0 }
 0x13e   : > { %v693_v27 = vadd.f32 %v658_v26, %v538_v23 }
 0x13f   : > { %v579_v28 = vpop.f32.mrf.mxu1 }
 0x140   : > { %v691_v31 = vadd.f32 %v653_v18, %v579_v28  ;;  %v741_v34 = vmul.f32 0.2, %v693_v27  ;;  %vm717_vm14 = vcmp.ge.f32.partialorder %v693_v27, 0.0 }
 0x142   : > { %vm715_vm13 = vcmp.ge.f32.partialorder %v691_v31, 0.0  ;;  %v739_v25 = vmul.f32 0.2, %v691_v31  ;;  %v6069_v41 = vsel %vm717_vm14, %v693_v27, %v741_v34  ;;  %v6147_v34 = vpop.permute.xlu0 %687 }
 0x143   : > { %v796_v47 = vsel %vm6047_vm11, %v6069_v41, 0.0 }
 0x144   : > { %v6060_v35 = vsel %vm715_vm13, %v691_v31, %v739_v25 }
 0x145   : > { %10771 = vst [vmem:[#allocation4_spill] sm:$0xff] %v6060_v35  ;;  %v794_v37 = vsel %vm6053_vm12, %v6060_v35, 0.0  ;;  %v6065_v38 = vpop.f32.mrf.mxu0 }
 0x146   : > { %v623_v39 = vpop.f32.mrf.mxu2  ;;  %v6067_v40 = vpack.i.bf16 %v794_v37, %v793_v33 }
 0x147   : > { %v692_v42 = vadd.f32 %v653_v18, %v623_v39  ;;  %v582_v43 = vpop.f32.mrf.mxu1 }
 0x148   : > { %4285 = vrot.lane.b32.xlu1 %v6067_v40, %s5799_s12  ;;  %v694_v46 = vadd.f32 %v658_v26, %v582_v43 }
 0x149   : > { %vm716_vm9 = vcmp.ge.f32.partialorder %v692_v42, 0.0  ;;  %v740_v45 = vmul.f32 0.2, %v692_v42 }
 0x14a   : > { %v742_v50 = vmul.f32 0.2, %v694_v46  ;;  %vm718_vm10 = vcmp.ge.f32.partialorder %v694_v46, 0.0 }
 0x14b   : > { %v6080_v48 = vsel %vm716_vm9, %v692_v42, %v740_v45 }
 0x14c   : > { %10775 = vst [vmem:[#allocation6_spill] sm:$0xff] %v6080_v48  ;;  %v795_v49 = vsel %vm6073_vm15, %v6080_v48, 0.0  ;;  %v6095_v56 = vsel %vm718_vm10, %v694_v46, %v742_v50 }
 0x14d   : > { %v6085_v51 = vpop.f32.mrf.mxu0  ;;  %v6087_v52 = vpack.i.bf16 %v796_v47, %v795_v49  ;;  %10776 = vst [vmem:[#allocation7_spill] sm:$0xff] %v6095_v56  ;;  %v797_v59 = vsel %vm6053_vm12, %v6095_v56, 0.0  ;;  %v372_v56 = vld [vmem:[%s10362_s5 + $0x20] sm:$0xff] }
 0x14e   : > { %v626_v53 = vpop.f32.mrf.mxu2 }
 0x14f   : > { %v695_v54 = vadd.f32 %v658_v26, %v626_v53  ;;  %4325 = vrot.lane.b32.xlu2 %v6087_v52, %s5799_s12  ;;  %v6091_v55 = vpop.f32.mrf.mxu1 }
 0x150   : > { %4290 = vrot.lane.b32.xlu1 %v6067_v40, %s5798_s11 }
 0x151   : > { %vm719_vm13 = vcmp.ge.f32.partialorder %v695_v54, 0.0  ;;  %v743_v57 = vmul.f32 0.2, %v695_v54 }
 0x153   : > { %v6097_v58 = vsel %vm719_vm13, %v695_v54, %v743_v57 }
 0x154   : > { %10777 = vst [vmem:[#allocation8_spill] sm:$0xff] %v6097_v58  ;;  %v798_v60 = vsel %vm6073_vm15, %v6097_v58, 0.0 }
 0x155   : > { %v547_v61 = vpop.f32.mrf.mxu0  ;;  %v6105_v62 = vpack.i.bf16 %v798_v60, %v797_v59 }
 0x156   : > { %v6107_v63 = vpop.f32.mrf.mxu2  ;;  %v702_v16 = vadd.f32 %v673_v1, %v547_v61 }
 0x157   : > { %4365 = vrot.lane.b32.xlu0 %v6105_v62, %s5799_s12  ;;  %4330 = vrot.lane.b32.xlu2 %v6087_v52, %s5798_s11  ;;  %v588_v2 = vpop.f32.mrf.mxu1 }
 0x158   : > { %4295 = vrot.lane.b32.xlu1 %v6067_v40, %s5800_s13  ;;  %v700_v8 = vadd.f32 %v6115_v4, %v588_v2  ;;  %v750_v26 = vmul.f32 0.2, %v702_v16  ;;  %v696_v2 = vadd.f32 %v6125_v10, %v6065_v38 }
 0x15a   : > { %v748_v9 = vmul.f32 0.2, %v700_v8  ;;  %vm724_vm9 = vcmp.ge.f32.partialorder %v700_v8, 0.0 }
 0x15c   : > { %v6133_v19 = vsel %vm724_vm9, %v700_v8, %v748_v9  ;;  %v697_v9 = vadd.f32 %v6125_v10, %v6091_v55 }
 0x15d   : > { %v550_v0 = vpop.f32.mrf.mxu0  ;;  %10779 = vst [vmem:[#allocation10_spill] sm:$0xff] %v6133_v19  ;;  %v803_v27 = vsel %vm6053_vm12, %v6133_v19, 0.0  ;;  %v375_v19 = vld [vmem:[%s10362_s5 + $0x38] sm:$0xff] }
 0x15e   : > { %v632_v5 = vpop.f32.mrf.mxu2  ;;  %v705_v20 = vadd.f32 %v678_v15, %v550_v0 }
 0x15f   : > { %v701_v6 = vadd.f32 %v6115_v4, %v632_v5  ;;  %4370 = vrot.lane.b32.xlu0 %v6105_v62, %s5798_s11  ;;  %4335 = vrot.lane.b32.xlu2 %v6087_v52, %s5800_s13  ;;  %v591_v7 = vpop.f32.mrf.mxu1 }
 0x160   : > { %4300 = vrot.lane.b32.xlu1 %v6067_v40, %s5801_s14  ;;  %v703_v11 = vadd.f32 %v673_v1, %v591_v7  ;;  %v753_v28 = vmul.f32 0.2, %v705_v20  ;;  %vm729_vm9 = vcmp.ge.f32.partialorder %v705_v20, 0.0 }
 0x161   : > { %v749_v3 = vmul.f32 0.2, %v701_v6  ;;  %vm725_vm14 = vcmp.ge.f32.partialorder %v701_v6, 0.0 }
 0x162   : > { %v751_v22 = vmul.f32 0.2, %v703_v11  ;;  %vm727_vm10 = vcmp.ge.f32.partialorder %v703_v11, 0.0  ;;  %v6157_v47 = vsel %vm729_vm9, %v705_v20, %v753_v28 }
 0x163   : > { %v6127_v12 = vsel %vm725_vm14, %v701_v6, %v749_v3  ;;  %vm726_vm14 = vcmp.ge.f32.partialorder %v702_v16, 0.0  ;;  %v808_v5 = vsel %vm6047_vm11, %v6157_v47, 0.0 }
 0x164   : > { %10778 = vst [vmem:[#allocation9_spill] sm:$0xff] %v6127_v12  ;;  %v804_v21 = vsel %vm6073_vm15, %v6127_v12, 0.0  ;;  %v6145_v33 = vsel %vm727_vm10, %v703_v11, %v751_v22  ;;  %v6151_v43 = vsel %vm726_vm14, %v702_v16, %v750_v26 }
 0x165   : > { %v553_v13 = vpop.f32.mrf.mxu0  ;;  %v6143_v25 = vpack.i.bf16 %v804_v21, %v803_v27  ;;  %10780 = vst [vmem:[#allocation11_spill] sm:$0xff] %v6145_v33  ;;  %v806_v49 = vsel %vm6053_vm12, %v6145_v33, 0.0  ;;  %v805_v0 = vsel %vm6047_vm11, %v6151_v43, 0.0 }
 0x166   : > { %v635_v14 = vpop.f32.mrf.mxu2  ;;  %v708_v31 = vadd.f32 %v683_v24, %v553_v13  ;;  %v6180_v8 = vpack.i.bf16 %v806_v49, %v805_v0  ;;  %v698_v49 = vadd.f32 %v6125_v10, %v6107_v63  ;;  %v699_v63 = vadd.f32 %v6115_v4, %v6085_v51 }
 0x167   : > { %v704_v17 = vadd.f32 %v673_v1, %v635_v14  ;;  %4375 = vrot.lane.b32.xlu0 %v6105_v62, %s5800_s13  ;;  %4340 = vrot.lane.b32.xlu2 %v6087_v52, %s5801_s14  ;;  %v594_v18 = vpop.f32.mrf.mxu1 }
 0x168   : > { %4305 = vrot.lane.b32.xlu1 %v6067_v40, %s5802_s15  ;;  %v706_v37 = vadd.f32 %v678_v15, %v594_v18  ;;  %v756_v50 = vmul.f32 0.2, %v708_v31  ;;  %v747_v51 = vmul.f32 0.2, %v699_v63 }
 0x169   : > { %v752_v23 = vmul.f32 0.2, %v704_v17  ;;  %vm728_vm13 = vcmp.ge.f32.partialorder %v704_v17, 0.0 }
 0x16a   : > { %v754_v60 = vmul.f32 0.2, %v706_v37  ;;  %vm730_vm9 = vcmp.ge.f32.partialorder %v706_v37, 0.0 }
 0x16b   : > { %v6149_v36 = vsel %vm728_vm13, %v704_v17, %v752_v23  ;;  %vm732_vm13 = vcmp.ge.f32.partialorder %v708_v31, 0.0  ;;  %v744_v17 = vmul.f32 0.2, %v696_v2 }
 0x16c   : > { %10781 = vst [vmem:[#allocation12_spill] sm:$0xff] %v6149_v36  ;;  %v807_v54 = vsel %vm6073_vm15, %v6149_v36, 0.0  ;;  %v6184_v3 = vsel %vm732_vm13, %v708_v31, %v756_v50  ;;  %v6188_v11 = vsel %vm730_vm9, %v706_v37, %v754_v60  ;;  %vm720_vm13 = vcmp.ge.f32.partialorder %v696_v2, 0.0 }
 0x16d   : > { %v556_v42 = vpop.f32.mrf.mxu0  ;;  %v6182_v1 = vpack.i.bf16 %v808_v5, %v807_v54  ;;  %10784 = vst [vmem:[#allocation15_spill] sm:$0xff] %v6188_v11  ;;  %v811_v18 = vsel %vm6047_vm11, %v6184_v3, 0.0  ;;  %v809_v21 = vsel %vm6053_vm12, %v6188_v11, 0.0 }
 0x16e   : > { %v638_v39 = vpop.f32.mrf.mxu2  ;;  %v711_v59 = vadd.f32 %v6147_v34, %v556_v42  ;;  %v6223_v42 = vsel %vm720_vm13, %v696_v2, %v744_v17  ;;  %vm723_vm13 = vcmp.ge.f32.partialorder %v699_v63, 0.0 }
 0x16f   : > { %v707_v45 = vadd.f32 %v678_v15, %v638_v39  ;;  %4380 = vrot.lane.b32.xlu0 %v6105_v62, %s5801_s14  ;;  %4345 = vrot.lane.b32.xlu2 %v6087_v52, %s5802_s15  ;;  %v597_v46 = vpop.f32.mrf.mxu1  ;;  %v799_v54 = vsel %vm6047_vm11, %v6223_v42, 0.0  ;;  %v6265_v5 = vsel %vm723_vm13, %v699_v63, %v747_v51 }
 0x170   : > { %v709_v53 = vadd.f32 %v683_v24, %v597_v46  ;;  %4310 = vrot.lane.b32.xlu1 %v6067_v40, %s5803_s16  ;;  %v759_v38 = vmul.f32 0.2, %v711_v59  ;;  %vm735_vm2 = vcmp.ge.f32.partialorder %v711_v59, 0.0 }
 0x171   : > { %vm731_vm10 = vcmp.ge.f32.partialorder %v707_v45, 0.0  ;;  %v755_v57 = vmul.f32 0.2, %v707_v45 }
 0x172   : > { %vm733_vm14 = vcmp.ge.f32.partialorder %v709_v53, 0.0  ;;  %v757_v61 = vmul.f32 0.2, %v709_v53  ;;  %v6209_v22 = vsel %vm735_vm2, %v711_v59, %v759_v38  ;;  %v746_v59 = vmul.f32 0.2, %v698_v49 }
 0x173   : > { %v6176_v6 = vsel %vm731_vm10, %v707_v45, %v755_v57  ;;  %v814_v31 = vsel %vm6047_vm11, %v6209_v22, 0.0 }
 0x174   : > { %10782 = vst [vmem:[#allocation13_spill] sm:$0xff] %v6176_v6  ;;  %v6178_v7 = vsel %vm733_vm14, %v709_v53, %v757_v61  ;;  %v810_v14 = vsel %vm6073_vm15, %v6176_v6, 0.0  ;;  %vm721_vm14 = vcmp.ge.f32.partialorder %v697_v9, 0.0 }
 0x175   : > { %10783 = vst [vmem:[#allocation14_spill] sm:$0xff] %v6178_v7  ;;  %v812_v15 = vsel %vm6053_vm12, %v6178_v7, 0.0  ;;  %v6211_v26 = vpack.i.bf16 %v810_v14, %v809_v21 }
 0x176   : > { %v641_v13 = vpop.f32.mrf.mxu2  ;;  %v6213_v27 = vpack.i.bf16 %v812_v15, %v811_v18 }
 0x177   : > { %v710_v16 = vadd.f32 %v683_v24, %v641_v13  ;;  %4385 = vrot.lane.b32.xlu0 %v6105_v62, %s5802_s15  ;;  %4350 = vrot.lane.b32.xlu2 %v6087_v52, %s5803_s16  ;;  %v600_v55 = vpop.f32.mrf.mxu1  ;;  %v745_v24 = vmul.f32 0.2, %v697_v9 }
 0x178   : > { %4315 = vrot.lane.b32.xlu1 %v6067_v40, %s5804_s17  ;;  %v712_v20 = vadd.f32 %v6147_v34, %v600_v55 }
 0x179   : > { %vm734_vm10 = vcmp.ge.f32.partialorder %v710_v16, 0.0  ;;  %v758_v23 = vmul.f32 0.2, %v710_v16  ;;  %v6225_v45 = vsel %vm721_vm14, %v697_v9, %v745_v24  ;;  %v802_v9 = vsel %vm6047_vm11, %v6265_v5, 0.0 }
 0x17a   : > { %v760_v39 = vmul.f32 0.2, %v712_v20  ;;  %vm736_vm2 = vcmp.ge.f32.partialorder %v712_v20, 0.0  ;;  %10786 = vst [vmem:[#allocation17_spill] sm:$0xff] %v6225_v45  ;;  %v800_v10 = vsel %vm6053_vm12, %v6225_v45, 0.0  ;;  %v373_v45 = vld [vmem:[%s10362_s5 + $0x28] sm:$0xff] }
 0x17b   : > { %v6215_v28 = vsel %vm734_vm10, %v710_v16, %v758_v23  ;;  %vm722_vm10 = vcmp.ge.f32.partialorder %v698_v49, 0.0  ;;  %v4404_v2 = vpack.i.bf16 %v800_v10, %v799_v54 }
 0x17c   : > { %10785 = vst [vmem:[#allocation16_spill] sm:$0xff] %v6215_v28  ;;  %v813_v37 = vsel %vm6073_vm15, %v6215_v28, 0.0  ;;  %v6241_v57 = vsel %vm736_vm2, %v712_v20, %v760_v39  ;;  %v6258_v0 = vsel %vm722_vm10, %v698_v49, %v746_v59  ;;  %vm1585_vm10 = vcmask 523264  }
 0x17d   : > { %v6234_v53 = vpack.i.bf16 %v814_v31, %v813_v37  ;;  %10787 = vst [vmem:[#allocation18_spill] sm:$0xff] %v6241_v57  ;;  %v815_v60 = vsel %vm6053_vm12, %v6241_v57, 0.0  ;;  %v801_v38 = vsel %vm6073_vm15, %v6258_v0, 0.0 }
 0x17e   : > { %v644_v46 = vpop.f32.mrf.mxu2  ;;  %10789 = vst [vmem:[#allocation20_spill] sm:$0xff] %v6258_v0  ;;  %v4444_v13 = vpack.i.bf16 %v802_v9, %v801_v38 }
 0x17f   : > { %4390 = vrot.lane.b32.xlu0 %v6105_v62, %s5803_s16  ;;  %4355 = vrot.lane.b32.xlu2 %v6087_v52, %s5804_s17  ;;  %v713_v50 = vadd.f32 %v6147_v34, %v644_v46 }
 0x180   : > { %4320 = vrot.lane.b32.xlu1 %v6067_v40, %s5805_s18 }
 0x181   : > { %vm737_vm9 = vcmp.ge.f32.partialorder %v713_v50, 0.0  ;;  %v761_v34 = vmul.f32 0.2, %v713_v50 }
 0x183   : > { %v6251_v61 = vsel %vm737_vm9, %v713_v50, %v761_v34 }
 0x184   : > { %10788 = vst [vmem:[#allocation19_spill] sm:$0xff] %v6251_v61  ;;  %v816_v40 = vsel %vm6073_vm15, %v6251_v61, 0.0 }
 0x185   : > { %v6256_v4 = vpack.i.bf16 %v816_v40, %v815_v60 }
 0x187   : > { %4395 = vrot.lane.b32.xlu0 %v6105_v62, %s5804_s17  ;;  %4360 = vrot.lane.b32.xlu2 %v6087_v52, %s5805_s18 }
 0x188   : > { %4405 = vrot.lane.b32.xlu1 %v4404_v2, %s5799_s12 }
 0x18f   : > { %4400 = vrot.lane.b32.xlu0 %v6105_v62, %s5805_s18  ;;  %4445 = vrot.lane.b32.xlu2 %v4444_v13, %s5799_s12 }
 0x190   : > { %4410 = vrot.lane.b32.xlu1 %v4404_v2, %s5798_s11 }
 0x197   : > { %4485 = vrot.lane.b32.xlu0 %v6143_v25, %s5799_s12  ;;  %4450 = vrot.lane.b32.xlu2 %v4444_v13, %s5798_s11 }
 0x198   : > { %4415 = vrot.lane.b32.xlu1 %v4404_v2, %s5800_s13 }
 0x19f   : > { %4490 = vrot.lane.b32.xlu0 %v6143_v25, %s5798_s11  ;;  %4455 = vrot.lane.b32.xlu2 %v4444_v13, %s5800_s13 }
 0x1a0   : > { %4420 = vrot.lane.b32.xlu1 %v4404_v2, %s5801_s14 }
 0x1a7   : > { %4495 = vrot.lane.b32.xlu0 %v6143_v25, %s5800_s13  ;;  %4460 = vrot.lane.b32.xlu2 %v4444_v13, %s5801_s14 }
 0x1a8   : > { %4425 = vrot.lane.b32.xlu1 %v4404_v2, %s5802_s15 }
 0x1a9   : > { %v6289_v52 = vpop.permute.xlu2 %4325 }
 0x1aa   : > { %10790 = vst [vmem:[#allocation21_spill] sm:$0xff] %v6289_v52 }
 0x1af   : > { %4500 = vrot.lane.b32.xlu0 %v6143_v25, %s5801_s14  ;;  %4465 = vrot.lane.b32.xlu2 %v4444_v13, %s5802_s15 }
 0x1b0   : > { %4430 = vrot.lane.b32.xlu1 %v4404_v2, %s5803_s16 }
 0x1b1   : > { %v6295_v62 = vpop.permute.xlu2 %4330 }
 0x1b7   : > { %4505 = vrot.lane.b32.xlu0 %v6143_v25, %s5802_s15  ;;  %4470 = vrot.lane.b32.xlu2 %v4444_v13, %s5803_s16 }
 0x1b8   : > { %4435 = vrot.lane.b32.xlu1 %v4404_v2, %s5804_s17 }
 0x1b9   : > { %v6301_v14 = vpop.permute.xlu2 %4335 }
 0x1ba   : > { %10791 = vst [vmem:[#allocation22_spill] sm:$0xff] %v6301_v14  ;;  %v6303_v15 = vpop.permute.xlu1 %4285 }
 0x1bf   : > { %4510 = vrot.lane.b32.xlu0 %v6143_v25, %s5803_s16  ;;  %4475 = vrot.lane.b32.xlu2 %v4444_v13, %s5804_s17 }
 0x1c0   : > { %4440 = vrot.lane.b32.xlu1 %v4404_v2, %s5805_s18 }
 0x1c1   : > { %v6309_v16 = vpop.permute.xlu2 %4340 }
 0x1c2   : > { %10792 = vst [vmem:[#allocation23_spill] sm:$0xff] %v6309_v16  ;;  %v6311_v55 = vpop.permute.xlu1 %4290 }
 0x1c7   : > { %4515 = vrot.lane.b32.xlu0 %v6143_v25, %s5804_s17  ;;  %4480 = vrot.lane.b32.xlu2 %v4444_v13, %s5805_s18 }
 0x1c8   : > { %4520 = vrot.lane.b32.xlu1 %v6180_v8, %s5799_s12 }
 0x1c9   : > { %v6318_v17 = vpop.permute.xlu0 %4365  ;;  %v6320_v18 = vpop.permute.xlu2 %4345 }
 0x1ca   : > { %10793 = vst [vmem:[#allocation24_spill] sm:$0xff] %v6318_v17  ;;  %v6322_v20 = vpop.permute.xlu1 %4295 }
 0x1cb   : > { %10794 = vst [vmem:[#allocation25_spill] sm:$0xff] %v6320_v18 }
 0x1cf   : > { %4590 = vrot.lane.b32.xlu0 %v6211_v26, %s5799_s12  ;;  %4555 = vrot.lane.b32.xlu2 %v6182_v1, %s5799_s12 }
 0x1d0   : > { %4525 = vrot.lane.b32.xlu1 %v6180_v8, %s5798_s11 }
 0x1d1   : > { %v6330_v21 = vpop.permute.xlu0 %4370  ;;  %v6332_v23 = vpop.permute.xlu2 %4350 }
 0x1d2   : > { %10795 = vst [vmem:[#allocation26_spill] sm:$0xff] %v6332_v23  ;;  %v6334_v24 = vpop.permute.xlu1 %4300 }
 0x1d3   : > { %10796 = vst [vmem:[#allocation27_spill] sm:$0xff] %v6334_v24 }
 0x1d7   : > { %4595 = vrot.lane.b32.xlu0 %v6211_v26, %s5798_s11  ;;  %4560 = vrot.lane.b32.xlu2 %v6182_v1, %s5798_s11 }
 0x1d8   : > { %4530 = vrot.lane.b32.xlu1 %v6180_v8, %s5800_s13 }
 0x1d9   : > { %v6342_v31 = vpop.permute.xlu0 %4375  ;;  %v6344_v37 = vpop.permute.xlu2 %4355 }
 0x1da   : > { %10797 = vst [vmem:[#allocation28_spill] sm:$0xff] %v6342_v31  ;;  %v6346_v39 = vpop.permute.xlu1 %4305 }
 0x1db   : > { %10798 = vst [vmem:[#allocation29_spill] sm:$0xff] %v6344_v37 }
 0x1dc   : > { %10799 = vst [vmem:[#allocation30_spill] sm:$0xff] %v6346_v39 }
 0x1df   : > { %4600 = vrot.lane.b32.xlu0 %v6211_v26, %s5800_s13  ;;  %4565 = vrot.lane.b32.xlu2 %v6182_v1, %s5800_s13 }
 0x1e0   : > { %4535 = vrot.lane.b32.xlu1 %v6180_v8, %s5801_s14 }
 0x1e1   : > { %v6354_v46 = vpop.permute.xlu0 %4380  ;;  %v6356_v49 = vpop.permute.xlu2 %4360 }
 0x1e2   : > { %10800 = vst [vmem:[#allocation31_spill] sm:$0xff] %v6354_v46  ;;  %v6358_v50 = vpop.permute.xlu1 %4310 }
 0x1e3   : > { %10801 = vst [vmem:[#allocation32_spill] sm:$0xff] %v6356_v49 }
 0x1e4   : > { %10802 = vst [vmem:[#allocation33_spill] sm:$0xff] %v6358_v50 }
 0x1e7   : > { %4605 = vrot.lane.b32.xlu0 %v6211_v26, %s5801_s14  ;;  %4570 = vrot.lane.b32.xlu2 %v6182_v1, %s5801_s14 }
 0x1e8   : > { %4540 = vrot.lane.b32.xlu1 %v6180_v8, %s5802_s15 }
 0x1e9   : > { %v6366_v54 = vpop.permute.xlu0 %4385  ;;  %v6368_v63 = vpop.permute.xlu2 %4445 }
 0x1ea   : > { %10803 = vst [vmem:[#allocation34_spill] sm:$0xff] %v6366_v54  ;;  %v6370_v10 = vpop.permute.xlu1 %4315 }
 0x1eb   : > { %10804 = vst [vmem:[#allocation35_spill] sm:$0xff] %v6370_v10 }
 0x1ef   : > { %4610 = vrot.lane.b32.xlu0 %v6211_v26, %s5802_s15  ;;  %4575 = vrot.lane.b32.xlu2 %v6182_v1, %s5802_s15 }
 0x1f0   : > { %4545 = vrot.lane.b32.xlu1 %v6180_v8, %s5803_s16 }
 0x1f1   : > { %v6378_v34 = vpop.permute.xlu0 %4390  ;;  %v6380_v59 = vpop.permute.xlu2 %4450 }
 0x1f2   : > { %10805 = vst [vmem:[#allocation36_spill] sm:$0xff] %v6378_v34  ;;  %v6382_v60 = vpop.permute.xlu1 %4320 }
 0x1f3   : > { %10806 = vst [vmem:[#allocation37_spill] sm:$0xff] %v6382_v60 }
 0x1f7   : > { %4615 = vrot.lane.b32.xlu0 %v6211_v26, %s5803_s16  ;;  %4580 = vrot.lane.b32.xlu2 %v6182_v1, %s5803_s16 }
 0x1f8   : > { %4550 = vrot.lane.b32.xlu1 %v6180_v8, %s5804_s17 }
 0x1f9   : > { %v6390_v40 = vpop.permute.xlu0 %4395  ;;  %v6392_v2 = vpop.permute.xlu2 %4455 }
 0x1fa   : > { %10807 = vst [vmem:[#allocation38_spill] sm:$0xff] %v6390_v40  ;;  %v6394_v51 = vpop.permute.xlu1 %4405  ;;  %v371_v40 = vld [vmem:[%s10362_s5 + $0x18] sm:$0xff] }
 0x1fb   : > { %10808 = vst [vmem:[#allocation39_spill] sm:$0xff] %v6392_v2 }
 0x1ff   : > { %4620 = vrot.lane.b32.xlu0 %v6211_v26, %s5804_s17  ;;  %4585 = vrot.lane.b32.xlu2 %v6182_v1, %s5804_s17 }
 0x200   : > { %4625 = vrot.lane.b32.xlu1 %v6213_v27, %s5799_s12 }
 0x201   : > { %v6402_v38 = vpop.permute.xlu0 %4400  ;;  %v6404_v9 = vpop.permute.xlu2 %4460 }
 0x202   : > { %10809 = vst [vmem:[#allocation40_spill] sm:$0xff] %v6402_v38  ;;  %v6406_v13 = vpop.permute.xlu1 %4410 }
 0x203   : > { %10810 = vst [vmem:[#allocation41_spill] sm:$0xff] %v6404_v9 }
 0x207   : > { %4695 = vrot.lane.b32.xlu0 %v6256_v4, %s5799_s12  ;;  %4660 = vrot.lane.b32.xlu2 %v6234_v53, %s5799_s12 }
 0x208   : > { %4630 = vrot.lane.b32.xlu1 %v6213_v27, %s5798_s11 }
 0x209   : > { %v6414_v48 = vpop.permute.xlu0 %4485  ;;  %v6416_v58 = vpop.permute.xlu2 %4465 }
 0x20a   : > { %10811 = vst [vmem:[#allocation42_spill] sm:$0xff] %v6416_v58  ;;  %v6418_v0 = vpop.permute.xlu1 %4415 }
 0x20f   : > { %4700 = vrot.lane.b32.xlu0 %v6256_v4, %s5798_s11  ;;  %4665 = vrot.lane.b32.xlu2 %v6234_v53, %s5798_s11 }
 0x210   : > { %4635 = vrot.lane.b32.xlu1 %v6213_v27, %s5800_s13 }
 0x211   : > { %v6426_v12 = vpop.permute.xlu0 %4490  ;;  %v6428_v36 = vpop.permute.xlu2 %4470 }
 0x212   : > { %10812 = vst [vmem:[#allocation43_spill] sm:$0xff] %v6426_v12  ;;  %v6430_v6 = vpop.permute.xlu1 %4420  ;;  %v10447_v29 = vunpack.i.l.bf16 %v6426_v12 }
 0x213   : > { %10813 = vst [vmem:[#allocation44_spill] sm:$0xff] %v6428_v36 }
 0x214   : > { %10814 = vst [vmem:[#allocation45_spill] sm:$0xff] %v6430_v6 }
 0x217   : > { %4705 = vrot.lane.b32.xlu0 %v6256_v4, %s5800_s13  ;;  %4670 = vrot.lane.b32.xlu2 %v6234_v53, %s5800_s13 }
 0x218   : > { %4640 = vrot.lane.b32.xlu1 %v6213_v27, %s5801_s14 }
 0x219   : > { %v6438_v28 = vpop.permute.xlu0 %4495  ;;  %v6440_v44 = vpop.permute.xlu2 %4475 }
 0x21a   : > { %10815 = vst [vmem:[#allocation46_spill] sm:$0xff] %v6438_v28  ;;  %v6442_v61 = vpop.permute.xlu1 %4425 }
 0x21b   : > { %10816 = vst [vmem:[#allocation47_spill] sm:$0xff] %v6440_v44 }
 0x21c   : > { %10817 = vst [vmem:[#allocation48_spill] sm:$0xff] %v6442_v61 }
 0x21f   : > { %4710 = vrot.lane.b32.xlu0 %v6256_v4, %s5801_s14  ;;  %4675 = vrot.lane.b32.xlu2 %v6234_v53, %s5801_s14 }
 0x220   : > { %4645 = vrot.lane.b32.xlu1 %v6213_v27, %s5802_s15 }
 0x221   : > { %v6450_v50 = vpop.permute.xlu0 %4500  ;;  %v6452_v23 = vpop.permute.xlu2 %4480 }
 0x222   : > { %10818 = vst [vmem:[#allocation49_spill] sm:$0xff] %v6450_v50  ;;  %v6454_v34 = vpop.permute.xlu1 %4430  ;;  %v10424_v50 = vunpack.i.l.bf16 %v6414_v48 }
 0x223   : > { %10819 = vst [vmem:[#allocation50_spill] sm:$0xff] %v6452_v23 }
 0x224   : > { %10820 = vst [vmem:[#allocation51_spill] sm:$0xff] %v6454_v34 }
 0x227   : > { %4715 = vrot.lane.b32.xlu0 %v6256_v4, %s5802_s15  ;;  %4680 = vrot.lane.b32.xlu2 %v6234_v53, %s5802_s15 }
 0x228   : > { %4650 = vrot.lane.b32.xlu1 %v6213_v27, %s5803_s16 }
 0x229   : > { %v6462_v36 = vpop.permute.xlu0 %4505  ;;  %v6464_v60 = vpop.permute.xlu2 %4555 }
 0x22a   : > { %10821 = vst [vmem:[#allocation52_spill] sm:$0xff] %v6462_v36  ;;  %v6466_v38 = vpop.permute.xlu1 %4435  ;;  %v4558_v16 = vunpack.i.h.bf16 %v6464_v60 }
 0x22b   : > { %10822 = vst [vmem:[#allocation53_spill] sm:$0xff] %v6464_v60 }
 0x22c   : > { %10823 = vst [vmem:[#allocation54_spill] sm:$0xff] %v6466_v38  ;;  %v368_v38 = vld [vmem:[%s10362_s5] sm:$0xff] }
 0x22f   : > { %4720 = vrot.lane.b32.xlu0 %v6143_v25, %s5805_s18  ;;  %4685 = vrot.lane.b32.xlu2 %v6234_v53, %s5803_s16 }
 0x230   : > { %4655 = vrot.lane.b32.xlu1 %v6213_v27, %s5804_s17 }
 0x231   : > { %v6474_v34 = vpop.permute.xlu0 %4510  ;;  %v6478_v49 = vpop.permute.xlu2 %4560 }
 0x232   : > { %10824 = vst [vmem:[#allocation55_spill] sm:$0xff] %v6474_v34  ;;  %v6476_v23 = vpop.permute.xlu1 %4440  ;;  %v370_v34 = vld [vmem:[%s10362_s5 + $0x10] sm:$0xff] }
 0x233   : > { %10825 = vst [vmem:[#allocation56_spill] sm:$0xff] %v6476_v23 }
 0x237   : > { %4735 = vrot.lane.b32.xlu0 %v6211_v26, %s5805_s18  ;;  %4690 = vrot.lane.b32.xlu2 %v6234_v53, %s5804_s17 }
 0x238   : > { %4725 = vrot.lane.b32.xlu1 %v6180_v8, %s5805_s18 }
 0x239   : > { %v6486_v25 = vpop.permute.xlu0 %4515  ;;  %v6493_v23 = vpop.permute.xlu2 %4565 }
 0x23a   : > { %10826 = vst [vmem:[#allocation57_spill] sm:$0xff] %v6486_v25  ;;  %v6488_v35 = vpop.permute.xlu1 %4520  ;;  %v374_v25 = vld [vmem:[%s10362_s5 + $0x30] sm:$0xff] }
 0x23b   : > { %10827 = vst [vmem:[#allocation58_spill] sm:$0xff] %v6493_v23  ;;  %v10422_v46 = vunpack.i.h.bf16 %v6488_v35  ;;  %v4522_v6 = vunpack.i.l.bf16 %v6488_v35 }
 0x23f   : > { %1557 = vperm.xlu0 %4283, %v370_v34   ;;  %4730 = vrot.lane.b32.xlu2 %v6182_v1, %s5805_s18  ;;  %v369_v34 = vld [vmem:[%s10362_s5 + $0x8] sm:$0xff] }
 0x240   : > { %4740 = vrot.lane.b32.xlu1 %v6213_v27, %s5805_s18 }
 0x241   : > { %v6499_v26 = vpop.permute.xlu0 %4590  ;;  %v6506_v44 = vpop.permute.xlu2 %4570 }
 0x242   : > { %v6501_v8 = vpop.permute.xlu1 %4525  ;;  %10828 = vst [vmem:[#allocation59_spill] sm:$0xff] %v6506_v44 }
 0x247   : > { %4750 = vrot.lane.b32.xlu0 %v6256_v4, %s5803_s16  ;;  %4745 = vrot.lane.b32.xlu2 %v6234_v53, %s5805_s18 }
 0x248   : > { %1547 = vperm.xlu1 %4281, %v368_v38  }
 0x249   : > { %v6512_v1 = vpop.permute.xlu0 %4595  ;;  %v6524_v10 = vpop.permute.xlu2 %4575 }
 0x24a   : > { %v6514_v27 = vpop.permute.xlu1 %4530  ;;  %10829 = vst [vmem:[#allocation60_spill] sm:$0xff] %v6524_v10 }
 0x24f   : > { %4755 = vrot.lane.b32.xlu0 %v6256_v4, %s5804_s17  ;;  %1552 = vperm.xlu2 %4282, %v369_v34  }
 0x250   : > { %1562 = vperm.xlu1 %4281, %v371_v40  }
 0x251   : > { %v6526_v53 = vpop.permute.xlu0 %4600  ;;  %v6542_v37 = vpop.permute.xlu2 %4580 }
 0x252   : > { %10830 = vst [vmem:[#allocation61_spill] sm:$0xff] %v6526_v53  ;;  %v6528_v38 = vpop.permute.xlu1 %4535 }
 0x253   : > { %10831 = vst [vmem:[#allocation62_spill] sm:$0xff] %v6528_v38 }
 0x254   : > { %10834 = vst [vmem:[#allocation65_spill] sm:$0xff] %v6542_v37 }
 0x257   : > { %4760 = vrot.lane.b32.xlu0 %v6256_v4, %s5805_s18  ;;  %1567 = vperm.xlu2 %4282, %v372_v56  }
 0x258   : > { %1577 = vperm.xlu1 %4281, %v374_v25  }
 0x259   : > { %v6538_v40 = vpop.permute.xlu0 %4605  ;;  %v6554_v4 = vpop.permute.xlu2 %4585 }
 0x25a   : > { %10832 = vst [vmem:[#allocation63_spill] sm:$0xff] %v6538_v40  ;;  %v6540_v34 = vpop.permute.xlu1 %4540 }
 0x25b   : > { %10833 = vst [vmem:[#allocation64_spill] sm:$0xff] %v6540_v34 }
 0x25c   : > { %10836 = vst [vmem:[#allocation67_spill] sm:$0xff] %v6554_v4 }
 0x25f   : > { %1572 = vperm.xlu0 %4283, %v373_v45   ;;  %1582 = vperm.xlu2 %4282, %v375_v19  }
 0x261   : > { %v6550_v33 = vpop.permute.xlu0 %4610  ;;  %v6560_v37 = vpop.permute.xlu2 %4660 }
 0x262   : > { %v6552_v56 = vpop.permute.xlu1 %4545  ;;  %v4663_v19 = vunpack.i.h.bf16 %v6560_v37 }
 0x263   : > { %10835 = vst [vmem:[#allocation66_spill] sm:$0xff] %v6552_v56 }
 0x269   : > { %v6556_v25 = vpop.permute.xlu0 %4615  ;;  %v6566_v57 = vpop.permute.xlu2 %4665 }
 0x26a   : > { %10837 = vst [vmem:[#allocation68_spill] sm:$0xff] %v6556_v25  ;;  %v6558_v11 = vpop.permute.xlu1 %4550 }
 0x26b   : > { %10838 = vst [vmem:[#allocation69_spill] sm:$0xff] %v6558_v11  ;;  %v10421_v11 = vunpack.i.l.bf16 %v6499_v26 }
 0x26d   : > { %v899_v38 = vsel %vm390_vm7, %v4558_v16, %v10421_v11  ;;  %v316_v16 = vld [vmem:[%s10359_s2 + $0x40] sm:$0xf] }
 0x26e   : > { %4133 = vmatmul.msk.f32.gmra.mxu0 %vm490_vm8, %v316_v16  ;;  %4142 = vmatmul.msk.f32.gmra.mxu1 %vm490_vm8, %v316_v16 }
 0x26f   : > { %4151 = vmatmul.msk.f32.gmra.mxu2 %vm490_vm8, %v316_v16  ;;  %vm10962_vm8 = vcmask 752640  }
 0x270   : > { %vm10969_vm14 = vmmov %vm10962_vm8 }
 0x271   : > { %v6562_v7 = vpop.permute.xlu0 %4620  ;;  %v6597_v60 = vpop.permute.xlu2 %4670  ;;  %vm10975_vm2 = vmmov %vm10962_vm8 }
 0x272   : > { %10839 = vst [vmem:[#allocation70_spill] sm:$0xff] %v6562_v7  ;;  %v6564_v32 = vpop.permute.xlu1 %4625  ;;  %v4673_v16 = vunpack.i.h.bf16 %v6597_v60  ;;  %vm10981_vm9 = vmmov %vm10975_vm2 }
 0x273   : > { %v10423_v56 = vunpack.i.h.bf16 %v6564_v32  ;;  %v4627_v4 = vunpack.i.l.bf16 %v6564_v32  ;;  %10840 = vst [vmem:[#allocation71_spill] sm:$0xff] %v6597_v60  ;;  %vm10988_vm13 = vmmov %vm10975_vm2 }
 0x275   : > { %v901_v9 = vsel %vm390_vm7, %v4627_v4, %v10423_v56  ;;  %v10428_v4 = vunpack.i.l.bf16 %v6318_v17  ;;  %v10429_v56 = vunpack.i.h.bf16 %v6303_v15 }
 0x279   : > { %v6568_v45 = vpop.permute.xlu0 %4695 }
 0x27a   : > { %v10418_v25 = vunpack.i.l.bf16 %v6568_v45  ;;  %v6574_v24 = vpop.permute.xlu1 %4630 }
 0x27c   : > { %v903_v7 = vsel %vm390_vm7, %v4663_v19, %v10418_v25  ;;  %v4407_v19 = vunpack.i.l.bf16 %v6394_v51  ;;  %v897_v25 = vsel %vm390_vm7, %v4522_v6, %v10422_v46  ;;  %v4287_v6 = vunpack.i.l.bf16 %v6303_v15 }
 0x27d   : > { %1610 = vmatpush.msra.mxu3 %v903_v7  ;;  %v4448_v7 = vunpack.i.h.bf16 %v6368_v63 }
 0x27f   : > { %1611 = vmatpush.msra.mxu3 %v901_v9  ;;  %v895_v11 = vsel %vm390_vm7, %v4448_v7, %v10424_v50 }
 0x281   : > { %v6590_v44 = vpop.permute.xlu0 %4700  ;;  %1612 = vmatpush.msra.mxu3 %v899_v38  ;;  %v10427_v38 = vunpack.i.h.bf16 %v6394_v51 }
 0x282   : > { %v6599_v9 = vpop.permute.xlu1 %4635 }
 0x283   : > { %1613 = vmatpush.msra.mxu3 %v897_v25  ;;  %v4328_v25 = vunpack.i.h.bf16 %v6289_v52  ;;  %v893_v46 = vsel %vm390_vm7, %v4407_v19, %v10427_v38  ;;  %v10431_v52 = vunpack.i.h.bf16 %v6599_v9  ;;  %v4637_v19 = vunpack.i.l.bf16 %v6599_v9 }
 0x285   : > { %1614 = vmatpush.msra.mxu3 %v895_v11  ;;  %v891_v7 = vsel %vm390_vm7, %v4328_v25, %v10428_v4  ;;  %v889_v11 = vsel %vm390_vm7, %v4287_v6, %v10429_v56  ;;  %v4568_v6 = vunpack.i.h.bf16 %v6493_v23  ;;  %v10432_v56 = vunpack.i.h.bf16 %v6514_v27 }
 0x287   : > { %1615 = vmatpush.msra.mxu3 %v893_v46  ;;  %v1077_v46 = vsel %vm414_vm5, %v4637_v19, %v10431_v52  ;;  %v4458_v19 = vunpack.i.h.bf16 %v6392_v2  ;;  %v10434_v52 = vunpack.i.h.bf16 %v6418_v0 }
 0x289   : > { %v6621_v50 = vpop.permute.xlu0 %4705  ;;  %1616 = vmatpush.msra.mxu3 %v891_v7  ;;  %v6634_v7 = vpop.permute.xlu2 %4675 }
 0x28a   : > { %10841 = vst [vmem:[#allocation72_spill] sm:$0xff] %v6621_v50  ;;  %v10430_v38 = vunpack.i.l.bf16 %v6621_v50  ;;  %v6636_v4 = vpop.permute.xlu1 %4640 }
 0x28b   : > { %1617 = vmatpush.msra.mxu3 %v889_v11  ;;  %10842 = vst [vmem:[#allocation73_spill] sm:$0xff] %v6634_v7  ;;  %v4532_v11 = vunpack.i.l.bf16 %v6514_v27 }
 0x28c   : > { %v1079_v25 = vsel %vm414_vm5, %v4673_v16, %v10430_v38  ;;  %10843 = vst [vmem:[#allocation74_spill] sm:$0xff] %v6636_v4  ;;  %v10433_v16 = vunpack.i.l.bf16 %v6438_v28 }
 0x28d   : > { %4152 = vmatpush.msk.msra.mxu3 %vm6047_vm11, %v6209_v22  ;;  %1651 = vmatpush.msrb.mxu0 %v1079_v25  ;;  %v10844_v22 = vunpack.i.l.bf16 %v6526_v53 }
 0x28f   : > { %4153 = vmatpush.msk.msra.mxu3 %vm6047_vm11, %v6184_v3  ;;  %1652 = vmatpush.msrb.mxu0 %v1077_v46  ;;  %v1075_v25 = vsel %vm414_vm5, %v4568_v6, %v10844_v22  ;;  %v4417_v3 = vunpack.i.l.bf16 %v6418_v0  ;;  %v1073_v46 = vsel %vm414_vm5, %v4532_v11, %v10432_v56  ;;  %v10435_v6 = vunpack.i.l.bf16 %v6342_v31 }
 0x290   : > { %v10436_v22 = vunpack.i.h.bf16 %v6322_v20  ;;  %v4338_v11 = vunpack.i.h.bf16 %v6301_v14 }
 0x291   : > { %v6654_v38 = vpop.permute.xlu0 %4710  ;;  %4154 = vmatpush.msk.msra.mxu3 %vm6047_vm11, %v6157_v47  ;;  %1653 = vmatpush.msrb.mxu0 %v1075_v25  ;;  %v1071_v47 = vsel %vm414_vm5, %v4458_v19, %v10433_v16  ;;  %v4297_v25 = vunpack.i.l.bf16 %v6322_v20 }
 0x292   : > { %10845 = vst [vmem:[#allocation75_spill] sm:$0xff] %v6654_v38  ;;  %v6683_v56 = vpop.permute.xlu1 %4645 }
 0x293   : > { %4155 = vmatpush.msk.msra.mxu3 %vm6047_vm11, %v6151_v43  ;;  %1654 = vmatpush.msrb.mxu0 %v1073_v46  ;;  %v1069_v43 = vsel %vm414_vm5, %v4417_v3, %v10434_v52  ;;  %v6681_v46 = vpop.permute.xlu2 %4680  ;;  %v4632_v3 = vunpack.i.l.bf16 %v6574_v24  ;;  %v4647_v16 = vunpack.i.l.bf16 %v6683_v56 }
 0x294   : > { %10846 = vst [vmem:[#allocation76_spill] sm:$0xff] %v6681_v46 }
 0x295   : > { %4156 = vmatpush.msk.msra.mxu3 %vm6047_vm11, %v6265_v5  ;;  %1655 = vmatpush.msrb.mxu0 %v1071_v47  ;;  %v1067_v5 = vsel %vm414_vm5, %v4338_v11, %v10435_v6  ;;  %v4668_v47 = vunpack.i.h.bf16 %v6566_v57  ;;  %v6706_v11 = vld [vmem:[%s10361_s4] sm:$0xff] }
 0x296   : > { %10847 = vst [vmem:[#allocation77_spill] sm:$0xff] %v6706_v11 }
 0x297   : > { %4157 = vmatpush.msk.msra.mxu3 %vm6047_vm11, %v6223_v42  ;;  %1656 = vmatpush.msrb.mxu0 %v1069_v43  ;;  %v1065_v42 = vsel %vm414_vm5, %v4297_v25, %v10436_v22  ;;  %v4683_v43 = vunpack.i.h.bf16 %v6681_v46  ;;  %v4563_v46 = vunpack.i.h.bf16 %v6478_v49  ;;  %v10852_v25 = vunpack.i.l.bf16 %v6550_v33 }
 0x299   : > { %v6695_v52 = vpop.permute.xlu0 %4715  ;;  %4158 = vmatpush.msk.msra.mxu3 %vm6047_vm11, %v6069_v41  ;;  %1657 = vmatpush.msrb.mxu0 %v1067_v5  ;;  %v10848_v5 = vunpack.i.l.bf16 %v6590_v44  ;;  %v4542_v41 = vunpack.i.l.bf16 %v6540_v34 }
 0x29a   : > { %v10441_v19 = vunpack.i.l.bf16 %v6695_v52 }
 0x29b   : > { %4159 = vmatpush.msk.msra.mxu3 %vm6047_vm11, %v6051_v30  ;;  %1658 = vmatpush.msrb.mxu0 %v1065_v42  ;;  %v991_v22 = vsel %vm402_vm6, %v4668_v47, %v10848_v5  ;;  %v4527_v30 = vunpack.i.l.bf16 %v6501_v8  ;;  %v4578_v42 = vunpack.i.h.bf16 %v6524_v10  ;;  %v10849_v47 = vunpack.i.h.bf16 %v6574_v24 }
 0x29c   : > { %1626 = vmatmul.f32.vlgmr.msra.gmra.mxu3 %v6706_v11  ;;  %v1255_v6 = vsel %vm438_vm3, %v4683_v43, %v10441_v19  ;;  %v10850_v43 = vunpack.i.h.bf16 %v6683_v56 }
 0x29d   : > { %1659 = vmatpush.msrb.mxu0 %v991_v22  ;;  %1692 = vmatpush.msrb.mxu1 %v1255_v6  ;;  %v989_v5 = vsel %vm402_vm6, %v4632_v3, %v10849_v47  ;;  %v10851_v6 = vunpack.i.l.bf16 %v6512_v1  ;;  %v1251_v10 = vsel %vm438_vm3, %v4578_v42, %v10852_v25  ;;  %v4453_v3 = vunpack.i.h.bf16 %v6380_v59 }
 0x29e   : > { %v1253_v19 = vsel %vm438_vm3, %v4647_v16, %v10850_v43  ;;  %v4412_v16 = vunpack.i.l.bf16 %v6406_v13  ;;  %v4427_v25 = vunpack.i.l.bf16 %v6442_v61  ;;  %v10854_v42 = vunpack.i.h.bf16 %v6501_v8 }
 0x29f   : > { %1660 = vmatpush.msrb.mxu0 %v989_v5  ;;  %1693 = vmatpush.msrb.mxu1 %v1253_v19  ;;  %v987_v22 = vsel %vm402_vm6, %v4563_v46, %v10851_v6  ;;  %v4468_v19 = vunpack.i.h.bf16 %v6416_v58  ;;  %v6753_v46 = vld [vmem:[%s10361_s4 + $0x28] sm:$0xff]  ;;  %v10855_v47 = vunpack.i.h.bf16 %v6540_v34  ;;  %v983_v43 = vsel %vm402_vm6, %v4453_v3, %v10447_v29 }
 0x2a0   : > { %10853 = vst [vmem:[#allocation78_spill] sm:$0xff] %v6753_v46  ;;  %v985_v6 = vsel %vm402_vm6, %v4527_v30, %v10854_v42  ;;  %v10856_v58 = vunpack.i.l.bf16 %v6462_v36  ;;  %v4333_v42 = vunpack.i.h.bf16 %v6295_v62  ;;  %v10857_v3 = vunpack.i.h.bf16 %v6406_v13 }
 0x2a1   : > { %v6748_v5 = vpop.permute.xlu0 %4720  ;;  %1661 = vmatpush.msrb.mxu0 %v987_v22  ;;  %1694 = vmatpush.msrb.mxu1 %v1251_v10  ;;  %v1249_v11 = vsel %vm438_vm3, %v4542_v41, %v10855_v47  ;;  %v4348_v47 = vunpack.i.h.bf16 %v6320_v18  ;;  %v4307_v22 = vunpack.i.l.bf16 %v6346_v39  ;;  %v10455_v41 = vunpack.i.h.bf16 %v6568_v45 }
 0x2a2   : > { %v1247_v30 = vsel %vm438_vm3, %v4468_v19, %v10856_v58  ;;  %v981_v29 = vsel %vm402_vm6, %v4412_v16, %v10857_v3  ;;  %v10858_v58 = vunpack.i.h.bf16 %v6442_v61  ;;  %v10456_v10 = vunpack.i.l.bf16 %v6654_v38 }
 0x2a3   : > { %1662 = vmatpush.msrb.mxu0 %v985_v6  ;;  %1695 = vmatpush.msrb.mxu1 %v1249_v11  ;;  %v4292_v11 = vunpack.i.l.bf16 %v6311_v55  ;;  %v10860_v6 = vunpack.i.l.bf16 %v6366_v54  ;;  %v10861_v16 = vunpack.i.h.bf16 %v6311_v55  ;;  %v4642_v3 = vunpack.i.l.bf16 %v6636_v4 }
 0x2a4   : > { %1629 = vmatmul.f32.gmra.mxu3 %v6753_v46  ;;  %v1245_v19 = vsel %vm438_vm3, %v4427_v25, %v10858_v58  ;;  %v6800_v25 = vld [vmem:[%s10361_s4 + $0x50] sm:$0xff] }
 0x2a5   : > { %1663 = vmatpush.msrb.mxu0 %v983_v43  ;;  %1696 = vmatpush.msrb.mxu1 %v1247_v30  ;;  %v10859_v43 = vunpack.i.l.bf16 %v6330_v21  ;;  %v1243_v46 = vsel %vm438_vm3, %v4348_v47, %v10860_v6  ;;  %10862 = vst [vmem:[#allocation79_spill] sm:$0xff] %v6800_v25  ;;  %v4678_v47 = vunpack.i.h.bf16 %v6634_v7  ;;  %v6808_v6 = vpop.permute.xlu2 %4685 }
 0x2a7   : > { %1664 = vmatpush.msrb.mxu0 %v981_v29  ;;  %1697 = vmatpush.msrb.mxu1 %v1245_v19  ;;  %v979_v30 = vsel %vm402_vm6, %v4333_v42, %v10859_v43  ;;  %v977_v29 = vsel %vm402_vm6, %v4292_v11, %v10861_v16  ;;  %v6805_v42 = vld [vmem:[%s10361_s4 + $0x8] sm:$0xff]  ;;  %v10864_v11 = vunpack.i.h.bf16 %v6346_v39  ;;  %v6818_v16 = vpop.permute.xlu1 %4650  ;;  %v10874_v39 = vunpack.i.l.bf16 %v6499_v26 }
 0x2a8   : > { %10863 = vst [vmem:[#allocation80_spill] sm:$0xff] %v6805_v42  ;;  %v10867_v43 = vld [vmem:[#allocation62_spill] sm:$0xff] }
 0x2a9   : > { %v6792_v18 = vpop.permute.xlu0 %4735  ;;  %1665 = vmatpush.msrb.mxu0 %v979_v30  ;;  %1698 = vmatpush.msrb.mxu1 %v1243_v46  ;;  %v1241_v58 = vsel %vm438_vm3, %v4307_v22, %v10864_v11  ;;  %v10865_v46 = vunpack.i.l.bf16 %v6568_v45  ;;  %v10866_v11 = vld [vmem:[#allocation59_spill] sm:$0xff]  ;;  %v4537_v30 = vunpack.i.l.bf16 %v10867_v43 }
 0x2ab   : > { %1666 = vmatpush.msrb.mxu0 %v977_v29  ;;  %1699 = vmatpush.msrb.mxu1 %v1241_v58  ;;  %v904_v22 = vsel %vm390_vm7, %v10865_v46, %v10455_v41  ;;  %v1167_v29 = vsel %vm426_vm4, %v4678_v47, %v10456_v10  ;;  %v4573_v58 = vunpack.i.h.bf16 %v10866_v11  ;;  %v10870_v46 = vunpack.i.h.bf16 %v6636_v4  ;;  %v10872_v10 = vld [vmem:[#allocation53_spill] sm:$0xff] }
 0x2ac   : > { %1632 = vmatmul.f32.gmra.mxu3 %v6800_v25  ;;  %1667 = vmatmul.f32.vlgmr.msrb.gmra.mxu0 %v6805_v42  ;;  %v10868_v42 = vunpack.i.l.bf16 %v6560_v37  ;;  %v10869_v25 = vunpack.i.h.bf16 %v6564_v32  ;;  %v10462_v19 = vunpack.i.l.bf16 %v10872_v10  ;;  %v10873_v11 = vunpack.i.h.bf16 %v6499_v26  ;;  %v10876_v4 = vld [vmem:[#allocation41_spill] sm:$0xff] }
 0x2ad   : > { %1815 = vmatpush.msra.mxu0 %v904_v22  ;;  %1700 = vmatpush.msrb.mxu1 %v1167_v29  ;;  %v1165_v41 = vsel %vm426_vm4, %v4642_v3, %v10870_v46  ;;  %v10871_v22 = vld [vmem:[#allocation49_spill] sm:$0xff]  ;;  %v4463_v3 = vunpack.i.h.bf16 %v10876_v4  ;;  %v10888_v4 = vld [vmem:[#allocation27_spill] sm:$0xff]  ;;  %v10894_v47 = vunpack.i.l.bf16 %v6318_v17 }
 0x2ae   : > { %v902_v7 = vsel %vm390_vm7, %v10869_v25, %v10868_v42  ;;  %v900_v32 = vsel %vm390_vm7, %v10874_v39, %v10873_v11  ;;  %v10875_v25 = vunpack.i.l.bf16 %v6538_v40  ;;  %v10880_v39 = vld [vmem:[#allocation45_spill] sm:$0xff]  ;;  %v6878_v40 = vpop.permute.xlu2 %4690  ;;  %v4302_v11 = vunpack.i.l.bf16 %v10888_v4 }
 0x2af   : > { %1816 = vmatpush.msra.mxu0 %v902_v7  ;;  %1701 = vmatpush.msrb.mxu1 %v1165_v41  ;;  %v6858_v7 = vld [vmem:[%s10361_s4 + $0x78] sm:$0xff]  ;;  %v6863_v41 = vld [vmem:[%s10361_s4 + $0x30] sm:$0xff] }
 0x2b0   : > { %v1163_v42 = vsel %vm426_vm4, %v4573_v58, %v10875_v25  ;;  %10878 = vst [vmem:[#allocation81_spill] sm:$0xff] %v6858_v7  ;;  %v4422_v58 = vunpack.i.l.bf16 %v10880_v39 }
 0x2b1   : > { %1817 = vmatpush.msra.mxu0 %v900_v32  ;;  %v6853_v46 = vpop.permute.xlu0 %1557  ;;  %1702 = vmatpush.msrb.mxu1 %v1163_v42  ;;  %10879 = vst [vmem:[#allocation82_spill] sm:$0xff] %v6863_v41  ;;  %v10881_v32 = vunpack.i.h.bf16 %v6488_v35  ;;  %v10882_v42 = vunpack.i.h.bf16 %v10867_v43  ;;  %v10884_v35 = vunpack.i.h.bf16 %v6414_v48  ;;  %v10890_v43 = vunpack.i.h.bf16 %v6394_v51 }
 0x2b2   : > { %10877 = vst [vmem:[#allocation53_spill] sm:$0xff] %v6853_v46  ;;  %v10883_v46 = vld [vmem:[#allocation31_spill] sm:$0xff] }
 0x2b3   : > { %v898_v25 = vsel %vm390_vm7, %v10881_v32, %v10462_v19  ;;  %v1161_v29 = vsel %vm426_vm4, %v4537_v30, %v10882_v42  ;;  %v10885_v32 = vunpack.i.l.bf16 %v6414_v48  ;;  %v10886_v42 = vunpack.i.l.bf16 %v10871_v22 }
 0x2b4   : > { %1818 = vmatpush.msra.mxu0 %v898_v25  ;;  %1703 = vmatpush.msrb.mxu1 %v1161_v29  ;;  %v10887_v25 = vld [vmem:[#allocation23_spill] sm:$0xff]  ;;  %v10895_v22 = vunpack.i.l.bf16 %v10883_v46 }
 0x2b5   : > { %1635 = vmatmul.f32.gmra.mxu3 %v6858_v7  ;;  %1670 = vmatmul.f32.gmra.mxu0 %v6863_v41  ;;  %v896_v30 = vsel %vm390_vm7, %v10885_v32, %v10884_v35  ;;  %v1159_v29 = vsel %vm426_vm4, %v4463_v3, %v10886_v42  ;;  %v4343_v19 = vunpack.i.h.bf16 %v10887_v25  ;;  %v6893_v7 = vpop.permute.xlu1 %4655  ;;  %v10889_v41 = vunpack.i.l.bf16 %v6368_v63 }
 0x2b6   : > { %1819 = vmatpush.msra.mxu0 %v896_v30  ;;  %1704 = vmatpush.msrb.mxu1 %v1159_v29  ;;  %v10891_v32 = vunpack.i.h.bf16 %v10880_v39  ;;  %v10892_v30 = vld [vmem:[#allocation21_spill] sm:$0xff]  ;;  %v10893_v29 = vunpack.i.h.bf16 %v6318_v17 }
 0x2b7   : > { %v894_v35 = vsel %vm390_vm7, %v10890_v43, %v10889_v41  ;;  %v10467_v42 = vunpack.i.l.bf16 %v10892_v30  ;;  %v1155_v51 = vsel %vm426_vm4, %v4343_v19, %v10895_v22  ;;  %v10468_v43 = vunpack.i.h.bf16 %v6621_v50 }
 0x2b8   : > { %v1157_v3 = vsel %vm426_vm4, %v4422_v58, %v10891_v32  ;;  %1820 = vmatpush.msra.mxu0 %v894_v35  ;;  %v892_v25 = vsel %vm390_vm7, %v10894_v47, %v10893_v29  ;;  %v6918_v58 = vld [vmem:[%s10361_s4 + $0xa0] sm:$0xff]  ;;  %v6923_v35 = vld [vmem:[%s10361_s4 + $0x58] sm:$0xff]  ;;  %v10898_v19 = vunpack.i.h.bf16 %v6303_v15  ;;  %v10899_v22 = vunpack.i.h.bf16 %v10888_v4  ;;  %v6936_v32 = vld [vmem:[%s10361_s4 + $0x10] sm:$0xff] }
 0x2b9   : > { %1705 = vmatpush.msrb.mxu1 %v1157_v3  ;;  %v6913_v41 = vpop.permute.xlu0 %4750  ;;  %10896 = vst [vmem:[#allocation83_spill] sm:$0xff] %v6918_v58  ;;  %v10471_v15 = vunpack.i.l.bf16 %v6597_v60  ;;  %v10901_v29 = vld [vmem:[#allocation18_spill] sm:$0xff]  ;;  %v10486_v60 = vunpack.i.l.bf16 %v6301_v14  ;;  %v10929_v4 = vld [vmem:[#allocation7_spill] sm:$0xff] }
 0x2ba   : > { %1821 = vmatpush.msra.mxu0 %v892_v25  ;;  %10897 = vst [vmem:[#allocation84_spill] sm:$0xff] %v6923_v35  ;;  %v890_v47 = vsel %vm390_vm7, %v10898_v19, %v10467_v42  ;;  %v1153_v25 = vsel %vm426_vm4, %v4302_v11, %v10899_v22  ;;  %v10903_v11 = vunpack.i.l.bf16 %v6621_v50  ;;  %v10904_v22 = vld [vmem:[#allocation14_spill] sm:$0xff] }
 0x2bb   : > { %1706 = vmatpush.msrb.mxu1 %v1155_v51  ;;  %10900 = vst [vmem:[#allocation85_spill] sm:$0xff] %v6936_v32  ;;  %v10937_v14 = vld [vmem:[#allocation54_spill] sm:$0xff] }
 0x2bc   : > { %1822 = vmatpush.msra.mxu0 %v890_v47  ;;  %v1080_v19 = vsel %vm414_vm5, %v10903_v11, %v10468_v43  ;;  %v6951_v47 = vpop.permute.xlu2 %4730  ;;  %v10479_v11 = vunpack.i.l.bf16 %v6493_v23  ;;  %v10906_v43 = vld [vmem:[#allocation15_spill] sm:$0xff]  ;;  %v10487_v23 = vunpack.i.l.bf16 %v6392_v2  ;;  %v10928_v2 = vunpack.i.l.bf16 %v6342_v31 }
 0x2bd   : > { %1707 = vmatpush.msrb.mxu1 %v1153_v25  ;;  %1638 = vmatmul.f32.gmra.mxu3 %v6918_v58  ;;  %v10905_v25 = vunpack.i.h.bf16 %v6599_v9  ;;  %v4437_v38 = vunpack.i.l.bf16 %v10937_v14  ;;  %v4733_v51 = vunpack.i.h.bf16 %v6951_v47 }
 0x2be   : > { %1673 = vmatmul.f32.gmra.mxu0 %v6923_v35  ;;  %1708 = vmatmul.f32.vlgmr.msrb.gmra.mxu1 %v6936_v32  ;;  %v4657_v35 = vunpack.i.l.bf16 %v6893_v7 }
 0x2bf   : > { %4168 = vmatpush.msk.msra.mxu0 %vm6053_vm12, %v10901_v29  ;;  %1856 = vmatpush.msra.mxu1 %v1080_v19  ;;  %v1078_v42 = vsel %vm414_vm5, %v10905_v25, %v10471_v15  ;;  %v6961_v29 = vpop.permute.xlu1 %4725  ;;  %v10907_v19 = vunpack.i.h.bf16 %v6526_v53  ;;  %v4693_v25 = vunpack.i.h.bf16 %v6878_v40 }
 0x2c1   : > { %4169 = vmatpush.msk.msra.mxu0 %vm6053_vm12, %v10904_v22  ;;  %1857 = vmatpush.msra.mxu1 %v1078_v42  ;;  %v10908_v22 = vunpack.i.l.bf16 %v6526_v53  ;;  %v6973_v9 = vpop.permute.xlu0 %4755  ;;  %v6978_v42 = vld [vmem:[%s10361_s4 + $0xc8] sm:$0xff] }
 0x2c2   : > { %10909 = vst [vmem:[#allocation18_spill] sm:$0xff] %v6978_v42  ;;  %v10914_v58 = vunpack.i.l.bf16 %v6973_v9 }
 0x2c3   : > { %4170 = vmatpush.msk.msra.mxu0 %vm6053_vm12, %v10906_v43  ;;  %v1076_v32 = vsel %vm414_vm5, %v10908_v22, %v10907_v19  ;;  %v6985_v43 = vld [vmem:[%s10361_s4 + $0x80] sm:$0xff]  ;;  %v6990_v19 = vld [vmem:[%s10361_s4 + $0x38] sm:$0xff]  ;;  %v10912_v22 = vld [vmem:[#allocation11_spill] sm:$0xff] }
 0x2c4   : > { %1858 = vmatpush.msra.mxu1 %v1076_v32  ;;  %10910 = vst [vmem:[#allocation14_spill] sm:$0xff] %v6985_v43  ;;  %v10913_v32 = vunpack.i.h.bf16 %v6514_v27  ;;  %v1431_v53 = vsel %vm468_vm1, %v4693_v25, %v10914_v58  ;;  %v10915_v27 = vunpack.i.h.bf16 %v6438_v28  ;;  %v10919_v58 = vunpack.i.h.bf16 %v6418_v0 }
 0x2c5   : > { %10911 = vst [vmem:[#allocation15_spill] sm:$0xff] %v6990_v19  ;;  %4171 = vmatpush.msk.msra.mxu0 %vm6053_vm12, %v10912_v22  ;;  %1641 = vmatmul.f32.gmra.mxu3 %v6978_v42  ;;  %v10918_v42 = vld [vmem:[#allocation10_spill] sm:$0xff]  ;;  %v10920_v22 = vunpack.i.h.bf16 %v6322_v20  ;;  %v10924_v0 = vunpack.i.h.bf16 %v6893_v7 }
 0x2c6   : > { %v1074_v3 = vsel %vm414_vm5, %v10913_v32, %v10479_v11  ;;  %1676 = vmatmul.f32.gmra.mxu0 %v6985_v43  ;;  %1711 = vmatmul.f32.gmra.mxu1 %v6990_v19  ;;  %v10917_v11 = vld [vmem:[#allocation70_spill] sm:$0xff]  ;;  %v1070_v25 = vsel %vm414_vm5, %v10919_v58, %v10487_v23  ;;  %v10922_v19 = vld [vmem:[#allocation69_spill] sm:$0xff]  ;;  %v10927_v43 = vunpack.i.h.bf16 %v6342_v31 }
 0x2c7   : > { %1859 = vmatpush.msra.mxu1 %v1074_v3  ;;  %v10916_v3 = vunpack.i.l.bf16 %v6438_v28  ;;  %4172 = vmatpush.msk.msra.mxu0 %vm6053_vm12, %v10918_v42  ;;  %v4552_v42 = vunpack.i.l.bf16 %v10922_v19  ;;  %v1429_v58 = vsel %vm468_vm1, %v4657_v35, %v10924_v0  ;;  %v10926_v23 = vld [vmem:[#allocation57_spill] sm:$0xff]  ;;  %v10933_v31 = vld [vmem:[#allocation38_spill] sm:$0xff] }
 0x2c8   : > { %1733 = vmatpush.msrb.mxu2 %v1431_v53  ;;  %v10923_v53 = vld [vmem:[#allocation17_spill] sm:$0xff]  ;;  %v1068_v28 = vsel %vm414_vm5, %v10928_v2, %v10927_v43  ;;  %v7063_v2 = vld [vmem:[%s10361_s4 + $0xf0] sm:$0xff]  ;;  %v7072_v35 = vld [vmem:[%s10361_s4 + $0xa8] sm:$0xff] }
 0x2c9   : > { %v1072_v32 = vsel %vm414_vm5, %v10916_v3, %v10915_v27  ;;  %v1066_v27 = vsel %vm414_vm5, %v10920_v22, %v10486_v60  ;;  %v10921_v3 = vld [vmem:[#allocation67_spill] sm:$0xff]  ;;  %4173 = vmatpush.msk.msra.mxu0 %vm6053_vm12, %v10923_v53  ;;  %v10925_v22 = vld [vmem:[#allocation29_spill] sm:$0xff]  ;;  %v7049_v50 = vpop.permute.xlu0 %4760  ;;  %v4741_v53 = vpop.permute.xlu1 %4740  ;;  %10931 = vst [vmem:[#allocation11_spill] sm:$0xff] %v7063_v2 }
 0x2ca   : > { %1860 = vmatpush.msra.mxu1 %v1072_v32  ;;  %v4588_v15 = vunpack.i.h.bf16 %v10921_v3  ;;  %v7033_v32 = vpop.permute.xlu2 %4745  ;;  %v4358_v60 = vunpack.i.h.bf16 %v10925_v22  ;;  %1734 = vmatpush.msrb.mxu2 %v1429_v58  ;;  %v4762_v0 = vunpack.i.l.bf16 %v7049_v50  ;;  %v10930_v58 = vunpack.i.l.bf16 %v10917_v11  ;;  %v10932_v43 = vld [vmem:[#allocation35_spill] sm:$0xff]  ;;  %10934 = vst [vmem:[#allocation70_spill] sm:$0xff] %v7072_v35 }
 0x2cb   : > { %4174 = vmatpush.msk.msra.mxu0 %vm6053_vm12, %v10929_v4  ;;  %v10938_v4 = vld [vmem:[#allocation4_spill] sm:$0xff]  ;;  %v4743_v54 = vunpack.i.h.bf16 %v4741_v53  ;;  %v4742_v34 = vunpack.i.l.bf16 %v4741_v53  ;;  %v10940_v46 = vunpack.i.h.bf16 %v7049_v50  ;;  %v10943_v53 = vunpack.i.l.bf16 %v10926_v23 }
 0x2cc   : > { %1861 = vmatpush.msra.mxu1 %v1070_v25  ;;  %v1427_v20 = vsel %vm468_vm1, %v4588_v15, %v10930_v58  ;;  %v4317_v25 = vunpack.i.l.bf16 %v10932_v43  ;;  %v7077_v15 = vld [vmem:[%s10361_s4 + $0x60] sm:$0xff]  ;;  %v10936_v58 = vld [vmem:[#allocation47_spill] sm:$0xff]  ;;  %v10948_v17 = vunpack.i.h.bf16 %v10932_v43 }
 0x2cd   : > { %1735 = vmatpush.msrb.mxu2 %v1427_v20  ;;  %10935 = vst [vmem:[#allocation10_spill] sm:$0xff] %v7077_v15  ;;  %v4478_v39 = vunpack.i.h.bf16 %v10936_v58  ;;  %4175 = vmatpush.msk.msra.mxu0 %vm6053_vm12, %v10938_v4  ;;  %v10939_v20 = vunpack.i.h.bf16 %v10922_v19  ;;  %v1520_v36 = vsel %vm483_vm0, %v4762_v0, %v10940_v46  ;;  %v4737_v4 = vunpack.i.l.bf16 %v6792_v18 }
 0x2ce   : > { %1862 = vmatpush.msra.mxu1 %v1068_v28  ;;  %v4748_v28 = vunpack.i.h.bf16 %v7033_v32  ;;  %1644 = vmatmul.f32.gmra.mxu3 %v7063_v2  ;;  %v10970_v2 = vld [vmem:[#allocation37_spill] sm:$0xff] }
 0x2cf   : > { %v1425_v61 = vsel %vm468_vm1, %v4552_v42, %v10939_v20  ;;  %1679 = vmatmul.f32.gmra.mxu0 %v7072_v35  ;;  %1714 = vmatmul.f32.gmra.mxu1 %v7077_v15  ;;  %v10944_v20 = vld [vmem:[#allocation32_spill] sm:$0xff]  ;;  %v10963_v15 = vld [vmem:[#allocation65_spill] sm:$0xff] }
 0x2d0   : > { %1863 = vmatpush.msra.mxu1 %v1066_v27  ;;  %1736 = vmatpush.msrb.mxu2 %v1425_v61  ;;  %v1519_v30 = vsel %vm483_vm0, %v4748_v28, %v4762_v0  ;;  %v10941_v27 = vunpack.i.h.bf16 %v6590_v44  ;;  %v10942_v61 = vunpack.i.l.bf16 %v6590_v44  ;;  %v1423_v28 = vsel %vm468_vm1, %v4478_v39, %v10943_v53 }
 0x2d1   : > { %1782 = vmatpush.msrb.mxu3 %v1519_v30  ;;  %1987 = vmatpush.msrb.mxu0 %v1520_v36  ;;  %v10947_v53 = vunpack.i.h.bf16 %v10937_v14  ;;  %v1417_v0 = vsel %vm468_vm1, %v4317_v25, %v10948_v17  ;;  %v1517_v36 = vsel %vm483_vm0, %v4742_v34, %v4743_v54  ;;  %v10950_v17 = vunpack.i.h.bf16 %v6512_v1 }
 0x2d2   : > { %v992_v42 = vsel %vm402_vm6, %v10942_v61, %v10941_v27  ;;  %1737 = vmatpush.msrb.mxu2 %v1423_v28  ;;  %v10945_v27 = vunpack.i.l.bf16 %v6566_v57  ;;  %v10946_v61 = vunpack.i.h.bf16 %v6574_v24  ;;  %v4727_v28 = vunpack.i.l.bf16 %v6961_v29 }
 0x2d3   : > { %1864 = vmatpush.msra.mxu1 %v992_v42  ;;  %v1421_v46 = vsel %vm468_vm1, %v4437_v38, %v10947_v53  ;;  %v4728_v42 = vunpack.i.h.bf16 %v6961_v29  ;;  %v10949_v24 = vunpack.i.l.bf16 %v7033_v32  ;;  %v10507_v38 = vunpack.i.l.bf16 %v6478_v49  ;;  %1783 = vmatpush.msrb.mxu3 %v1517_v36 }
 0x2d4   : > { %v990_v39 = vsel %vm402_vm6, %v10946_v61, %v10945_v27  ;;  %1738 = vmatpush.msrb.mxu2 %v1421_v46  ;;  %v10951_v25 = vunpack.i.l.bf16 %v6512_v1  ;;  %v10952_v46 = vunpack.i.l.bf16 %v10933_v31  ;;  %v10508_v61 = vunpack.i.l.bf16 %v6951_v47 }
 0x2d5   : > { %1865 = vmatpush.msra.mxu1 %v990_v39  ;;  %v1518_v30 = vsel %vm483_vm0, %v4743_v54, %v10949_v24  ;;  %v10517_v54 = vunpack.i.l.bf16 %v6913_v41  ;;  %v1515_v39 = vsel %vm483_vm0, %v4733_v51, %v4737_v4  ;;  %v10953_v53 = vunpack.i.h.bf16 %v6792_v18  ;;  %v7154_v51 = vld [vmem:[%s10361_s4 + $0x118] sm:$0xff] }
 0x2d6   : > { %1988 = vmatpush.msrb.mxu0 %v1518_v30  ;;  %v988_v29 = vsel %vm402_vm6, %v10951_v25, %v10950_v17  ;;  %v1419_v34 = vsel %vm468_vm1, %v4358_v60, %v10952_v46  ;;  %v4688_v24 = vunpack.i.h.bf16 %v6808_v6  ;;  %v4722_v17 = vunpack.i.l.bf16 %v6748_v5  ;;  %1784 = vmatpush.msrb.mxu3 %v1515_v39  ;;  %10955 = vst [vmem:[#allocation67_spill] sm:$0xff] %v7154_v51  ;;  %v7170_v39 = vld [vmem:[%s10361_s4 + $0x88] sm:$0xff] }
 0x2d7   : > { %1866 = vmatpush.msra.mxu1 %v988_v29  ;;  %1739 = vmatpush.msrb.mxu2 %v1419_v34  ;;  %v1516_v36 = vsel %vm483_vm0, %v4737_v4, %v10953_v53  ;;  %v10954_v60 = vunpack.i.h.bf16 %v6501_v8  ;;  %v7159_v4 = vld [vmem:[%s10361_s4 + $0xd0] sm:$0xff]  ;;  %v4652_v29 = vunpack.i.l.bf16 %v6818_v16  ;;  %v1513_v8 = vsel %vm483_vm0, %v4727_v28, %v4728_v42  ;;  %10957 = vst [vmem:[#allocation17_spill] sm:$0xff] %v7170_v39 }
 0x2d8   : > { %1989 = vmatpush.msrb.mxu0 %v1516_v36  ;;  %10956 = vst [vmem:[#allocation69_spill] sm:$0xff] %v7159_v4  ;;  %v1514_v34 = vsel %vm483_vm0, %v4728_v42, %v10508_v61  ;;  %v10958_v36 = vld [vmem:[#allocation50_spill] sm:$0xff]  ;;  %1785 = vmatpush.msrb.mxu3 %v1513_v8  ;;  %v10961_v42 = vld [vmem:[#allocation68_spill] sm:$0xff]  ;;  %v1343_v53 = vsel %vm10962_vm8, %v4688_v24, %v10517_v54  ;;  %v10964_v8 = vunpack.i.h.bf16 %v6426_v12  ;;  %v10967_v24 = vunpack.i.h.bf16 %v6748_v5  ;;  %vm10993_vm8 = vmmov %vm10975_vm2 }
 0x2d9   : > { %v986_v25 = vsel %vm402_vm6, %v10954_v60, %v10507_v38  ;;  %1740 = vmatpush.msrb.mxu2 %v1417_v0  ;;  %v4483_v60 = vunpack.i.h.bf16 %v10958_v36  ;;  %v10959_v38 = vld [vmem:[#allocation56_spill] sm:$0xff]  ;;  %1647 = vmatmul.f32.gmra.mxu3 %v7154_v51  ;;  %v10968_v27 = vunpack.i.h.bf16 %v6818_v16 }
 0x2da   : > { %1867 = vmatpush.msra.mxu1 %v986_v25  ;;  %v4443_v30 = vunpack.i.h.bf16 %v10959_v38  ;;  %v4442_v25 = vunpack.i.l.bf16 %v10959_v38  ;;  %1990 = vmatpush.msrb.mxu0 %v1514_v34  ;;  %v10960_v0 = vld [vmem:[#allocation40_spill] sm:$0xff]  ;;  %v4583_v38 = vunpack.i.h.bf16 %v10963_v15  ;;  %v10965_v34 = vunpack.i.l.bf16 %v6426_v12 }
 0x2db   : > { %v4402_v46 = vunpack.i.l.bf16 %v10960_v0  ;;  %1682 = vmatmul.f32.gmra.mxu0 %v7159_v4  ;;  %1717 = vmatmul.f32.gmra.mxu1 %v7170_v39  ;;  %v1511_v61 = vsel %vm483_vm0, %v4483_v60, %v4722_v17  ;;  %v10966_v4 = vld [vmem:[#allocation66_spill] sm:$0xff]  ;;  %v1512_v54 = vsel %vm483_vm0, %v4722_v17, %v10967_v24  ;;  %v1341_v39 = vsel %vm10969_vm14, %v4652_v29, %v10968_v27  ;;  %vm10998_vm14 = vmmov %vm10975_vm2 }
 0x2dc   : > { %v984_v28 = vsel %vm402_vm6, %v10965_v34, %v10964_v8  ;;  %1741 = vmatpush.msrb.mxu2 %v1343_v53  ;;  %v10525_v51 = vunpack.i.h.bf16 %v10966_v4  ;;  %v4547_v35 = vunpack.i.l.bf16 %v10966_v4  ;;  %1786 = vmatpush.msrb.mxu3 %v1511_v61  ;;  %v4323_v12 = vunpack.i.h.bf16 %v10970_v2 }
 0x2dd   : > { %1868 = vmatpush.msra.mxu1 %v984_v28  ;;  %v4322_v53 = vunpack.i.l.bf16 %v10970_v2  ;;  %1991 = vmatpush.msrb.mxu0 %v1512_v54  ;;  %v10971_v60 = vunpack.i.l.bf16 %v6380_v59  ;;  %v10972_v8 = vunpack.i.h.bf16 %v6406_v13  ;;  %v1509_v61 = vsel %vm483_vm0, %v4442_v25, %v4443_v30 }
 0x2de   : > { %1742 = vmatpush.msrb.mxu2 %v1341_v39  ;;  %1787 = vmatpush.msrb.mxu3 %v1509_v61  ;;  %v10973_v17 = vunpack.i.l.bf16 %v10958_v36  ;;  %v10974_v29 = vunpack.i.l.bf16 %v10961_v42  ;;  %v10523_v54 = vunpack.i.l.bf16 %v6295_v62  ;;  %v10524_v34 = vunpack.i.l.bf16 %v10944_v20 }
 0x2df   : > { %v982_v28 = vsel %vm402_vm6, %v10972_v8, %v10971_v60  ;;  %v10976_v13 = vunpack.i.h.bf16 %v6330_v21  ;;  %v10977_v39 = vunpack.i.l.bf16 %v6330_v21  ;;  %v10978_v24 = vunpack.i.h.bf16 %v10944_v20  ;;  %v10979_v60 = vld [vmem:[#allocation55_spill] sm:$0xff] }
 0x2e0   : > { %1869 = vmatpush.msra.mxu1 %v982_v28  ;;  %v1510_v27 = vsel %vm483_vm0, %v4443_v30, %v10973_v17  ;;  %v1339_v2 = vsel %vm10975_vm2, %v4583_v38, %v10974_v29  ;;  %v10528_v8 = vunpack.i.l.bf16 %v10979_v60  ;;  %v10537_v38 = vunpack.i.h.bf16 %v6973_v9 }
 0x2e1   : > { %1992 = vmatpush.msrb.mxu0 %v1510_v27  ;;  %v980_v25 = vsel %vm402_vm6, %v10977_v39, %v10976_v13  ;;  %1743 = vmatpush.msrb.mxu2 %v1339_v2  ;;  %v1507_v30 = vsel %vm483_vm0, %v10978_v24, %v4402_v46  ;;  %v10980_v28 = vunpack.i.h.bf16 %v10960_v0  ;;  %v1337_v17 = vsel %vm10981_vm9, %v4547_v35, %v10525_v51  ;;  %v7242_v13 = vld [vmem:[%s10361_s4 + $0xf8] sm:$0xff]  ;;  %vm11026_vm9 = vmmov %vm10975_vm2 }
 0x2e2   : > { %1870 = vmatpush.msra.mxu1 %v980_v25  ;;  %1788 = vmatpush.msrb.mxu3 %v1507_v30  ;;  %v10982_v27 = vunpack.i.h.bf16 %v6311_v55  ;;  %v1505_v2 = vsel %vm483_vm0, %v4322_v53, %v4323_v12  ;;  %v10983_v35 = vld [vmem:[#allocation44_spill] sm:$0xff]  ;;  %v10984_v25 = vld [vmem:[#allocation51_spill] sm:$0xff]  ;;  %v1506_v53 = vsel %vm483_vm0, %v4323_v12, %v10524_v34  ;;  %v10987_v12 = vunpack.i.l.bf16 %v6973_v9 }
 0x2e3   : > { %v1508_v61 = vsel %vm483_vm0, %v4402_v46, %v10980_v28  ;;  %1744 = vmatpush.msrb.mxu2 %v1337_v17  ;;  %v7247_v46 = vld [vmem:[%s10361_s4 + $0xb0] sm:$0xff]  ;;  %v4473_v39 = vunpack.i.h.bf16 %v10983_v35  ;;  %v10526_v24 = vunpack.i.h.bf16 %v10984_v25  ;;  %v4432_v55 = vunpack.i.l.bf16 %v10984_v25  ;;  %v10985_v30 = vld [vmem:[#allocation36_spill] sm:$0xff]  ;;  %v7261_v17 = vld [vmem:[%s10361_s4 + $0x20] sm:$0xff]  ;;  %1685 = vmatmul.f32.gmra.mxu0 %v7242_v13 }
 0x2e4   : > { %1993 = vmatpush.msrb.mxu0 %v1508_v61  ;;  %v978_v29 = vsel %vm402_vm6, %v10982_v27, %v10523_v54  ;;  %1789 = vmatpush.msrb.mxu3 %v1505_v2  ;;  %v10986_v61 = vunpack.i.h.bf16 %v6568_v45  ;;  %v1432_v45 = vsel %vm468_vm1, %v10987_v12, %v10537_v38  ;;  %v10990_v54 = vld [vmem:[#allocation33_spill] sm:$0xff]  ;;  %v10991_v28 = vunpack.i.l.bf16 %v6560_v37 }
 0x2e5   : > { %1871 = vmatpush.msra.mxu1 %v978_v29  ;;  %v10536_v29 = vunpack.i.l.bf16 %v6878_v40  ;;  %v1335_v2 = vsel %vm10988_vm13, %v4473_v39, %v10528_v8  ;;  %v10527_v34 = vunpack.i.h.bf16 %v10990_v54  ;;  %v4312_v51 = vunpack.i.l.bf16 %v10990_v54  ;;  %4160 = vmatmul.msk.f32.vlgmr.msrb.gmra.mxu3 %vm1585_vm10, %v7261_v17  ;;  %vm11032_vm13 = vmmov %vm10975_vm2 }
 0x2e6   : > { %1994 = vmatpush.msrb.mxu0 %v1506_v53  ;;  %1720 = vmatmul.f32.gmra.mxu1 %v7247_v46  ;;  %v10989_v53 = vld [vmem:[#allocation26_spill] sm:$0xff]  ;;  %v10992_v27 = vunpack.i.h.bf16 %v6893_v7  ;;  %v1333_v39 = vsel %vm10993_vm8, %v4432_v55, %v10526_v24  ;;  %v10994_v37 = vunpack.i.h.bf16 %v6499_v26  ;;  %v10996_v7 = vunpack.i.l.bf16 %v10917_v11  ;;  %v7306_v26 = vld [vmem:[%s10361_s4 + $0x120] sm:$0xff]  ;;  %vm11040_vm8 = vmmov %vm10975_vm2 }
 0x2e7   : > { %2020 = vmatpush.msrb.mxu1 %v10986_v61  ;;  %v4353_v61 = vunpack.i.h.bf16 %v10989_v53  ;;  %1938 = vmatpush.msra.mxu3 %v1432_v45  ;;  %v10529_v45 = vunpack.i.l.bf16 %v10921_v3  ;;  %v10535_v24 = vunpack.i.h.bf16 %v10926_v23  ;;  %v11006_v8 = vunpack.i.h.bf16 %v6683_v56 }
 0x2e8   : > { %1745 = vmatpush.msrb.mxu2 %v1335_v2  ;;  %v1430_v12 = vsel %vm468_vm1, %v10992_v27, %v10536_v29  ;;  %v10997_v2 = vunpack.i.l.bf16 %v10985_v30  ;;  %v11011_v56 = vunpack.i.l.bf16 %v6550_v33 }
 0x2e9   : > { %2021 = vmatpush.msrb.mxu1 %v10991_v28  ;;  %1939 = vmatpush.msra.mxu3 %v1430_v12  ;;  %v10995_v28 = vunpack.i.h.bf16 %v10917_v11  ;;  %v10530_v12 = vunpack.i.h.bf16 %v6695_v52 }
 0x2ea   : > { %1746 = vmatpush.msrb.mxu2 %v1333_v39  ;;  %v1331_v55 = vsel %vm10998_vm14, %v4353_v61, %v10997_v2  ;;  %v10999_v39 = vunpack.i.l.bf16 %v10872_v10  ;;  %v7326_v10 = vld [vmem:[%s10361_s4 + $0x18] sm:$0xff]  ;;  %v11001_v2 = vunpack.i.h.bf16 %v6414_v48  ;;  %v11003_v48 = vunpack.i.l.bf16 %v6695_v52  ;;  %vm11047_vm14 = vmmov %vm10975_vm2 }
 0x2eb   : > { %2022 = vmatpush.msrb.mxu1 %v10994_v37  ;;  %v1428_v27 = vsel %vm468_vm1, %v10996_v7, %v10995_v28  ;;  %v11000_v37 = vunpack.i.h.bf16 %v10922_v19  ;;  %v1329_v28 = vsel %vm10975_vm2, %v4312_v51, %v10527_v34  ;;  %v7321_v7 = vld [vmem:[%s10361_s4 + $0xd8] sm:$0xff]  ;;  %v10534_v19 = vunpack.i.h.bf16 %v10933_v31  ;;  %1688 = vmatmul.f32.gmra.mxu0 %v7306_v26  ;;  %v7336_v51 = vld [vmem:[%s10361_s4 + $0x48] sm:$0xff] }
 0x2ec   : > { %1940 = vmatpush.msra.mxu3 %v1428_v27  ;;  %1747 = vmatpush.msrb.mxu2 %v1331_v55  ;;  %v10532_v27 = vunpack.i.l.bf16 %v10936_v58  ;;  %v10533_v55 = vunpack.i.h.bf16 %v6550_v33  ;;  %v11005_v34 = vunpack.i.l.bf16 %v6368_v63  ;;  %v10539_v63 = vunpack.i.l.bf16 %v10925_v22 }
 0x2ed   : > { %2023 = vmatpush.msrb.mxu1 %v10999_v39  ;;  %v1426_v61 = vsel %vm468_vm1, %v11000_v37, %v10529_v45  ;;  %v11002_v39 = vld [vmem:[#allocation76_spill] sm:$0xff]  ;;  %4161 = vmatmul.msk.f32.gmra.mxu3 %vm1585_vm10, %v7336_v51 }
 0x2ee   : > { %1941 = vmatpush.msra.mxu3 %v1426_v61  ;;  %1748 = vmatpush.msrb.mxu2 %v1329_v28  ;;  %v10531_v37 = vunpack.i.l.bf16 %v11002_v39  ;;  %v1256_v61 = vsel %vm438_vm3, %v11003_v48, %v10530_v12  ;;  %v11004_v28 = vunpack.i.l.bf16 %v10926_v23  ;;  %v11007_v48 = vunpack.i.h.bf16 %v10937_v14 }
 0x2ef   : > { %2024 = vmatpush.msrb.mxu1 %v11001_v2  ;;  %1749 = vmatmul.f32.vlgmr.msrb.gmra.mxu2 %v7326_v10  ;;  %v1252_v14 = vsel %vm438_vm3, %v11011_v56, %v10533_v55  ;;  %v11016_v56 = vld [vmem:[#allocation64_spill] sm:$0xff] }
 0x2f0   : > { %1723 = vmatmul.f32.gmra.mxu1 %v7321_v7  ;;  %v1424_v2 = vsel %vm468_vm1, %v11004_v28, %v10535_v24  ;;  %1897 = vmatpush.msra.mxu2 %v1256_v61  ;;  %v1254_v45 = vsel %vm438_vm3, %v11006_v8, %v10531_v37  ;;  %v1422_v12 = vsel %vm468_vm1, %v11007_v48, %v10532_v27  ;;  %v11009_v28 = vld [vmem:[#allocation24_spill] sm:$0xff]  ;;  %v11012_v8 = vunpack.i.l.bf16 %v10933_v31  ;;  %v11020_v24 = vld [vmem:[#allocation42_spill] sm:$0xff] }
 0x2f1   : > { %1942 = vmatpush.msra.mxu3 %v1424_v2  ;;  %2025 = vmatpush.msrb.mxu1 %v11005_v34  ;;  %v11008_v34 = vld [vmem:[#allocation60_spill] sm:$0xff]  ;;  %v11010_v2 = vunpack.i.h.bf16 %v11009_v28  ;;  %v10543_v37 = vunpack.i.h.bf16 %v6913_v41  ;;  %v7385_v28 = vld [vmem:[%s10361_s4 + $0x40] sm:$0xff]  ;;  %v11017_v55 = vunpack.i.h.bf16 %v11016_v56  ;;  %v10541_v29 = vunpack.i.l.bf16 %v11020_v24  ;;  %v11021_v56 = vld [vmem:[#allocation19_spill] sm:$0xff] }
 0x2f2   : > { %1898 = vmatpush.msra.mxu2 %v1254_v45  ;;  %v10538_v61 = vunpack.i.l.bf16 %v11008_v34  ;;  %v1420_v45 = vsel %vm468_vm1, %v11012_v8, %v10534_v19  ;;  %v11018_v19 = vunpack.i.h.bf16 %v10932_v43  ;;  %v11028_v43 = vld [vmem:[#allocation16_spill] sm:$0xff] }
 0x2f3   : > { %1943 = vmatpush.msra.mxu3 %v1422_v12  ;;  %2026 = vmatpush.msrb.mxu1 %v11010_v2  ;;  %v11013_v12 = vld [vmem:[#allocation52_spill] sm:$0xff]  ;;  %v11014_v2 = vld [vmem:[#allocation21_spill] sm:$0xff] }
 0x2f4   : > { %v10540_v48 = vunpack.i.h.bf16 %v11013_v12  ;;  %1899 = vmatpush.msra.mxu2 %v1252_v14  ;;  %v11015_v27 = vunpack.i.l.bf16 %v11014_v2  ;;  %v1250_v8 = vsel %vm438_vm3, %v11017_v55, %v10538_v61  ;;  %v1418_v14 = vsel %vm468_vm1, %v11018_v19, %v10539_v63  ;;  %v11023_v55 = vld [vmem:[#allocation77_spill] sm:$0xff] }
 0x2f5   : > { %1944 = vmatpush.msra.mxu3 %v1420_v45  ;;  %v7402_v45 = vld [vmem:[%s10361_s4 + $0x100] sm:$0xff]  ;;  %v10542_v19 = vunpack.i.l.bf16 %v6808_v6  ;;  %1831 = vmatmul.f32.vlgmr.msra.gmra.mxu0 %v11023_v55  ;;  %v11027_v63 = vunpack.i.h.bf16 %v6973_v9  ;;  %v11029_v55 = vld [vmem:[#allocation48_spill] sm:$0xff] }
 0x2f6   : > { %2027 = vmatpush.msrb.mxu1 %v11015_v27  ;;  %1900 = vmatpush.msra.mxu2 %v1250_v8  ;;  %v11019_v27 = vld [vmem:[#allocation34_spill] sm:$0xff]  ;;  %v11024_v8 = vunpack.i.l.bf16 %v11013_v12  ;;  %v11030_v2 = vunpack.i.h.bf16 %v11029_v55  ;;  %v11033_v9 = vld [vmem:[#allocation25_spill] sm:$0xff] }
 0x2f7   : > { %1945 = vmatpush.msra.mxu3 %v1418_v14  ;;  %1752 = vmatmul.f32.gmra.mxu2 %v7385_v28  ;;  %v11037_v55 = vunpack.i.l.bf16 %v11019_v27 }
 0x2f8   : > { %4184 = vmatpush.msk.msrb.mxu1 %vm6073_vm15, %v11021_v56  ;;  %v1248_v14 = vsel %vm438_vm3, %v11024_v8, %v10540_v48  ;;  %v11025_v56 = vunpack.i.l.bf16 %v6913_v41  ;;  %2143 = vmatpush.msra.mxu0 %v11027_v63  ;;  %v1246_v8 = vsel %vm438_vm3, %v11030_v2, %v10541_v29  ;;  %v11031_v48 = vunpack.i.h.bf16 %v6818_v16  ;;  %v11041_v29 = vld [vmem:[#allocation75_spill] sm:$0xff] }
 0x2f9   : > { %1726 = vmatmul.f32.gmra.mxu1 %v7402_v45  ;;  %1901 = vmatpush.msra.mxu2 %v1248_v14  ;;  %v10544_v63 = vunpack.i.l.bf16 %v11033_v9  ;;  %v11036_v2 = vunpack.i.h.bf16 %v11019_v27 }
 0x2fa   : > { %v1344_v61 = vsel %vm11026_vm9, %v11025_v56, %v10543_v37  ;;  %4185 = vmatpush.msk.msrb.mxu1 %vm6073_vm15, %v11028_v43  ;;  %v1342_v14 = vsel %vm11032_vm13, %v11031_v48, %v10542_v19  ;;  %v11034_v43 = vunpack.i.l.bf16 %v6878_v40  ;;  %v11035_v56 = vld [vmem:[#allocation13_spill] sm:$0xff]  ;;  %v11038_v48 = vunpack.i.h.bf16 %v10961_v42  ;;  %vm11060_vm9 = vmmov %vm10975_vm2 }
 0x2fb   : > { %1946 = vmatpush.msra.mxu3 %v1344_v61  ;;  %1902 = vmatpush.msra.mxu2 %v1246_v8  ;;  %v10546_v61 = vunpack.i.l.bf16 %v10963_v15  ;;  %v1244_v16 = vsel %vm438_vm3, %v11037_v55, %v11036_v2  ;;  %v11039_v8 = vunpack.i.l.bf16 %v10961_v42  ;;  %v10545_v19 = vunpack.i.h.bf16 %v11041_v29  ;;  %v11044_v2 = vld [vmem:[#allocation30_spill] sm:$0xff]  ;;  %vm11068_vm13 = vmmov %vm10975_vm2 }
 0x2fc   : > { %2144 = vmatpush.msra.mxu0 %v11034_v43  ;;  %4186 = vmatpush.msk.msrb.mxu1 %vm6073_vm15, %v11035_v56  ;;  %v10547_v40 = vunpack.i.h.bf16 %v10979_v60  ;;  %v11042_v43 = vunpack.i.h.bf16 %v10917_v11  ;;  %v11043_v56 = vld [vmem:[#allocation12_spill] sm:$0xff]  ;;  %v11045_v55 = vunpack.i.h.bf16 %v11044_v2  ;;  %v7476_v11 = vld [vmem:[%s10361_s4 + $0x128] sm:$0xff]  ;;  %v10549_v2 = vunpack.i.l.bf16 %v10983_v35 }
 0x2fd   : > { %1947 = vmatpush.msra.mxu3 %v1342_v14  ;;  %v1340_v14 = vsel %vm11040_vm8, %v11039_v8, %v11038_v48  ;;  %1903 = vmatpush.msra.mxu2 %v1244_v16  ;;  %v11046_v16 = vunpack.i.h.bf16 %v10966_v4  ;;  %v7481_v8 = vld [vmem:[%s10361_s4 + $0x68] sm:$0xff]  ;;  %vm11075_vm8 = vmmov %vm10975_vm2 }
 0x2fe   : > { %2145 = vmatpush.msra.mxu0 %v11042_v43  ;;  %4187 = vmatpush.msk.msrb.mxu1 %vm6073_vm15, %v11043_v56  ;;  %v1242_v37 = vsel %vm438_vm3, %v11045_v55, %v10544_v63  ;;  %v11049_v43 = vld [vmem:[#allocation9_spill] sm:$0xff]  ;;  %v11050_v56 = vunpack.i.l.bf16 %v11041_v29  ;;  %v11051_v55 = vld [vmem:[#allocation63_spill] sm:$0xff]  ;;  %v11054_v63 = vunpack.i.l.bf16 %v10979_v60 }
 0x2ff   : > { %1948 = vmatpush.msra.mxu3 %v1340_v14  ;;  %v1338_v48 = vsel %vm11047_vm14, %v11046_v16, %v10546_v61  ;;  %1904 = vmatpush.msra.mxu2 %v1242_v37  ;;  %v11048_v14 = vunpack.i.l.bf16 %v10921_v3  ;;  %v7499_v3 = vld [vmem:[%s10361_s4 + $0x70] sm:$0xff]  ;;  %v11056_v61 = vld [vmem:[#allocation20_spill] sm:$0xff] }
 0x300   : > { %4188 = vmatpush.msk.msrb.mxu1 %vm6073_vm15, %v11049_v43  ;;  %1755 = vmatmul.f32.gmra.mxu2 %v7481_v8  ;;  %v1168_v37 = vsel %vm426_vm4, %v11050_v56, %v10545_v19  ;;  %v11053_v43 = vld [vmem:[#allocation78_spill] sm:$0xff]  ;;  %v1336_v56 = vsel %vm10975_vm2, %v11054_v63, %v10547_v40  ;;  %v11055_v19 = vunpack.i.h.bf16 %v10926_v23  ;;  %v11059_v63 = vunpack.i.h.bf16 %v10984_v25  ;;  %v11063_v16 = vld [vmem:[#allocation8_spill] sm:$0xff] }
 0x301   : > { %1949 = vmatpush.msra.mxu3 %v1338_v48  ;;  %2146 = vmatpush.msra.mxu0 %v11048_v14  ;;  %v11052_v48 = vld [vmem:[#allocation73_spill] sm:$0xff]  ;;  %v11062_v40 = vunpack.i.l.bf16 %v10936_v58  ;;  %v11070_v58 = vunpack.i.h.bf16 %v10933_v31  ;;  %v7563_v31 = vld [vmem:[%s10361_s4 + $0x90] sm:$0xff] }
 0x302   : > { %1729 = vmatmul.f32.gmra.mxu1 %v7476_v11  ;;  %v10548_v14 = vunpack.i.l.bf16 %v11052_v48  ;;  %1834 = vmatmul.f32.gmra.mxu0 %v11053_v43  ;;  %v1334_v23 = vsel %vm11060_vm9, %v11059_v63, %v10549_v2  ;;  %v11067_v63 = vunpack.i.l.bf16 %v10985_v30 }
 0x303   : > { %1905 = vmatpush.msra.mxu2 %v1168_v37  ;;  %1950 = vmatpush.msra.mxu3 %v1336_v56  ;;  %v11057_v37 = vld [vmem:[#allocation74_spill] sm:$0xff] }
 0x304   : > { %2147 = vmatpush.msra.mxu0 %v11055_v19  ;;  %4189 = vmatpush.msk.msrb.mxu1 %vm6073_vm15, %v11056_v61  ;;  %v11058_v43 = vunpack.i.h.bf16 %v11057_v37  ;;  %v4352_v19 = vunpack.i.l.bf16 %v10989_v53  ;;  %v11061_v61 = vld [vmem:[#allocation59_spill] sm:$0xff]  ;;  %v11064_v37 = vunpack.i.h.bf16 %v11051_v55  ;;  %v11125_v53 = vld [vmem:[#allocation84_spill] sm:$0xff] }
 0x305   : > { %4162 = vmatmul.msk.f32.gmra.mxu3 %vm1585_vm10, %v7499_v3  ;;  %v4572_v56 = vunpack.i.l.bf16 %v11061_v61  ;;  %v7720_v61 = vld [vmem:[%s10361_s4 + $0x110] sm:$0xff] }
 0x306   : > { %v1166_v4 = vsel %vm426_vm4, %v11058_v43, %v10548_v14  ;;  %1951 = vmatpush.msra.mxu3 %v1334_v23  ;;  %2148 = vmatpush.msra.mxu0 %v11062_v40  ;;  %v11065_v43 = vunpack.i.l.bf16 %v11051_v55  ;;  %v11069_v14 = vld [vmem:[#allocation49_spill] sm:$0xff]  ;;  %v11071_v40 = vld [vmem:[#allocation6_spill] sm:$0xff] }
 0x307   : > { %1906 = vmatpush.msra.mxu2 %v1166_v4  ;;  %4190 = vmatpush.msk.msrb.mxu1 %vm6073_vm15, %v11063_v16  ;;  %v11066_v4 = vunpack.i.h.bf16 %v10985_v30  ;;  %v4503_v2 = vunpack.i.h.bf16 %v11069_v14  ;;  %v11072_v16 = vld [vmem:[#allocation62_spill] sm:$0xff] }
 0x308   : > { %v1164_v25 = vsel %vm426_vm4, %v11065_v43, %v11064_v37  ;;  %2149 = vmatpush.msra.mxu0 %v11070_v58  ;;  %v11073_v37 = vunpack.i.h.bf16 %v11072_v16  ;;  %v11078_v58 = vld [vmem:[#allocation41_spill] sm:$0xff]  ;;  %1758 = vmatmul.f32.gmra.mxu2 %v7563_v31  ;;  %v11080_v16 = vunpack.i.l.bf16 %v11069_v14 }
 0x309   : > { %v1332_v23 = vsel %vm11068_vm13, %v11067_v63, %v11066_v4  ;;  %1907 = vmatpush.msra.mxu2 %v1164_v25  ;;  %4191 = vmatpush.msk.msrb.mxu1 %vm6073_vm15, %v11071_v40  ;;  %v11074_v4 = vunpack.i.h.bf16 %v10990_v54  ;;  %v11076_v63 = vunpack.i.l.bf16 %v10925_v22  ;;  %v4462_v40 = vunpack.i.l.bf16 %v11078_v58  ;;  %v11079_v54 = vld [vmem:[#allocation79_spill] sm:$0xff] }
 0x30a   : > { %1952 = vmatpush.msra.mxu3 %v1332_v23  ;;  %v1162_v43 = vsel %vm426_vm4, %v11073_v37, %v4572_v56  ;;  %v11077_v23 = vunpack.i.h.bf16 %v6695_v52  ;;  %1837 = vmatmul.f32.gmra.mxu0 %v11079_v54  ;;  %v1160_v37 = vsel %vm426_vm4, %v11080_v16, %v4503_v2  ;;  %v7582_v52 = vld [vmem:[%s10361_s4 + $0x98] sm:$0xff]  ;;  %v11083_v22 = vunpack.i.h.bf16 %v6913_v41  ;;  %v11089_v41 = vld [vmem:[#allocation23_spill] sm:$0xff] }
 0x30b   : > { %v1330_v25 = vsel %vm11075_vm8, %v11074_v4, %v4352_v19  ;;  %1908 = vmatpush.msra.mxu2 %v1162_v43  ;;  %2150 = vmatpush.msra.mxu0 %v11076_v63  ;;  %v11081_v43 = vld [vmem:[#allocation31_spill] sm:$0xff]  ;;  %v11084_v63 = vunpack.i.h.bf16 %v7049_v50  ;;  %v11090_v50 = vunpack.i.l.bf16 %v7033_v32 }
 0x30c   : > { %1953 = vmatpush.msra.mxu3 %v1330_v25  ;;  %v4383_v4 = vunpack.i.h.bf16 %v11081_v43  ;;  %v11082_v25 = vld [vmem:[#allocation80_spill] sm:$0xff]  ;;  %v11141_v58 = vld [vmem:[#allocation43_spill] sm:$0xff] }
 0x30d   : > { %1872 = vmatmul.f32.vlgmr.msra.gmra.mxu1 %v11082_v25  ;;  %1909 = vmatpush.msra.mxu2 %v1160_v37  ;;  %v11087_v25 = vunpack.i.l.bf16 %v11002_v39  ;;  %v11088_v37 = vunpack.i.l.bf16 %v6808_v6  ;;  %v11092_v39 = vunpack.i.l.bf16 %v11081_v43  ;;  %v11094_v6 = vunpack.i.h.bf16 %v6792_v18 }
 0x30e   : > { %2102 = vmatpush.msrb.mxu3 %v11077_v23  ;;  %2151 = vmatpush.msra.mxu0 %v11083_v22  ;;  %v11085_v23 = vld [vmem:[#allocation45_spill] sm:$0xff]  ;;  %v4342_v22 = vunpack.i.l.bf16 %v11089_v41  ;;  %v11099_v18 = vunpack.i.l.bf16 %v6951_v47  ;;  %v11105_v47 = vunpack.i.h.bf16 %v10979_v60  ;;  %v11145_v41 = vunpack.i.l.bf16 %v6380_v59 }
 0x30f   : > { %2192 = vmatpush.msra.mxu1 %v11084_v63  ;;  %v11086_v54 = vunpack.i.h.bf16 %v11085_v23  ;;  %4163 = vmatmul.msk.f32.gmra.mxu3 %vm1585_vm10, %v7582_v52  ;;  %v11091_v63 = vunpack.i.h.bf16 %v6550_v33  ;;  %v1156_v23 = vsel %vm426_vm4, %v11092_v39, %v4383_v4  ;;  %v11096_v33 = vld [vmem:[#allocation27_spill] sm:$0xff]  ;;  %v11103_v39 = vld [vmem:[#allocation81_spill] sm:$0xff] }
 0x310   : > { %2103 = vmatpush.msrb.mxu3 %v11087_v25  ;;  %2152 = vmatpush.msra.mxu0 %v11088_v37  ;;  %v11097_v32 = vunpack.i.h.bf16 %v11096_v33  ;;  %v7623_v37 = vld [vmem:[%s10361_s4 + $0xb8] sm:$0xff]  ;;  %v11110_v33 = vunpack.i.l.bf16 %v10983_v35  ;;  %v11112_v60 = vld [vmem:[#allocation61_spill] sm:$0xff]  ;;  %v11119_v35 = vunpack.i.l.bf16 %v11033_v9  ;;  %v11124_v9 = vld [vmem:[#allocation83_spill] sm:$0xff] }
 0x311   : > { %v1158_v16 = vsel %vm426_vm4, %v11086_v54, %v4462_v40  ;;  %2193 = vmatpush.msra.mxu1 %v11090_v50  ;;  %v11093_v54 = vunpack.i.h.bf16 %v10961_v42  ;;  %v11098_v42 = vunpack.i.l.bf16 %v10963_v15  ;;  %1761 = vmatmul.f32.gmra.mxu2 %v7623_v37  ;;  %v7639_v15 = vld [vmem:[%s10361_s4 + $0xc0] sm:$0xff] }
 0x312   : > { %1910 = vmatpush.msra.mxu2 %v1158_v16  ;;  %2104 = vmatpush.msrb.mxu3 %v11091_v63  ;;  %v11095_v16 = vunpack.i.l.bf16 %v11008_v34  ;;  %v1154_v25 = vsel %vm426_vm4, %v11097_v32, %v4342_v22  ;;  %v11100_v34 = vld [vmem:[#allocation72_spill] sm:$0xff]  ;;  %v11102_v63 = vunpack.i.h.bf16 %v11013_v12  ;;  %v11111_v32 = vunpack.i.l.bf16 %v10958_v36  ;;  %v7668_v36 = vld [vmem:[%s10361_s4 + $0xe0] sm:$0xff] }
 0x313   : > { %2153 = vmatpush.msra.mxu0 %v11093_v54  ;;  %2194 = vmatpush.msra.mxu1 %v11094_v6  ;;  %v11101_v50 = vunpack.i.h.bf16 %v11100_v34  ;;  %v11106_v54 = vunpack.i.h.bf16 %v6748_v5  ;;  %v11107_v6 = vld [vmem:[#allocation71_spill] sm:$0xff]  ;;  %v11114_v5 = vunpack.i.h.bf16 %v11019_v27  ;;  %v11121_v27 = vld [vmem:[#allocation46_spill] sm:$0xff] }
 0x314   : > { %1911 = vmatpush.msra.mxu2 %v1156_v23  ;;  %2105 = vmatpush.msrb.mxu3 %v11095_v16  ;;  %v11104_v23 = vld [vmem:[#allocation82_spill] sm:$0xff]  ;;  %v11108_v12 = vunpack.i.l.bf16 %v11107_v6  ;;  %v11109_v16 = vunpack.i.l.bf16 %v11020_v24  ;;  %v11116_v24 = vunpack.i.h.bf16 %v10960_v0  ;;  %v11122_v0 = vunpack.i.h.bf16 %v11121_v27 }
 0x315   : > { %2154 = vmatpush.msra.mxu0 %v11098_v42  ;;  %2195 = vmatpush.msra.mxu1 %v11099_v18  ;;  %v11115_v42 = vunpack.i.h.bf16 %v10985_v30  ;;  %v11117_v18 = vld [vmem:[#allocation58_spill] sm:$0xff]  ;;  %v11120_v30 = vunpack.i.l.bf16 %v10944_v20 }
 0x316   : > { %1912 = vmatpush.msra.mxu2 %v1154_v25  ;;  %2106 = vmatpush.msrb.mxu3 %v11102_v63  ;;  %v11113_v25 = vunpack.i.h.bf16 %v11112_v60  ;;  %v11118_v34 = vunpack.i.l.bf16 %v11117_v18  ;;  %v7684_v63 = vld [vmem:[%s10361_s4 + $0xe8] sm:$0xff]  ;;  %v11147_v60 = vunpack.i.l.bf16 %v6295_v62  ;;  %v11151_v18 = vld [vmem:[#allocation69_spill] sm:$0xff]  ;;  %v11152_v62 = vld [vmem:[#allocation15_spill] sm:$0xff] }
 0x317   : > { %1840 = vmatmul.f32.gmra.mxu0 %v11103_v39  ;;  %1875 = vmatmul.f32.gmra.mxu1 %v11104_v23  ;;  %v11128_v39 = vunpack.i.l.bf16 %v11052_v48  ;;  %v11133_v6 = vld [vmem:[#allocation22_spill] sm:$0xff] }
 0x318   : > { %2061 = vmatpush.msrb.mxu2 %v11101_v50  ;;  %2155 = vmatpush.msra.mxu0 %v11105_v47  ;;  %v11123_v50 = vunpack.i.h.bf16 %v11041_v29  ;;  %v11129_v29 = vld [vmem:[#allocation28_spill] sm:$0xff]  ;;  %v11131_v47 = vunpack.i.h.bf16 %v11051_v55  ;;  %v7707_v48 = vld [vmem:[%s10361_s4 + $0x108] sm:$0xff] }
 0x319   : > { %2196 = vmatpush.msra.mxu1 %v11106_v54  ;;  %2107 = vmatpush.msrb.mxu3 %v11109_v16  ;;  %v11130_v23 = vunpack.i.h.bf16 %v11129_v29  ;;  %v7698_v54 = vpop.f32.mrf.mxu0  ;;  %v11136_v55 = vld [vmem:[#allocation18_spill] sm:$0xff]  ;;  %v5784_v29 = vld [vmem:[%s10361_s4] sm:$0xff] }
 0x31a   : > { %2062 = vmatpush.msrb.mxu2 %v11108_v12  ;;  %4164 = vmatmul.msk.f32.gmra.mxu3 %vm1585_vm10, %v7639_v15  ;;  %11132 = vst [vmem:[#allocation29_spill] sm:$0xff] %v7698_v54  ;;  %v11134_v12 = vunpack.i.l.bf16 %v11133_v6 }
 0x31b   : > { %2156 = vmatpush.msra.mxu0 %v11110_v33  ;;  %2197 = vmatpush.msra.mxu1 %v11111_v32  ;;  %v11135_v33 = vunpack.i.h.bf16 %v6590_v44  ;;  %v11138_v32 = vunpack.i.l.bf16 %v6566_v57  ;;  %v11139_v44 = vunpack.i.h.bf16 %v6512_v1  ;;  %v7738_v57 = vld [vmem:[%s10361_s4 + $0x130] sm:$0xff] }
 0x31c   : > { %2063 = vmatpush.msrb.mxu2 %v11113_v25  ;;  %2108 = vmatpush.msrb.mxu3 %v11114_v5  ;;  %v11143_v1 = vld [vmem:[#allocation11_spill] sm:$0xff]  ;;  %v7764_v25 = vpop.f32.mrf.mxu1 }
 0x31d   : > { %2157 = vmatpush.msra.mxu0 %v11115_v42  ;;  %2198 = vmatpush.msra.mxu1 %v11116_v24  ;;  %11148 = vst [vmem:[#allocation57_spill] sm:$0xff] %v7764_v25  ;;  %v11149_v42 = vld [vmem:[#allocation67_spill] sm:$0xff]  ;;  %v11150_v24 = vld [vmem:[#allocation85_spill] sm:$0xff] }
 0x31e   : > { %2064 = vmatpush.msrb.mxu2 %v11118_v34  ;;  %2109 = vmatpush.msrb.mxu3 %v11119_v35 }
 0x31f   : > { %2158 = vmatpush.msra.mxu0 %v4352_v19  ;;  %2199 = vmatpush.msra.mxu1 %v11120_v30  ;;  %v11126_v19 = vld [vmem:[#allocation39_spill] sm:$0xff]  ;;  %v7709_v16 = vpop.f32.mrf.mxu3 }
 0x320   : > { %2065 = vmatpush.msrb.mxu2 %v11122_v0  ;;  %2110 = vmatpush.msrb.mxu3 %v11123_v50  ;;  %v11127_v20 = vunpack.i.l.bf16 %v11126_v19  ;;  %v11155_v0 = vld [vmem:[#allocation10_spill] sm:$0xff]  ;;  %v11156_v19 = vld [vmem:[#allocation17_spill] sm:$0xff] }
 0x321   : > { %1764 = vmatmul.f32.gmra.mxu2 %v7668_v36  ;;  %1843 = vmatmul.f32.gmra.mxu0 %v11124_v9 }
 0x322   : > { %1878 = vmatmul.f32.gmra.mxu1 %v11125_v53  ;;  %2066 = vmatpush.msrb.mxu2 %v11127_v20 }
 0x323   : > { %2111 = vmatpush.msrb.mxu3 %v11128_v39 }
 0x324   : > { %4165 = vmatmul.msk.f32.gmra.mxu3 %vm1585_vm10, %v7684_v63  ;;  %2067 = vmatpush.msrb.mxu2 %v11130_v23 }
 0x325   : > { %2112 = vmatpush.msrb.mxu3 %v11131_v47  ;;  %v5785_v47 = vld [vmem:[%s10361_s4 + $0x28] sm:$0xff] }
 0x326   : > { %2068 = vmatpush.msrb.mxu2 %v11134_v12 }
 0x327   : > { %2113 = vmatpush.msrb.mxu3 %v4572_v56  ;;  %v11137_v56 = vld [vmem:[#allocation14_spill] sm:$0xff]  ;;  %v7753_v43 = vpop.f32.mrf.mxu3 }
 0x328   : > { %2069 = vmatpush.msrb.mxu2 %v11135_v33  ;;  %v5786_v33 = vld [vmem:[%s10361_s4 + $0x50] sm:$0xff] }
 0x329   : > { %2114 = vmatpush.msrb.mxu3 %v4503_v2  ;;  %1767 = vmatmul.f32.gmra.mxu2 %v7707_v48  ;;  %v11140_v2 = vunpack.i.l.bf16 %v6478_v49  ;;  %v7742_v14 = vpop.f32.mrf.mxu0  ;;  %v7751_v49 = vld [vmem:[%s10361_s4 + $0x138] sm:$0xff] }
 0x32a   : > { %1846 = vmatmul.f32.gmra.mxu0 %v11136_v55  ;;  %1881 = vmatmul.f32.gmra.mxu1 %v11137_v56 }
 0x32b   : > { %2070 = vmatpush.msrb.mxu2 %v11138_v32  ;;  %2115 = vmatpush.msrb.mxu3 %v4462_v40  ;;  %v11142_v40 = vunpack.i.h.bf16 %v11141_v58  ;;  %v7836_v58 = vpop.f32.mrf.mxu2 }
 0x32c   : > { %4166 = vmatmul.msk.f32.gmra.mxu3 %vm1585_vm10, %v7720_v61  ;;  %11158 = vst [vmem:[#allocation47_spill] sm:$0xff] %v7836_v58  ;;  %v5788_v58 = vld [vmem:[%s10361_s4 + $0x8] sm:$0xff] }
 0x32d   : > { %2071 = vmatpush.msrb.mxu2 %v11139_v44  ;;  %2116 = vmatpush.msrb.mxu3 %v4383_v4  ;;  %v11144_v4 = vld [vmem:[#allocation70_spill] sm:$0xff] }
 0x32f   : > { %2072 = vmatpush.msrb.mxu2 %v11140_v2  ;;  %2117 = vmatpush.msrb.mxu3 %v4342_v22  ;;  %v11146_v22 = vunpack.i.h.bf16 %v6330_v21  ;;  %v7771_v59 = vpop.f32.mrf.mxu3 }
 0x331   : > { %2073 = vmatpush.msrb.mxu2 %v11142_v40  ;;  %v5787_v40 = vld [vmem:[%s10361_s4 + $0x78] sm:$0xff] }
 0x332   : > { %1770 = vmatmul.f32.gmra.mxu2 %v7738_v57  ;;  %1849 = vmatmul.f32.gmra.mxu0 %v11143_v1  ;;  %v7766_v5 = vpop.f32.mrf.mxu0 }
 0x333   : > { %1884 = vmatmul.f32.gmra.mxu1 %v11144_v4  ;;  %2074 = vmatpush.msrb.mxu2 %v11145_v41 }
 0x334   : > { %4167 = vmatmul.msk.f32.gmra.mxu3 %vm1585_vm10, %v7751_v49 }
 0x335   : > { %2075 = vmatpush.msrb.mxu2 %v11146_v22 }
 0x337   : > { %2076 = vmatpush.msrb.mxu2 %v11147_v60 }
 0x338   : > { %v7783_v35 = vpop.f32.mrf.mxu3 }
 0x339   : > { %11153 = vst [vmem:[#allocation7_spill] sm:$0xff] %v7783_v35 }
 0x33a   : > { %1852 = vmatmul.f32.gmra.mxu0 %v11149_v42  ;;  %1913 = vmatmul.f32.vlgmr.msra.gmra.mxu2 %v11150_v24 }
 0x33b   : > { %1887 = vmatmul.f32.gmra.mxu1 %v11151_v18  ;;  %v7774_v34 = vpop.f32.mrf.mxu0  ;;  %v7776_v21 = vpop.f32.mrf.mxu1 }
 0x33c   : > { %1954 = vmatmul.f32.vlgmr.msra.gmra.mxu3 %v7326_v10 }
 0x340   : > { %v7794_v50 = vpop.f32.mrf.mxu3 }
 0x342   : > { %1916 = vmatmul.f32.gmra.mxu2 %v11152_v62  ;;  %4176 = vmatmul.msk.f32.vlgmr.msrb.gmra.mxu0 %vm1585_vm10, %v7261_v17 }
 0x343   : > { %1890 = vmatmul.f32.gmra.mxu1 %v7242_v13  ;;  %v7785_v30 = vpop.f32.mrf.mxu0  ;;  %v7787_v27 = vpop.f32.mrf.mxu1 }
 0x344   : > { %1957 = vmatmul.f32.gmra.mxu3 %v7385_v28  ;;  %11154 = vst [vmem:[#allocation35_spill] sm:$0xff] %v7785_v30 }
 0x348   : > { %v7810_v23 = vpop.f32.mrf.mxu3 }
 0x34a   : > { %1919 = vmatmul.f32.gmra.mxu2 %v11155_v0  ;;  %4177 = vmatmul.msk.f32.gmra.mxu0 %vm1585_vm10, %v7336_v51 }
 0x34b   : > { %1893 = vmatmul.f32.gmra.mxu1 %v7306_v26 }
 0x34c   : > { %1960 = vmatmul.f32.gmra.mxu3 %v7481_v8  ;;  %v7799_v20 = vpop.f32.mrf.mxu0  ;;  %v7801_v39 = vpop.f32.mrf.mxu1 }
 0x351   : > { %v7826_v32 = vpop.f32.mrf.mxu3 }
 0x352   : > { %1922 = vmatmul.f32.gmra.mxu2 %v11156_v19  ;;  %4178 = vmatmul.msk.f32.gmra.mxu0 %vm1585_vm10, %v7499_v3 }
 0x353   : > { %2036 = vmatmul.f32.vlgmr.msrb.gmra.mxu1 %v5784_v29 }
 0x354   : > { %1963 = vmatmul.f32.gmra.mxu3 %v7563_v31 }
 0x358   : > { %v7815_v6 = vpop.f32.mrf.mxu0  ;;  %v7817_v12 = vpop.f32.mrf.mxu1 }
 0x359   : > { %11157 = vst [vmem:[#allocation38_spill] sm:$0xff] %v7817_v12  ;;  %v5789_v12 = vld [vmem:[%s10361_s4 + $0x30] sm:$0xff] }
 0x35a   : > { %1925 = vmatmul.f32.gmra.mxu2 %v7247_v46  ;;  %4179 = vmatmul.msk.f32.gmra.mxu0 %vm1585_vm10, %v7582_v52 }
 0x35b   : > { %2039 = vmatmul.f32.gmra.mxu1 %v5785_v47 }
 0x35c   : > { %1966 = vmatmul.f32.gmra.mxu3 %v7623_v37  ;;  %v7844_v22 = vpop.f32.mrf.mxu3 }
 0x360   : > { %v7829_v44 = vpop.f32.mrf.mxu0 }
 0x362   : > { %1928 = vmatmul.f32.gmra.mxu2 %v7321_v7  ;;  %4180 = vmatmul.msk.f32.gmra.mxu0 %vm1585_vm10, %v7639_v15 }
 0x363   : > { %2042 = vmatmul.f32.gmra.mxu1 %v5786_v33  ;;  %v7831_v2 = vpop.f32.mrf.mxu1 }
 0x364   : > { %1969 = vmatmul.f32.gmra.mxu3 %v7668_v36 }
 0x368   : > { %v7842_v41 = vpop.f32.mrf.mxu0  ;;  %v7853_v47 = vpop.f32.mrf.mxu3 }
 0x36a   : > { %1931 = vmatmul.f32.gmra.mxu2 %v7402_v45  ;;  %4181 = vmatmul.msk.f32.gmra.mxu0 %vm1585_vm10, %v7684_v63 }
 0x36b   : > { %2045 = vmatmul.f32.gmra.mxu1 %v5787_v40 }
 0x36c   : > { %1972 = vmatmul.f32.gmra.mxu3 %v7707_v48 }
 0x36d   : > { %v1724_v60 = vpop.f32.mrf.mxu1 }
 0x370   : > { %v7868_v54 = vpop.f32.mrf.mxu3 }
 0x371   : > { %11159 = vst [vmem:[#allocation54_spill] sm:$0xff] %v7868_v54 }
 0x372   : > { %1934 = vmatmul.f32.gmra.mxu2 %v7476_v11  ;;  %4182 = vmatmul.msk.f32.gmra.mxu0 %vm1585_vm10, %v7720_v61  ;;  %v7850_v29 = vpop.f32.mrf.mxu2  ;;  %v7857_v40 = vpop.f32.mrf.mxu0 }
 0x373   : > { %2048 = vmatmul.f32.gmra.mxu1 %v11124_v9 }
 0x374   : > { %1975 = vmatmul.f32.gmra.mxu3 %v7738_v57 }
 0x376   : > { %v7855_v33 = vpop.f32.mrf.mxu1 }
 0x37a   : > { %2077 = vmatmul.f32.vlgmr.msrb.gmra.mxu2 %v5788_v58  ;;  %4183 = vmatmul.msk.f32.gmra.mxu0 %vm1585_vm10, %v7751_v49  ;;  %v7865_v9 = vpop.f32.mrf.mxu2 }
 0x37b   : > { %2051 = vmatmul.f32.gmra.mxu1 %v11136_v55 }
 0x37c   : > { %2118 = vmatmul.f32.vlgmr.msrb.gmra.mxu3 %v11150_v24 }
 0x37f   : > { %v7870_v25 = vpop.f32.mrf.mxu1  ;;  %v7872_v38 = vpop.f32.mrf.mxu0 }
 0x382   : > { %2080 = vmatmul.f32.gmra.mxu2 %v5789_v12  ;;  %2159 = vmatmul.f32.vlgmr.msra.gmra.mxu0 %v7326_v10 }
 0x383   : > { %2054 = vmatmul.f32.gmra.mxu1 %v11143_v1  ;;  %v7880_v55 = vpop.f32.mrf.mxu2  ;;  %v7894_v1 = vpop.permute.xlu1 %1547 }
 0x384   : > { %2121 = vmatmul.f32.gmra.mxu3 %v11152_v62 }
 0x387   : > { %v7887_v58 = vpop.f32.mrf.mxu0 }
 0x388   : > { %v7884_v24 = vpop.f32.mrf.mxu3 }
 0x38a   : > { %2083 = vmatmul.f32.gmra.mxu2 %v11125_v53  ;;  %2162 = vmatmul.f32.gmra.mxu0 %v7385_v28  ;;  %v7889_v30 = vpop.f32.mrf.mxu1 }
 0x38b   : > { %2057 = vmatmul.f32.gmra.mxu1 %v11149_v42  ;;  %v7892_v10 = vpop.f32.mrf.mxu2 }
 0x38c   : > { %2124 = vmatmul.f32.gmra.mxu3 %v11155_v0  ;;  %11160 = vst [vmem:[#allocation4_spill] sm:$0xff] %v7892_v10  ;;  %v7909_v0 = vpop.permute.xlu2 %1552 }
 0x392   : > { %2086 = vmatmul.f32.gmra.mxu2 %v11137_v56  ;;  %2165 = vmatmul.f32.gmra.mxu0 %v7481_v8  ;;  %v7900_v28 = vpop.f32.mrf.mxu3  ;;  %v7913_v8 = vpop.permute.xlu1 %1562 }
 0x393   : > { %4192 = vmatmul.msk.f32.vlgmr.msra.gmra.mxu1 %vm1585_vm10, %v7261_v17  ;;  %11161 = vst [vmem:[#allocation32_spill] sm:$0xff] %v7900_v28  ;;  %v7916_v17 = vpop.permute.xlu0 %1572 }
 0x394   : > { %2127 = vmatmul.f32.gmra.mxu3 %v11156_v19  ;;  %v1841_v53 = vpop.f32.mrf.mxu0  ;;  %v7903_v42 = vpop.f32.mrf.mxu1 }
 0x395   : > { %v7907_v62 = vpop.f32.mrf.mxu2  ;;  %v7931_v28 = vpop.permute.xlu2 %1567  ;;  %v1842_v35 = vadd.f32 %v1841_v53, %v7913_v8 }
 0x39a   : > { %2089 = vmatmul.f32.gmra.mxu2 %v11144_v4  ;;  %2168 = vmatmul.f32.gmra.mxu0 %v7563_v31  ;;  %v1643_v4 = vadd.f32 %v7810_v23, %v7916_v17  ;;  %v7934_v10 = vpop.permute.xlu1 %1577 }
 0x39b   : > { %4193 = vmatmul.msk.f32.gmra.mxu1 %vm1585_vm10, %v7336_v51 }
 0x39c   : > { %2130 = vmatmul.f32.gmra.mxu3 %v7247_v46  ;;  %v1684_v12 = vadd.f32 %v7815_v6, %v1643_v4 }
 0x39d   : > { %v7918_v56 = vpop.f32.mrf.mxu3 }
 0x39e   : > { %v7922_v19 = vpop.f32.mrf.mxu0  ;;  %v1725_v51 = vadd.f32 %v1724_v60, %v1684_v12 }
 0x39f   : > { %v7924_v31 = vpop.f32.mrf.mxu1 }
 0x3a2   : > { %2092 = vmatmul.f32.gmra.mxu2 %v11151_v18  ;;  %2171 = vmatmul.f32.gmra.mxu0 %v7623_v37  ;;  %v1646_v18 = vadd.f32 %v7826_v32, %v7934_v10 }
 0x3a3   : > { %4194 = vmatmul.msk.f32.gmra.mxu1 %vm1585_vm10, %v7499_v3 }
 0x3a4   : > { %v1765_v46 = vpop.f32.mrf.mxu2  ;;  %2133 = vmatmul.f32.gmra.mxu3 %v7321_v7  ;;  %v1687_v3 = vadd.f32 %v7829_v44, %v1646_v18 }
 0x3a5   : > { %v1766_v23 = vadd.f32 %v1765_v46, %v1725_v51 }
 0x3a6   : > { %v1728_v7 = vadd.f32 %v7855_v33, %v1687_v3  ;;  %v1628_v33 = vadd.f32 %v7709_v16, %v7894_v1  ;;  %v1833_v16 = vadd.f32 %v7857_v40, %v7894_v1  ;;  %v1836_v40 = vadd.f32 %v7872_v38, %v7909_v0 }
 0x3a7   : > { %v1806_v54 = vpop.f32.mrf.mxu3  ;;  %v1847_v6 = vpop.f32.mrf.mxu0 }
 0x3a8   : > { %v7939_v37 = vadd.f32 %v1806_v54, %v1766_v23  ;;  %v1882_v60 = vpop.f32.mrf.mxu1  ;;  %v7950_v54 = vpop.permute.xlu2 %1582  ;;  %v1669_v46 = vadd.f32 %v7742_v14, %v1628_v33  ;;  %v1874_v14 = vadd.f32 %v7889_v30, %v1833_v16  ;;  %v11162_v30 = vld [vmem:[#allocation53_spill] sm:$0xff] }
 0x3a9   : > { %v7941_v4 = vadd.f32 %v1882_v60, %v1842_v35  ;;  %v1649_v35 = vadd.f32 %v7844_v22, %v7950_v54 }
 0x3aa   : > { %2095 = vmatmul.f32.gmra.mxu2 %v7242_v13  ;;  %2174 = vmatmul.f32.gmra.mxu0 %v7668_v36 }
 0x3ab   : > { %4195 = vmatmul.msk.f32.gmra.mxu1 %vm1585_vm10, %v7582_v52  ;;  %v1690_v52 = vadd.f32 %v7842_v41, %v1649_v35  ;;  %v1848_v41 = vadd.f32 %v1847_v6, %v7916_v17 }
 0x3ac   : > { %2136 = vmatmul.f32.gmra.mxu3 %v7402_v45  ;;  %v1768_v53 = vpop.f32.mrf.mxu2 }
 0x3ad   : > { %v1769_v32 = vadd.f32 %v1768_v53, %v1728_v7  ;;  %v1731_v45 = vadd.f32 %v7870_v25, %v1690_v52 }
 0x3af   : > { %v7952_v12 = vpop.f32.mrf.mxu0  ;;  %v1809_v44 = vpop.f32.mrf.mxu3 }
 0x3b0   : > { %v7956_v13 = vpop.f32.mrf.mxu1  ;;  %v7958_v36 = vadd.f32 %v1809_v44, %v1769_v32 }
 0x3b2   : > { %2098 = vmatmul.f32.gmra.mxu2 %v7306_v26  ;;  %2177 = vmatmul.f32.gmra.mxu0 %v7707_v48  ;;  %v1710_v48 = vadd.f32 %v7776_v21, %v1669_v46 }
 0x3b3   : > { %4196 = vmatmul.msk.f32.gmra.mxu1 %vm1585_vm10, %v7639_v15 }
 0x3b4   : > { %2139 = vmatmul.f32.gmra.mxu3 %v7476_v11  ;;  %v1751_v11 = vadd.f32 %v7850_v29, %v1710_v48  ;;  %v1634_v29 = vadd.f32 %v7771_v59, %v11162_v30  ;;  %v1839_v59 = vadd.f32 %v7887_v58, %v11162_v30 }
 0x3b5   : > { %v1771_v22 = vpop.f32.mrf.mxu2 }
 0x3b6   : > { %v1772_v51 = vadd.f32 %v1771_v22, %v1731_v45  ;;  %v1792_v21 = vadd.f32 %v7853_v47, %v1751_v11  ;;  %v1675_v45 = vadd.f32 %v7774_v34, %v1634_v29  ;;  %v1880_v48 = vadd.f32 %v7924_v31, %v1839_v59 }
 0x3b7   : > { %v1853_v23 = vpop.f32.mrf.mxu0  ;;  %v1812_v26 = vpop.f32.mrf.mxu3 }
 0x3b8   : > { %v1888_v18 = vpop.f32.mrf.mxu1  ;;  %v7972_v60 = vadd.f32 %v1812_v26, %v1772_v51  ;;  %vm2225_vm14 = vcmp.ge.f32.partialorder %v1792_v21, 0.0  ;;  %v1854_v33 = vadd.f32 %v1853_v23, %v7950_v54  ;;  %v1716_v26 = vadd.f32 %v7801_v39, %v1675_v45 }
 0x3b9   : > { %v7974_v15 = vadd.f32 %v1888_v18, %v1848_v41 }
 0x3ba   : > { %2180 = vmatmul.f32.gmra.mxu0 %v7738_v57  ;;  %v2249_v57 = vmul.f32 0.2, %v1792_v21  ;;  %v1757_v34 = vadd.f32 %v7880_v55, %v1716_v26  ;;  %v1640_v55 = vadd.f32 %v7794_v50, %v7931_v28  ;;  %v1845_v50 = vadd.f32 %v7922_v19, %v7931_v28 }
 0x3bb   : > { %4197 = vmatmul.msk.f32.gmra.mxu1 %vm1585_vm10, %v7684_v63  ;;  %v1877_v63 = vadd.f32 %v7903_v42, %v1836_v40 }
 0x3bc   : > { %v2273_v22 = vsel %vm2225_vm14, %v1792_v21, %v2249_v57  ;;  %v1798_v11 = vadd.f32 %v7884_v24, %v1757_v34 }
 0x3bd   : > { %v1914_v25 = vpop.f32.mrf.mxu2 }
 0x3be   : > { %v1915_v6 = vadd.f32 %v1914_v25, %v1874_v14  ;;  %v2255_v21 = vmul.f32 0.2, %v1798_v11  ;;  %vm2231_vm9 = vcmp.ge.f32.partialorder %v1798_v11, 0.0 }
 0x3bf   : > { %v1996_v3 = vpop.f32.mrf.mxu0  ;;  %v1955_v53 = vpop.f32.mrf.mxu3 }
 0x3c0   : > { %v7984_v7 = vpop.f32.mrf.mxu1  ;;  %v1956_v32 = vadd.f32 %v1955_v53, %v1915_v6  ;;  %v2279_v24 = vsel %vm2231_vm9, %v1798_v11, %v2255_v21 }
 0x3c2   : > { %v1997_v35 = vadd.f32 %v1996_v3, %v1956_v32  ;;  %v1681_v32 = vadd.f32 %v7799_v20, %v1640_v55  ;;  %v1886_v20 = vadd.f32 %v7956_v13, %v1845_v50 }
 0x3c3   : > { %4198 = vmatmul.msk.f32.gmra.mxu1 %vm1585_vm10, %v7720_v61 }
 0x3c4   : > { %vm2226_vm2 = vcmp.ge.f32.partialorder %v1997_v35, 0.0  ;;  %v2250_v47 = vmul.f32 0.2, %v1997_v35 }
 0x3c5   : > { %v1917_v44 = vpop.f32.mrf.mxu2 }
 0x3c6   : > { %v1918_v52 = vadd.f32 %v1917_v44, %v1877_v63  ;;  %v2274_v51 = vsel %vm2226_vm2, %v1997_v35, %v2250_v47  ;;  %v1722_v47 = vadd.f32 %v7831_v2, %v1681_v32  ;;  %vm2243_vm2 = vcmp.ge.f32.partialorder %v7958_v36, 0.0 }
 0x3c7   : > { %v1999_v38 = vpop.f32.mrf.mxu0  ;;  %v1958_v41 = vpop.f32.mrf.mxu3  ;;  %v4764_v61 = vpack.i.bf16 %v2274_v51, %v2273_v22 }
 0x3c8   : > { %v1894_v46 = vpop.f32.mrf.mxu1  ;;  %v1959_v18 = vadd.f32 %v1958_v41, %v1918_v52  ;;  %v1763_v52 = vadd.f32 %v7907_v62, %v1722_v47 }
 0x3c9   : > { %v7996_v42 = vadd.f32 %v1894_v46, %v1854_v33  ;;  %4765 = vrot.lane.b32.xlu0 %v4764_v61, %s5807_s19 }
 0x3ca   : > { %v8002_v23 = vadd.f32 %v1999_v38, %v1959_v18  ;;  %v1804_v38 = vadd.f32 %v7918_v56, %v1763_v52 }
 0x3cb   : > { %4199 = vmatmul.msk.f32.gmra.mxu1 %vm1585_vm10, %v7751_v49 }
 0x3cc   : > { %v2261_v41 = vmul.f32 0.2, %v1804_v38  ;;  %vm2237_vm8 = vcmp.ge.f32.partialorder %v1804_v38, 0.0 }
 0x3cd   : > { %v1920_v16 = vpop.f32.mrf.mxu2 }
 0x3ce   : > { %v1921_v39 = vadd.f32 %v1920_v16, %v1880_v48  ;;  %v2285_v59 = vsel %vm2237_vm8, %v1804_v38, %v2261_v41 }
 0x3cf   : > { %v2002_v14 = vpop.f32.mrf.mxu0  ;;  %v1961_v25 = vpop.f32.mrf.mxu3 }
 0x3d0   : > { %v8008_v6 = vpop.f32.mrf.mxu1  ;;  %v1962_v58 = vadd.f32 %v1961_v25, %v1921_v39  ;;  %v1851_v39 = vadd.f32 %v7952_v12, %v7934_v10 }
 0x3d2   : > { %v2003_v3 = vadd.f32 %v2002_v14, %v1962_v58  ;;  %v1892_v14 = vadd.f32 %v7984_v7, %v1851_v39 }
 0x3d4   : > { %vm2232_vm13 = vcmp.ge.f32.partialorder %v2003_v3, 0.0  ;;  %v2256_v53 = vmul.f32 0.2, %v2003_v3 }
 0x3d5   : > { %v1923_v49 = vpop.f32.mrf.mxu2 }
 0x3d6   : > { %v1924_v31 = vadd.f32 %v1923_v49, %v7941_v4  ;;  %v2280_v57 = vsel %vm2232_vm13, %v2003_v3, %v2256_v53  ;;  %v2267_v53 = vmul.f32 0.2, %v7958_v36 }
 0x3d7   : > { %v2005_v40 = vpop.f32.mrf.mxu0  ;;  %v1964_v35 = vpop.f32.mrf.mxu3  ;;  %v4769_v29 = vpack.i.bf16 %v2280_v57, %v2279_v24 }
 0x3d8   : > { %v8014_v63 = vpop.f32.mrf.mxu1  ;;  %v1965_v44 = vadd.f32 %v1964_v35, %v1924_v31  ;;  %v2291_v7 = vsel %vm2243_vm2, %v7958_v36, %v2267_v53  ;;  %v11166_v53 = vld [vmem:[#allocation38_spill] sm:$0xff] }
 0x3d9   : > { %4770 = vrot.lane.b32.xlu0 %v4769_v29, %s5807_s19 }
 0x3da   : > { %v8021_v4 = vadd.f32 %v2005_v40, %v1965_v44 }
 0x3dd   : > { %v1926_v45 = vpop.f32.mrf.mxu2 }
 0x3de   : > { %v1927_v33 = vadd.f32 %v1926_v45, %v1886_v20 }
 0x3df   : > { %v2008_v22 = vpop.f32.mrf.mxu0  ;;  %v1967_v51 = vpop.f32.mrf.mxu3 }
 0x3e0   : > { %v8025_v46 = vpop.f32.mrf.mxu1  ;;  %v1968_v2 = vadd.f32 %v1967_v51, %v1927_v33  ;;  %v2038_v33 = vadd.f32 %v8008_v6, %v7894_v1 }
 0x3e2   : > { %v2009_v61 = vadd.f32 %v2008_v22, %v1968_v2 }
 0x3e4   : > { %vm2238_vm14 = vcmp.ge.f32.partialorder %v2009_v61, 0.0  ;;  %v2262_v19 = vmul.f32 0.2, %v2009_v61 }
 0x3e5   : > { %v1929_v26 = vpop.f32.mrf.mxu2 }
 0x3e6   : > { %v1930_v62 = vadd.f32 %v1929_v26, %v7974_v15  ;;  %v2286_v13 = vsel %vm2238_vm14, %v2009_v61, %v2262_v19  ;;  %vm2229_vm14 = vcmp.ge.f32.partialorder %v8002_v23, 0.0 }
 0x3e7   : > { %v2011_v18 = vpop.f32.mrf.mxu0  ;;  %v1970_v34 = vpop.f32.mrf.mxu3  ;;  %v4774_v56 = vpack.i.bf16 %v2286_v13, %v2285_v59 }
 0x3e8   : > { %v8028_v48 = vpop.f32.mrf.mxu1  ;;  %v1971_v16 = vadd.f32 %v1970_v34, %v1930_v62  ;;  %v11163_v62 = vld [vmem:[#allocation54_spill] sm:$0xff] }
 0x3e9   : > { %4775 = vrot.lane.b32.xlu0 %v4774_v56, %s5807_s19 }
 0x3ea   : > { %v8033_v11 = vadd.f32 %v2011_v18, %v1971_v16  ;;  %v11164_v16 = vld [vmem:[#allocation7_spill] sm:$0xff] }
 0x3eb   : > { %v1637_v39 = vadd.f32 %v11164_v16, %v7913_v8 }
 0x3ed   : > { %v1932_v25 = vpop.f32.mrf.mxu2 }
 0x3ee   : > { %v1933_v58 = vadd.f32 %v1932_v25, %v1892_v14  ;;  %v11165_v25 = vld [vmem:[#allocation35_spill] sm:$0xff] }
 0x3ef   : > { %v2014_v15 = vpop.f32.mrf.mxu0  ;;  %v1973_v21 = vpop.f32.mrf.mxu3 }
 0x3f0   : > { %v8036_v3 = vpop.f32.mrf.mxu1  ;;  %v1974_v55 = vadd.f32 %v1973_v21, %v1933_v58  ;;  %v1678_v58 = vadd.f32 %v11165_v25, %v1637_v39 }
 0x3f2   : > { %v2015_v49 = vadd.f32 %v2014_v15, %v1974_v55 }
 0x3f4   : > { %vm2244_vm9 = vcmp.ge.f32.partialorder %v2015_v49, 0.0  ;;  %v2268_v12 = vmul.f32 0.2, %v2015_v49 }
 0x3f5   : > { %v1935_v31 = vpop.f32.mrf.mxu2 }
 0x3f6   : > { %v1936_v32 = vadd.f32 %v1935_v31, %v7996_v42  ;;  %v2292_v24 = vsel %vm2244_vm9, %v2015_v49, %v2268_v12  ;;  %v1631_v42 = vadd.f32 %v7753_v43, %v7909_v0  ;;  %v2041_v43 = vadd.f32 %v8014_v63, %v7909_v0 }
 0x3f7   : > { %v2017_v40 = vpop.f32.mrf.mxu0  ;;  %v1976_v57 = vpop.f32.mrf.mxu3  ;;  %v4779_v29 = vpack.i.bf16 %v2292_v24, %v2291_v7  ;;  %v2044_v0 = vadd.f32 %v8025_v46, %v11162_v30  ;;  %v1719_v49 = vadd.f32 %v11166_v53, %v1678_v58  ;;  %v11167_v7 = vld [vmem:[#allocation4_spill] sm:$0xff] }
 0x3f8   : > { %v8042_v35 = vpop.f32.mrf.mxu1  ;;  %v1977_v47 = vadd.f32 %v1976_v57, %v1936_v32  ;;  %v1672_v36 = vadd.f32 %v7766_v5, %v1631_v42  ;;  %v2253_v57 = vmul.f32 0.2, %v8002_v23 }
 0x3f9   : > { %4780 = vrot.lane.b32.xlu0 %v4779_v29, %s5807_s19  ;;  %v1760_v24 = vadd.f32 %v11167_v7, %v1719_v49  ;;  %v2265_v7 = vmul.f32 0.2, %v8033_v11 }
 0x3fa   : > { %v8045_v44 = vadd.f32 %v2017_v40, %v1977_v47  ;;  %v1713_v22 = vadd.f32 %v7787_v27, %v1672_v36  ;;  %v2277_v42 = vsel %vm2229_vm14, %v8002_v23, %v2253_v57 }
 0x3fc   : > { %v1754_v19 = vadd.f32 %v7865_v9, %v1713_v22 }
 0x3fd   : > { %v2078_v50 = vpop.f32.mrf.mxu2 }
 0x3fe   : > { %v2079_v51 = vadd.f32 %v2078_v50, %v2038_v33  ;;  %v1795_v18 = vadd.f32 %v11163_v62, %v1754_v19  ;;  %v11168_v50 = vld [vmem:[#allocation32_spill] sm:$0xff] }
 0x3ff   : > { %v2160_v52 = vpop.f32.mrf.mxu0  ;;  %v2119_v45 = vpop.f32.mrf.mxu3 }
 0x400   : > { %v8047_v20 = vpop.f32.mrf.mxu1  ;;  %v2120_v26 = vadd.f32 %v2119_v45, %v2079_v51  ;;  %v2252_v34 = vmul.f32 0.2, %v1795_v18  ;;  %vm2228_vm13 = vcmp.ge.f32.partialorder %v1795_v18, 0.0  ;;  %v2047_v45 = vadd.f32 %v8028_v48, %v7913_v8 }
 0x401   : > { %v2050_v8 = vadd.f32 %v8036_v3, %v7931_v28  ;;  %v2053_v28 = vadd.f32 %v8042_v35, %v7916_v17  ;;  %v2056_v17 = vadd.f32 %v8047_v20, %v7934_v10 }
 0x402   : > { %v2161_v59 = vadd.f32 %v2160_v52, %v2120_v26  ;;  %v2276_v21 = vsel %vm2228_vm13, %v1795_v18, %v2252_v34  ;;  %v1801_v52 = vadd.f32 %v11168_v50, %v1760_v24  ;;  %v2259_v34 = vmul.f32 0.2, %v8021_v4 }
 0x404   : > { %vm2234_vm9 = vcmp.ge.f32.partialorder %v1801_v52, 0.0 }
 0x405   : > { %v2081_v38 = vpop.f32.mrf.mxu2 }
 0x406   : > { %v2082_v13 = vadd.f32 %v2081_v38, %v2041_v43 }
 0x407   : > { %v2163_v2 = vpop.f32.mrf.mxu0  ;;  %v2122_v61 = vpop.f32.mrf.mxu3 }
 0x408   : > { %v8055_v41 = vpop.f32.mrf.mxu1  ;;  %v2123_v14 = vadd.f32 %v2122_v61, %v2082_v13  ;;  %v2258_v61 = vmul.f32 0.2, %v1801_v52 }
 0x40a   : > { %v2164_v12 = vadd.f32 %v2163_v2, %v2123_v14  ;;  %v2282_v23 = vsel %vm2234_vm9, %v1801_v52, %v2258_v61 }
 0x40d   : > { %v2084_v5 = vpop.f32.mrf.mxu2 }
 0x40e   : > { %v2085_v31 = vadd.f32 %v2084_v5, %v2044_v0 }
 0x40f   : > { %v2125_v1 = vpop.f32.mrf.mxu3  ;;  %v2166_v56 = vpop.f32.mrf.mxu0 }
 0x410   : > { %v2201_v6 = vpop.f32.mrf.mxu1  ;;  %v2126_v30 = vadd.f32 %v2125_v1, %v2085_v31 }
 0x411   : > { %v2202_v27 = vadd.f32 %v2201_v6, %v2161_v59 }
 0x412   : > { %v2167_v22 = vadd.f32 %v2166_v56, %v2126_v30 }
 0x413   : > { %vm2227_vm8 = vcmp.ge.f32.partialorder %v2202_v27, 0.0  ;;  %v2251_v9 = vmul.f32 0.2, %v2202_v27 }
 0x415   : > { %v2087_v63 = vpop.f32.mrf.mxu2  ;;  %v2275_v15 = vsel %vm2227_vm8, %v2202_v27, %v2251_v9  ;;  %vm2235_vm8 = vcmp.ge.f32.partialorder %v8021_v4, 0.0 }
 0x416   : > { %v4784_v55 = vpack.i.bf16 %v2276_v21, %v2275_v15  ;;  %v2088_v51 = vadd.f32 %v2087_v63, %v2047_v45  ;;  %v2283_v3 = vsel %vm2235_vm8, %v8021_v4, %v2259_v34  ;;  %v2264_v15 = vmul.f32 0.2, %v7939_v37 }
 0x417   : > { %v2128_v32 = vpop.f32.mrf.mxu3  ;;  %v2169_v47 = vpop.f32.mrf.mxu0 }
 0x418   : > { %v2204_v40 = vpop.f32.mrf.mxu1  ;;  %4785 = vrot.lane.b32.xlu1 %v4784_v55, %s5807_s19  ;;  %v2129_v62 = vadd.f32 %v2128_v32, %v2088_v51 }
 0x419   : > { %v2205_v29 = vadd.f32 %v2204_v40, %v2164_v12 }
 0x41a   : > { %v2170_v59 = vadd.f32 %v2169_v47, %v2129_v62  ;;  %v2059_v47 = vadd.f32 %v8055_v41, %v7950_v54  ;;  %v2270_v54 = vmul.f32 0.2, %v7972_v60 }
 0x41b   : > { %vm2230_vm2 = vcmp.ge.f32.partialorder %v2205_v29, 0.0  ;;  %v2254_v46 = vmul.f32 0.2, %v2205_v29 }
 0x41d   : > { %v2278_v36 = vsel %vm2230_vm2, %v2205_v29, %v2254_v46  ;;  %v2090_v33 = vpop.f32.mrf.mxu2  ;;  %vm2240_vm2 = vcmp.ge.f32.partialorder %v7939_v37, 0.0 }
 0x41e   : > { %v4789_v38 = vpack.i.bf16 %v2278_v36, %v2277_v42  ;;  %v2091_v13 = vadd.f32 %v2090_v33, %v2050_v8  ;;  %v2288_v35 = vsel %vm2240_vm2, %v7939_v37, %v2264_v15  ;;  %vm2246_vm2 = vcmp.ge.f32.partialorder %v7972_v60, 0.0 }
 0x41f   : > { %v2131_v26 = vpop.f32.mrf.mxu3  ;;  %v2172_v43 = vpop.f32.mrf.mxu0 }
 0x420   : > { %v2207_v2 = vpop.f32.mrf.mxu1  ;;  %4790 = vrot.lane.b32.xlu2 %v4789_v38, %s5807_s19  ;;  %v2132_v56 = vadd.f32 %v2131_v26, %v2091_v13  ;;  %v2271_v13 = vmul.f32 0.2, %v8045_v44 }
 0x421   : > { %v2208_v19 = vadd.f32 %v2207_v2, %v2167_v22 }
 0x422   : > { %v2173_v25 = vadd.f32 %v2172_v43, %v2132_v56 }
 0x423   : > { %vm2233_vm13 = vcmp.ge.f32.partialorder %v2208_v19, 0.0  ;;  %v2257_v18 = vmul.f32 0.2, %v2208_v19 }
 0x425   : > { %v2281_v48 = vsel %vm2233_vm13, %v2208_v19, %v2257_v18  ;;  %v2093_v1 = vpop.f32.mrf.mxu2  ;;  %vm2241_vm13 = vcmp.ge.f32.partialorder %v8033_v11, 0.0 }
 0x426   : > { %v4794_v5 = vpack.i.bf16 %v2282_v23, %v2281_v48  ;;  %v2094_v58 = vadd.f32 %v2093_v1, %v2053_v28  ;;  %v2289_v37 = vsel %vm2241_vm13, %v8033_v11, %v2265_v7  ;;  %v2294_v23 = vsel %vm2246_vm2, %v7972_v60, %v2270_v54 }
 0x427   : > { %v2134_v39 = vpop.f32.mrf.mxu3  ;;  %v2175_v0 = vpop.f32.mrf.mxu0  ;;  %vm2247_vm13 = vcmp.ge.f32.partialorder %v8045_v44, 0.0 }
 0x428   : > { %v2210_v6 = vpop.f32.mrf.mxu1  ;;  %4795 = vrot.lane.b32.xlu1 %v4794_v5, %s5807_s19  ;;  %v2135_v53 = vadd.f32 %v2134_v39, %v2094_v58  ;;  %v2295_v34 = vsel %vm2247_vm13, %v8045_v44, %v2271_v13 }
 0x429   : > { %v2211_v27 = vadd.f32 %v2210_v6, %v2170_v59 }
 0x42a   : > { %v2176_v32 = vadd.f32 %v2175_v0, %v2135_v53 }
 0x42b   : > { %vm2236_vm14 = vcmp.ge.f32.partialorder %v2211_v27, 0.0  ;;  %v2260_v16 = vmul.f32 0.2, %v2211_v27 }
 0x42d   : > { %v2284_v14 = vsel %vm2236_vm14, %v2211_v27, %v2260_v16  ;;  %v2096_v55 = vpop.f32.mrf.mxu2  ;;  %vm2369_vm14 = vcmask 154624  }
 0x42e   : > { %v4799_v9 = vpack.i.bf16 %v2284_v14, %v2283_v3  ;;  %v2097_v40 = vadd.f32 %v2096_v55, %v2056_v17 }
 0x42f   : > { %v2137_v12 = vpop.f32.mrf.mxu3  ;;  %v2178_v29 = vpop.f32.mrf.mxu0 }
 0x430   : > { %v2213_v63 = vpop.f32.mrf.mxu1  ;;  %4800 = vrot.lane.b32.xlu2 %v4799_v9, %s5807_s19  ;;  %v2138_v30 = vadd.f32 %v2137_v12, %v2097_v40 }
 0x431   : > { %v2214_v21 = vadd.f32 %v2213_v63, %v2173_v25 }
 0x432   : > { %v2179_v36 = vadd.f32 %v2178_v29, %v2138_v30 }
 0x433   : > { %vm2239_vm9 = vcmp.ge.f32.partialorder %v2214_v21, 0.0  ;;  %v2263_v49 = vmul.f32 0.2, %v2214_v21 }
 0x435   : > { %v2287_v4 = vsel %vm2239_vm9, %v2214_v21, %v2263_v49  ;;  %v2099_v10 = vpop.f32.mrf.mxu2 }
 0x436   : > { %v4804_v31 = vpack.i.bf16 %v2288_v35, %v2287_v4  ;;  %v2100_v33 = vadd.f32 %v2099_v10, %v2059_v47 }
 0x437   : > { %v2140_v2 = vpop.f32.mrf.mxu3  ;;  %v2181_v8 = vpop.f32.mrf.mxu0 }
 0x438   : > { %v2216_v24 = vpop.f32.mrf.mxu1  ;;  %4805 = vrot.lane.b32.xlu1 %v4804_v31, %s5807_s19  ;;  %v2141_v62 = vadd.f32 %v2140_v2, %v2100_v33 }
 0x439   : > { %v2217_v57 = vadd.f32 %v2216_v24, %v2176_v32 }
 0x43a   : > { %v2182_v5 = vadd.f32 %v2181_v8, %v2141_v62 }
 0x43b   : > { %vm2242_vm8 = vcmp.ge.f32.partialorder %v2217_v57, 0.0  ;;  %v2266_v46 = vmul.f32 0.2, %v2217_v57  ;;  %v8093_v20 = vpop.permute.xlu0 %4765 }
 0x43c   : > { %v4768_v50 = vunpack.i.h.bf16 %v8093_v20  ;;  %v4767_v52 = vunpack.i.l.bf16 %v8093_v20 }
 0x43d   : > { %v2290_v45 = vsel %vm2242_vm8, %v2217_v57, %v2266_v46 }
 0x43e   : > { %v4809_v42 = vpack.i.bf16 %v2290_v45, %v2289_v37  ;;  %v2370_v38 = vsel %vm2369_vm14, %v4767_v52, %v4768_v50  ;;  %v2410_v51 = vsel %vm6047_vm11, %v4767_v52, 0.0 }
 0x43f   : > { %v2411_v11 = vsel %vm6053_vm12, %v2370_v38, 0.0 }
 0x440   : > { %v2219_v19 = vpop.f32.mrf.mxu1  ;;  %4810 = vrot.lane.b32.xlu2 %v4809_v42, %s5807_s19  ;;  %v4819_v26 = vpack.i.bf16 %v2411_v11, %v2410_v51 }
 0x441   : > { %v2220_v41 = vadd.f32 %v2219_v19, %v2179_v36 }
 0x442   : > { %4820 = vrot.lane.b32.xlu0 %v4819_v26, %s5799_s12 }
 0x443   : > { %vm2245_vm9 = vcmp.ge.f32.partialorder %v2220_v41, 0.0  ;;  %v2269_v18 = vmul.f32 0.2, %v2220_v41 }
 0x445   : > { %v2293_v48 = vsel %vm2245_vm9, %v2220_v41, %v2269_v18 }
 0x446   : > { %v4814_v43 = vpack.i.bf16 %v2294_v23, %v2293_v48 }
 0x448   : > { %v2222_v59 = vpop.f32.mrf.mxu1  ;;  %4815 = vrot.lane.b32.xlu1 %v4814_v43, %s5807_s19 }
 0x449   : > { %v2223_v1 = vadd.f32 %v2222_v59, %v2182_v5 }
 0x44a   : > { %4825 = vrot.lane.b32.xlu0 %v4819_v26, %s5798_s11 }
 0x44b   : > { %vm2248_vm8 = vcmp.ge.f32.partialorder %v2223_v1, 0.0  ;;  %v2272_v6 = vmul.f32 0.2, %v2223_v1  ;;  %v8121_v60 = vpop.permute.xlu0 %4770 }
 0x44c   : > { %v4773_v16 = vunpack.i.h.bf16 %v8121_v60  ;;  %v4772_v44 = vunpack.i.l.bf16 %v8121_v60 }
 0x44d   : > { %v2296_v27 = vsel %vm2248_vm8, %v2223_v1, %v2272_v6 }
 0x44e   : > { %v4859_v56 = vpack.i.bf16 %v2296_v27, %v2295_v34  ;;  %v2374_v39 = vsel %vm2369_vm14, %v4772_v44, %v4773_v16  ;;  %v2416_v28 = vsel %vm6047_vm11, %v4772_v44, 0.0 }
 0x44f   : > { %v2417_v3 = vsel %vm6053_vm12, %v2374_v39, 0.0 }
 0x450   : > { %4860 = vrot.lane.b32.xlu2 %v4859_v56, %s5807_s19  ;;  %v4864_v14 = vpack.i.bf16 %v2417_v3, %v2416_v28 }
 0x452   : > { %4830 = vrot.lane.b32.xlu0 %v4819_v26, %s5800_s13 }
 0x45a   : > { %4835 = vrot.lane.b32.xlu0 %v4819_v26, %s5801_s14 }
 0x45b   : > { %v8155_v40 = vpop.permute.xlu0 %4775 }
 0x45c   : > { %v4778_v57 = vunpack.i.h.bf16 %v8155_v40  ;;  %v4777_v29 = vunpack.i.l.bf16 %v8155_v40 }
 0x45e   : > { %v2378_v30 = vsel %vm2369_vm14, %v4777_v29, %v4778_v57  ;;  %v2422_v10 = vsel %vm6047_vm11, %v4777_v29, 0.0 }
 0x45f   : > { %v2423_v20 = vsel %vm6053_vm12, %v2378_v30, 0.0 }
 0x460   : > { %v4904_v37 = vpack.i.bf16 %v2423_v20, %v2422_v10 }
 0x462   : > { %4840 = vrot.lane.b32.xlu0 %v4819_v26, %s5802_s15 }
 0x46a   : > { %4845 = vrot.lane.b32.xlu0 %v4819_v26, %s5803_s16 }
 0x46b   : > { %v8160_v7 = vpop.permute.xlu0 %4780 }
 0x46c   : > { %v4783_v27 = vunpack.i.h.bf16 %v8160_v7  ;;  %v4782_v56 = vunpack.i.l.bf16 %v8160_v7 }
 0x46e   : > { %v2382_v60 = vsel %vm2369_vm14, %v4782_v56, %v4783_v27  ;;  %v2428_v28 = vsel %vm6047_vm11, %v4782_v56, 0.0 }
 0x46f   : > { %v2429_v3 = vsel %vm6053_vm12, %v2382_v60, 0.0 }
 0x472   : > { %4850 = vrot.lane.b32.xlu0 %v4819_v26, %s5804_s17 }
 0x47a   : > { %4855 = vrot.lane.b32.xlu0 %v4819_v26, %s5805_s18  ;;  %v4791_v9 = vpop.permute.xlu2 %4790 }
 0x47b   : > { %v4793_v25 = vunpack.i.h.bf16 %v4791_v9  ;;  %v4792_v58 = vunpack.i.l.bf16 %v4791_v9 }
 0x47d   : > { %v2373_v63 = vsel %vm2369_vm14, %v4792_v58, %v4793_v25 }
 0x47e   : > { %v2415_v4 = vsel %vm6073_vm15, %v2373_v63, 0.0 }
 0x482   : > { %4865 = vrot.lane.b32.xlu0 %v4864_v14, %s5799_s12 }
 0x48a   : > { %v4786_v0 = vpop.permute.xlu1 %4785  ;;  %4870 = vrot.lane.b32.xlu0 %v4864_v14, %s5798_s11 }
 0x48b   : > { %v4788_v15 = vunpack.i.h.bf16 %v4786_v0  ;;  %v4787_v21 = vunpack.i.l.bf16 %v4786_v0 }
 0x48d   : > { %v2372_v55 = vsel %vm2369_vm14, %v4788_v15, %v4792_v58  ;;  %v2413_v53 = vsel %vm6047_vm11, %v4788_v15, 0.0  ;;  %v2371_v49 = vsel %vm2369_vm14, %v4768_v50, %v4787_v21  ;;  %v4801_v50 = vpop.permute.xlu2 %4800 }
 0x48e   : > { %v2414_v35 = vsel %vm6053_vm12, %v2372_v55, 0.0  ;;  %v2412_v12 = vsel %vm6073_vm15, %v2371_v49, 0.0  ;;  %v4803_v36 = vunpack.i.h.bf16 %v4801_v50  ;;  %v4802_v33 = vunpack.i.l.bf16 %v4801_v50 }
 0x48f   : > { %v5024_v31 = vpack.i.bf16 %v2415_v4, %v2414_v35  ;;  %v4984_v32 = vpack.i.bf16 %v2413_v53, %v2412_v12 }
 0x490   : > { %v2377_v2 = vsel %vm2369_vm14, %v4802_v33, %v4803_v36 }
 0x491   : > { %5025 = vrot.lane.b32.xlu2 %v5024_v31, %s5799_s12  ;;  %4985 = vrot.lane.b32.xlu1 %v4984_v32, %s5799_s12  ;;  %v2421_v26 = vsel %vm6073_vm15, %v2377_v2, 0.0 }
 0x492   : > { %4875 = vrot.lane.b32.xlu0 %v4864_v14, %s5800_s13 }
 0x499   : > { %5030 = vrot.lane.b32.xlu2 %v5024_v31, %s5798_s11  ;;  %4990 = vrot.lane.b32.xlu1 %v4984_v32, %s5798_s11 }
 0x49a   : > { %4880 = vrot.lane.b32.xlu0 %v4864_v14, %s5801_s14  ;;  %v4796_v47 = vpop.permute.xlu1 %4795  ;;  %v4811_v48 = vpop.permute.xlu2 %4810 }
 0x49b   : > { %v4798_v52 = vunpack.i.h.bf16 %v4796_v47  ;;  %v4797_v45 = vunpack.i.l.bf16 %v4796_v47  ;;  %v4813_v15 = vunpack.i.h.bf16 %v4811_v48  ;;  %v4812_v21 = vunpack.i.l.bf16 %v4811_v48 }
 0x49d   : > { %v2376_v38 = vsel %vm2369_vm14, %v4798_v52, %v4802_v33  ;;  %v2375_v51 = vsel %vm2369_vm14, %v4773_v16, %v4797_v45  ;;  %v2419_v11 = vsel %vm6047_vm11, %v4798_v52, 0.0  ;;  %v2381_v49 = vsel %vm2369_vm14, %v4812_v21, %v4813_v15 }
 0x49e   : > { %v2420_v19 = vsel %vm6053_vm12, %v2376_v38, 0.0  ;;  %v2418_v54 = vsel %vm6073_vm15, %v2375_v51, 0.0 }
 0x49f   : > { %v5104_v62 = vpack.i.bf16 %v2421_v26, %v2420_v19  ;;  %v5064_v18 = vpack.i.bf16 %v2419_v11, %v2418_v54 }
 0x4a1   : > { %5035 = vrot.lane.b32.xlu2 %v5024_v31, %s5800_s13  ;;  %4995 = vrot.lane.b32.xlu1 %v4984_v32, %s5800_s13 }
 0x4a2   : > { %4885 = vrot.lane.b32.xlu0 %v4864_v14, %s5802_s15 }
 0x4a9   : > { %5040 = vrot.lane.b32.xlu2 %v5024_v31, %s5801_s14  ;;  %5000 = vrot.lane.b32.xlu1 %v4984_v32, %s5801_s14 }
 0x4aa   : > { %4890 = vrot.lane.b32.xlu0 %v4864_v14, %s5803_s16  ;;  %v8216_v43 = vpop.permute.xlu2 %4860  ;;  %v4806_v1 = vpop.permute.xlu1 %4805 }
 0x4ab   : > { %v4808_v58 = vunpack.i.h.bf16 %v4806_v1  ;;  %v4807_v0 = vunpack.i.l.bf16 %v4806_v1 }
 0x4ad   : > { %v2380_v55 = vsel %vm2369_vm14, %v4808_v58, %v4812_v21  ;;  %v2379_v53 = vsel %vm2369_vm14, %v4778_v57, %v4807_v0  ;;  %v2425_v12 = vsel %vm6047_vm11, %v4808_v58, 0.0  ;;  %v2427_v57 = vsel %vm6073_vm15, %v2381_v49, 0.0 }
 0x4b1   : > { %5045 = vrot.lane.b32.xlu2 %v5024_v31, %s5802_s15  ;;  %5005 = vrot.lane.b32.xlu1 %v4984_v32, %s5802_s15 }
 0x4b2   : > { %4895 = vrot.lane.b32.xlu0 %v4864_v14, %s5804_s17 }
 0x4b4   : > { %v8165_v24 = vpop.permute.xlu0 %4820 }
 0x4b5   : > { %v4823_v48 = vunpack.i.h.bf16 %v8165_v24  ;;  %v4822_v1 = vunpack.i.l.bf16 %v8165_v24 }
 0x4b9   : > { %5050 = vrot.lane.b32.xlu2 %v5024_v31, %s5803_s16  ;;  %5010 = vrot.lane.b32.xlu1 %v4984_v32, %s5803_s16 }
 0x4ba   : > { %4900 = vrot.lane.b32.xlu0 %v4864_v14, %s5805_s18  ;;  %v8242_v16 = vpop.permute.xlu1 %4815  ;;  %v4944_v14 = vpack.i.bf16 %v2429_v3, %v2428_v28  ;;  %v2506_v28 = vsel %vm390_vm7, %v4822_v1, %v4823_v48 }
 0x4bb   : > { %v4818_v21 = vunpack.i.h.bf16 %v8242_v16 }
 0x4bc   : > { %v8175_v46 = vpop.permute.xlu0 %4825 }
 0x4bd   : > { %v4828_v24 = vunpack.i.h.bf16 %v8175_v46  ;;  %v4827_v15 = vunpack.i.l.bf16 %v8175_v46 }
 0x4c1   : > { %5055 = vrot.lane.b32.xlu2 %v5024_v31, %s5804_s17  ;;  %5015 = vrot.lane.b32.xlu1 %v4984_v32, %s5804_s17 }
 0x4c2   : > { %4905 = vrot.lane.b32.xlu0 %v4904_v37, %s5799_s12 }
 0x4c4   : > { %v8184_v42 = vpop.permute.xlu0 %4830 }
 0x4c9   : > { %5060 = vrot.lane.b32.xlu2 %v5024_v31, %s5805_s18  ;;  %5020 = vrot.lane.b32.xlu1 %v4984_v32, %s5805_s18  ;;  %v2426_v31 = vsel %vm6053_vm12, %v2380_v55, 0.0  ;;  %v2424_v32 = vsel %vm6073_vm15, %v2379_v53, 0.0  ;;  %v4817_v55 = vunpack.i.l.bf16 %v8242_v16 }
 0x4ca   : > { %4910 = vrot.lane.b32.xlu0 %v4904_v37, %s5798_s11  ;;  %v5184_v29 = vpack.i.bf16 %v2427_v57, %v2426_v31  ;;  %v5144_v30 = vpack.i.bf16 %v2425_v12, %v2424_v32  ;;  %v4863_v12 = vunpack.i.h.bf16 %v8216_v43  ;;  %v4862_v31 = vunpack.i.l.bf16 %v8216_v43 }
 0x4cb   : > { %v2570_v32 = vsel %vm402_vm6, %v4827_v15, %v4828_v24  ;;  %v2383_v46 = vsel %vm2369_vm14, %v4783_v27, %v4817_v55  ;;  %v2431_v43 = vsel %vm6047_vm11, %v4818_v21, 0.0  ;;  %vm11205_vm11 = vcmask 752640  }
 0x4cc   : > { %v8200_v41 = vpop.permute.xlu0 %4835  ;;  %v2384_v57 = vsel %vm2369_vm14, %v4818_v21, %v4862_v31  ;;  %v2385_v1 = vsel %vm2369_vm14, %v4862_v31, %v4863_v12  ;;  %v2430_v27 = vsel %vm6073_vm15, %v2383_v46, 0.0  ;;  %vm11219_vm14 = vmmov %vm11205_vm11 }
 0x4cd   : > { %v2432_v7 = vsel %vm6053_vm12, %v2384_v57, 0.0  ;;  %v2433_v22 = vsel %vm6073_vm15, %v2385_v1, 0.0  ;;  %v8395_v61 = vpack.i.bf16 %v2431_v43, %v2430_v27  ;;  %v4838_v12 = vunpack.i.h.bf16 %v8200_v41  ;;  %vm11206_vm12 = vmmov %vm11205_vm11 }
 0x4ce   : > { %v8393_v15 = vpack.i.bf16 %v2433_v22, %v2432_v7  ;;  %v4837_v31 = vunpack.i.l.bf16 %v8200_v41  ;;  %vm11209_vm15 = vmmov %vm11205_vm11 }
 0x4cf   : > { %vm11220_vm2 = vmmov %vm11205_vm11 }
 0x4d0   : > { %v8419_v46 = vsel %vm426_vm4, %v4837_v31, %v4838_v12  ;;  %vm11270_vm9 = vmmov %vm11220_vm2 }
 0x4d1   : > { %5105 = vrot.lane.b32.xlu2 %v5104_v62, %s5799_s12  ;;  %5065 = vrot.lane.b32.xlu1 %v5064_v18, %s5799_s12  ;;  %11185 = vst [vmem:[#allocation76_spill] sm:$0xff] %v8419_v46  ;;  %vm11272_vm13 = vmmov %vm11220_vm2 }
 0x4d2   : > { %4915 = vrot.lane.b32.xlu0 %v4904_v37, %s5800_s13  ;;  %vm11274_vm8 = vmmov %vm11220_vm2 }
 0x4d4   : > { %v8207_v8 = vpop.permute.xlu0 %4840 }
 0x4d9   : > { %5110 = vrot.lane.b32.xlu2 %v5104_v62, %s5798_s11  ;;  %5070 = vrot.lane.b32.xlu1 %v5064_v18, %s5798_s11 }
 0x4da   : > { %4920 = vrot.lane.b32.xlu0 %v4904_v37, %s5801_s14 }
 0x4dc   : > { %v8212_v23 = vpop.permute.xlu0 %4845 }
 0x4dd   : > { %11172 = vst [vmem:[#allocation50_spill] sm:$0xff] %v8212_v23 }
 0x4e1   : > { %5115 = vrot.lane.b32.xlu2 %v5104_v62, %s5800_s13  ;;  %5075 = vrot.lane.b32.xlu1 %v5064_v18, %s5800_s13 }
 0x4e2   : > { %4925 = vrot.lane.b32.xlu0 %v4904_v37, %s5802_s15 }
 0x4e4   : > { %v8219_v5 = vpop.permute.xlu0 %4850 }
 0x4e9   : > { %5120 = vrot.lane.b32.xlu2 %v5104_v62, %s5801_s14  ;;  %5080 = vrot.lane.b32.xlu1 %v5064_v18, %s5801_s14 }
 0x4ea   : > { %4930 = vrot.lane.b32.xlu0 %v4904_v37, %s5803_s16 }
 0x4eb   : > { %v8223_v59 = vpop.permute.xlu2 %5025 }
 0x4ec   : > { %v8226_v13 = vpop.permute.xlu0 %4855 }
 0x4ed   : > { %11173 = vst [vmem:[#allocation56_spill] sm:$0xff] %v8226_v13 }
 0x4f1   : > { %5125 = vrot.lane.b32.xlu2 %v5104_v62, %s5802_s15  ;;  %5085 = vrot.lane.b32.xlu1 %v5064_v18, %s5802_s15 }
 0x4f2   : > { %4935 = vrot.lane.b32.xlu0 %v4904_v37, %s5804_s17 }
 0x4f3   : > { %v8230_v6 = vpop.permute.xlu2 %5030 }
 0x4f4   : > { %v8233_v34 = vpop.permute.xlu0 %4865 }
 0x4f9   : > { %5130 = vrot.lane.b32.xlu2 %v5104_v62, %s5803_s16  ;;  %5090 = vrot.lane.b32.xlu1 %v5064_v18, %s5803_s16 }
 0x4fa   : > { %4940 = vrot.lane.b32.xlu0 %v4904_v37, %s5805_s18 }
 0x4fb   : > { %v8244_v44 = vpop.permute.xlu2 %5035 }
 0x4fc   : > { %v8247_v39 = vpop.permute.xlu0 %4870 }
 0x501   : > { %5135 = vrot.lane.b32.xlu2 %v5104_v62, %s5804_s17  ;;  %5095 = vrot.lane.b32.xlu1 %v5064_v18, %s5804_s17 }
 0x502   : > { %4945 = vrot.lane.b32.xlu0 %v4944_v14, %s5799_s12 }
 0x503   : > { %v8255_v9 = vpop.permute.xlu2 %5040  ;;  %v8257_v25 = vpop.permute.xlu1 %4985 }
 0x504   : > { %v8260_v63 = vpop.permute.xlu0 %4875  ;;  %v10555_v26 = vunpack.i.l.bf16 %v8257_v25 }
 0x506   : > { %v2507_v60 = vsel %vm390_vm7, %v4823_v48, %v10555_v26  ;;  %v4873_v26 = vunpack.i.h.bf16 %v8247_v39 }
 0x507   : > { %v5324_v3 = vpack.i.bf16 %v2507_v60, %v2506_v28 }
 0x509   : > { %5140 = vrot.lane.b32.xlu2 %v5104_v62, %s5805_s18  ;;  %5100 = vrot.lane.b32.xlu1 %v5064_v18, %s5805_s18 }
 0x50a   : > { %4950 = vrot.lane.b32.xlu0 %v4944_v14, %s5798_s11 }
 0x50b   : > { %v8269_v4 = vpop.permute.xlu2 %5045  ;;  %v8271_v35 = vpop.permute.xlu1 %4990 }
 0x50c   : > { %11174 = vst [vmem:[#allocation40_spill] sm:$0xff] %v8269_v4  ;;  %v8280_v40 = vpop.permute.xlu0 %4880  ;;  %v10554_v58 = vunpack.i.l.bf16 %v8271_v35  ;;  %v10553_v7 = vunpack.i.h.bf16 %v8269_v4  ;;  %v5047_v27 = vunpack.i.l.bf16 %v8269_v4 }
 0x50e   : > { %v2571_v49 = vsel %vm402_vm6, %v4828_v24, %v10554_v58 }
 0x50f   : > { %v5329_v16 = vpack.i.bf16 %v2571_v49, %v2570_v32 }
 0x511   : > { %5185 = vrot.lane.b32.xlu2 %v5184_v29, %s5799_s12  ;;  %5145 = vrot.lane.b32.xlu1 %v5144_v30, %s5799_s12 }
 0x512   : > { %4955 = vrot.lane.b32.xlu0 %v4944_v14, %s5800_s13 }
 0x513   : > { %v8286_v10 = vpop.permute.xlu2 %5050  ;;  %v8288_v20 = vpop.permute.xlu1 %4995 }
 0x514   : > { %11175 = vst [vmem:[#allocation68_spill] sm:$0xff] %v8286_v10  ;;  %v8291_v37 = vpop.permute.xlu0 %4885  ;;  %v10552_v48 = vunpack.i.l.bf16 %v8288_v20  ;;  %v4843_v10 = vunpack.i.h.bf16 %v8207_v8 }
 0x519   : > { %5190 = vrot.lane.b32.xlu2 %v5184_v29, %s5798_s11  ;;  %5150 = vrot.lane.b32.xlu1 %v5144_v30, %s5798_s11 }
 0x51a   : > { %4960 = vrot.lane.b32.xlu0 %v4944_v14, %s5801_s14 }
 0x51b   : > { %v8295_v47 = vpop.permute.xlu2 %5055  ;;  %v8297_v50 = vpop.permute.xlu1 %5000 }
 0x51c   : > { %11176 = vst [vmem:[#allocation65_spill] sm:$0xff] %v8295_v47  ;;  %v8300_v52 = vpop.permute.xlu0 %4890  ;;  %v8403_v17 = vunpack.i.l.bf16 %v8297_v50 }
 0x51e   : > { %11182 = vst [vmem:[#allocation36_spill] sm:$0xff] %v8403_v17  ;;  %v8416_v57 = vsel %vm426_vm4, %v4838_v12, %v8403_v17 }
 0x51f   : > { %11184 = vst [vmem:[#allocation33_spill] sm:$0xff] %v8416_v57 }
 0x521   : > { %5195 = vrot.lane.b32.xlu2 %v5184_v29, %s5800_s13  ;;  %5155 = vrot.lane.b32.xlu1 %v5144_v30, %s5800_s13 }
 0x522   : > { %4965 = vrot.lane.b32.xlu0 %v4944_v14, %s5802_s15 }
 0x523   : > { %v8304_v45 = vpop.permute.xlu2 %5060  ;;  %v8306_v36 = vpop.permute.xlu1 %5005 }
 0x524   : > { %11177 = vst [vmem:[#allocation66_spill] sm:$0xff] %v8304_v45  ;;  %v8309_v33 = vpop.permute.xlu0 %4895  ;;  %v5008_v41 = vunpack.i.h.bf16 %v8306_v36 }
 0x529   : > { %5200 = vrot.lane.b32.xlu2 %v5184_v29, %s5801_s14  ;;  %5160 = vrot.lane.b32.xlu1 %v5144_v30, %s5801_s14 }
 0x52a   : > { %4970 = vrot.lane.b32.xlu0 %v4944_v14, %s5803_s16 }
 0x52b   : > { %v8313_v38 = vpop.permute.xlu2 %5105  ;;  %v8315_v51 = vpop.permute.xlu1 %5010 }
 0x52c   : > { %11178 = vst [vmem:[#allocation37_spill] sm:$0xff] %v8315_v51  ;;  %v8318_v2 = vpop.permute.xlu0 %4900 }
 0x52d   : > { %11179 = vst [vmem:[#allocation55_spill] sm:$0xff] %v8318_v2 }
 0x531   : > { %5205 = vrot.lane.b32.xlu2 %v5184_v29, %s5802_s15  ;;  %5165 = vrot.lane.b32.xlu1 %v5144_v30, %s5802_s15 }
 0x532   : > { %4975 = vrot.lane.b32.xlu0 %v4944_v14, %s5804_s17 }
 0x533   : > { %v8322_v11 = vpop.permute.xlu2 %5110  ;;  %v8324_v19 = vpop.permute.xlu1 %5015 }
 0x534   : > { %v8327_v54 = vpop.permute.xlu0 %4905 }
 0x539   : > { %5210 = vrot.lane.b32.xlu2 %v5184_v29, %s5803_s16  ;;  %5170 = vrot.lane.b32.xlu1 %v5144_v30, %s5803_s16 }
 0x53a   : > { %4980 = vrot.lane.b32.xlu0 %v4944_v14, %s5805_s18 }
 0x53b   : > { %v8332_v62 = vpop.permute.xlu2 %5115  ;;  %v8334_v18 = vpop.permute.xlu1 %5020 }
 0x53c   : > { %11180 = vst [vmem:[#allocation44_spill] sm:$0xff] %v8334_v18  ;;  %v8339_v56 = vpop.permute.xlu0 %4910 }
 0x541   : > { %5215 = vrot.lane.b32.xlu2 %v5184_v29, %s5804_s17  ;;  %5175 = vrot.lane.b32.xlu1 %v5144_v30, %s5804_s17 }
 0x542   : > { %5325 = vrot.lane.b32.xlu0 %v5324_v3, %s5801_s14 }
 0x543   : > { %v8348_v14 = vpop.permute.xlu2 %5120  ;;  %v8350_v0 = vpop.permute.xlu1 %5065 }
 0x544   : > { %v8357_v53 = vpop.permute.xlu0 %4915  ;;  %v10556_v31 = vunpack.i.l.bf16 %v8350_v0 }
 0x549   : > { %5220 = vrot.lane.b32.xlu2 %v5184_v29, %s5805_s18  ;;  %5180 = vrot.lane.b32.xlu1 %v5144_v30, %s5805_s18  ;;  %v4833_v29 = vunpack.i.h.bf16 %v8184_v42  ;;  %v4832_v30 = vunpack.i.l.bf16 %v8184_v42 }
 0x54a   : > { %5330 = vrot.lane.b32.xlu0 %v5329_v16, %s5801_s14  ;;  %v5339_v16 = vpack.i.bf16 %v8416_v57, %v8419_v46  ;;  %v4878_v46 = vunpack.i.h.bf16 %v8260_v63 }
 0x54b   : > { %v8375_v60 = vpop.permute.xlu2 %5125  ;;  %v8377_v28 = vpop.permute.xlu1 %5070  ;;  %v2635_v24 = vsel %vm414_vm5, %v4833_v29, %v10552_v48  ;;  %v2634_v21 = vsel %vm414_vm5, %v4832_v30, %v4833_v29  ;;  %v10557_v29 = vunpack.i.l.bf16 %v8306_v36  ;;  %v4867_v48 = vunpack.i.l.bf16 %v8233_v34 }
 0x54c   : > { %11181 = vst [vmem:[#allocation51_spill] sm:$0xff] %v8375_v60  ;;  %v8386_v3 = vpop.permute.xlu0 %4920  ;;  %v5334_v42 = vpack.i.bf16 %v2635_v24, %v2634_v21  ;;  %v2764_v24 = vsel %vm438_vm3, %v5008_v41, %v5047_v27 }
 0x551   : > { %5265 = vrot.lane.b32.xlu2 %v8393_v15, %s5799_s12  ;;  %5225 = vrot.lane.b32.xlu1 %v8395_v61, %s5799_s12 }
 0x552   : > { %5335 = vrot.lane.b32.xlu0 %v5334_v42, %s5801_s14  ;;  %v2765_v42 = vsel %vm438_vm3, %v5047_v27, %v10553_v7 }
 0x553   : > { %v8405_v55 = vpop.permute.xlu2 %5130  ;;  %v8407_v49 = vpop.permute.xlu1 %5075  ;;  %v5374_v12 = vpack.i.bf16 %v2765_v42, %v2764_v24 }
 0x554   : > { %11183 = vst [vmem:[#allocation26_spill] sm:$0xff] %v8405_v55  ;;  %v8412_v32 = vpop.permute.xlu0 %4925 }
 0x559   : > { %5270 = vrot.lane.b32.xlu2 %v8393_v15, %s5798_s11  ;;  %5230 = vrot.lane.b32.xlu1 %v8395_v61, %s5798_s11 }
 0x55a   : > { %5340 = vrot.lane.b32.xlu0 %v5339_v16, %s5801_s14 }
 0x55b   : > { %v8428_v1 = vpop.permute.xlu2 %5135  ;;  %v8430_v43 = vpop.permute.xlu1 %5080 }
 0x55c   : > { %11186 = vst [vmem:[#allocation60_spill] sm:$0xff] %v8428_v1  ;;  %v10551_v30 = vunpack.i.h.bf16 %v8428_v1  ;;  %v8437_v22 = vpop.permute.xlu0 %4930 }
 0x55e   : > { %v8444_v21 = vpack.i.bf16 %v10557_v29, %v10551_v30  ;;  %v4868_v30 = vunpack.i.h.bf16 %v8233_v34 }
 0x560   : > { %11187 = vst [vmem:[#allocation24_spill] sm:$0xff] %v8444_v21  ;;  %v2511_v7 = vsel %vm390_vm7, %v4868_v30, %v10556_v31  ;;  %v2510_v24 = vsel %vm390_vm7, %v4867_v48, %v4868_v30  ;;  %v4872_v31 = vunpack.i.l.bf16 %v8247_v39  ;;  %v4842_v21 = vunpack.i.l.bf16 %v8207_v8 }
 0x561   : > { %5275 = vrot.lane.b32.xlu2 %v8393_v15, %s5800_s13  ;;  %5235 = vrot.lane.b32.xlu1 %v8395_v61, %s5800_s13  ;;  %v5404_v42 = vpack.i.bf16 %v2511_v7, %v2510_v24 }
 0x562   : > { %5375 = vrot.lane.b32.xlu0 %v5374_v12, %s5801_s14  ;;  %v10559_v12 = vunpack.i.l.bf16 %v8377_v28  ;;  %v2574_v7 = vsel %vm402_vm6, %v4872_v31, %v4873_v26 }
 0x563   : > { %v8454_v16 = vpop.permute.xlu2 %5140  ;;  %v8456_v41 = vpop.permute.xlu1 %5085 }
 0x564   : > { %v8461_v27 = vpop.permute.xlu0 %4935  ;;  %v2575_v30 = vsel %vm402_vm6, %v4873_v26, %v10559_v12  ;;  %v4877_v12 = vunpack.i.l.bf16 %v8260_v63 }
 0x565   : > { %11188 = vst [vmem:[#allocation52_spill] sm:$0xff] %v8461_v27  ;;  %v5409_v24 = vpack.i.bf16 %v2575_v30, %v2574_v7 }
 0x566   : > { %v2638_v30 = vsel %vm414_vm5, %v4877_v12, %v4878_v46 }
 0x569   : > { %5280 = vrot.lane.b32.xlu2 %v8393_v15, %s5801_s14  ;;  %5240 = vrot.lane.b32.xlu1 %v8395_v61, %s5801_s14 }
 0x56a   : > { %5405 = vrot.lane.b32.xlu0 %v5404_v42, %s5801_s14  ;;  %v10561_v42 = vunpack.i.l.bf16 %v8407_v49 }
 0x56b   : > { %v8472_v58 = vpop.permute.xlu2 %5185  ;;  %v8474_v34 = vpop.permute.xlu1 %5090 }
 0x56c   : > { %11189 = vst [vmem:[#allocation21_spill] sm:$0xff] %v8472_v58  ;;  %v8479_v48 = vpop.permute.xlu0 %4940  ;;  %v2639_v31 = vsel %vm414_vm5, %v4878_v46, %v10561_v42  ;;  %v4883_v42 = vunpack.i.h.bf16 %v8280_v40  ;;  %v4882_v46 = vunpack.i.l.bf16 %v8280_v40 }
 0x56d   : > { %11190 = vst [vmem:[#allocation64_spill] sm:$0xff] %v8474_v34  ;;  %v5414_v7 = vpack.i.bf16 %v2639_v31, %v2638_v30  ;;  %v11200_v58 = vunpack.i.h.bf16 %v8479_v48 }
 0x56e   : > { %v8524_v31 = vsel %vm426_vm4, %v4882_v46, %v4883_v42  ;;  %v4897_v46 = vunpack.i.l.bf16 %v8309_v33 }
 0x56f   : > { %11196 = vst [vmem:[#allocation48_spill] sm:$0xff] %v8524_v31 }
 0x571   : > { %5285 = vrot.lane.b32.xlu2 %v8393_v15, %s5802_s15  ;;  %5245 = vrot.lane.b32.xlu1 %v8395_v61, %s5802_s15 }
 0x572   : > { %5410 = vrot.lane.b32.xlu0 %v5409_v24, %s5801_s14  ;;  %v8508_v24 = vunpack.i.l.bf16 %v8430_v43 }
 0x573   : > { %v8490_v29 = vpop.permute.xlu2 %5190  ;;  %v8492_v39 = vpop.permute.xlu1 %5095 }
 0x574   : > { %11191 = vst [vmem:[#allocation34_spill] sm:$0xff] %v8490_v29  ;;  %v8497_v26 = vpop.permute.xlu0 %4945  ;;  %v8521_v4 = vsel %vm426_vm4, %v4883_v42, %v8508_v24  ;;  %v10570_v40 = vunpack.i.l.bf16 %v8492_v39  ;;  %v4898_v42 = vunpack.i.h.bf16 %v8309_v33 }
 0x575   : > { %11192 = vst [vmem:[#allocation42_spill] sm:$0xff] %v8492_v39  ;;  %v5419_v30 = vpack.i.bf16 %v8521_v4, %v8524_v31  ;;  %v4988_v31 = vunpack.i.h.bf16 %v8257_v25 }
 0x576   : > { %11193 = vst [vmem:[#allocation19_spill] sm:$0xff] %v8508_v24  ;;  %v2895_v51 = vsel %vm468_vm1, %v4898_v42, %v10570_v40  ;;  %v4942_v40 = vunpack.i.l.bf16 %v8479_v48 }
 0x577   : > { %11195 = vst [vmem:[#allocation16_spill] sm:$0xff] %v8521_v4  ;;  %v2894_v4 = vsel %vm468_vm1, %v4897_v46, %v4898_v42  ;;  %v11198_v42 = vunpack.i.l.bf16 %v8306_v36  ;;  %v5028_v36 = vunpack.i.h.bf16 %v8223_v59 }
 0x578   : > { %v5429_v33 = vpack.i.bf16 %v2895_v51, %v2894_v4  ;;  %v10580_v4 = vunpack.i.l.bf16 %v8490_v29 }
 0x579   : > { %5290 = vrot.lane.b32.xlu2 %v8393_v15, %s5803_s16  ;;  %5250 = vrot.lane.b32.xlu1 %v8395_v61, %s5803_s16  ;;  %v2763_v46 = vsel %vm438_vm3, %v4843_v10, %v11198_v42  ;;  %v11203_v42 = vunpack.i.l.bf16 %v8474_v34 }
 0x57a   : > { %5415 = vrot.lane.b32.xlu0 %v5414_v7, %s5801_s14 }
 0x57b   : > { %v8510_v57 = vpop.permute.xlu2 %5195  ;;  %v8512_v63 = vpop.permute.xlu1 %5100 }
 0x57c   : > { %11194 = vst [vmem:[#allocation77_spill] sm:$0xff] %v8512_v63  ;;  %v8517_v12 = vpop.permute.xlu0 %4950 }
 0x581   : > { %5295 = vrot.lane.b32.xlu2 %v8393_v15, %s5804_s17  ;;  %5255 = vrot.lane.b32.xlu1 %v8395_v61, %s5804_s17  ;;  %s5808_s17 = smov 38  }
 0x582   : > { %5420 = vrot.lane.b32.xlu0 %v5419_v30, %s5801_s14  ;;  %v5027_v30 = vunpack.i.l.bf16 %v8223_v59 }
 0x583   : > { %v8533_v7 = vpop.permute.xlu2 %5200  ;;  %v8535_v13 = vpop.permute.xlu1 %5145 }
 0x584   : > { %v8540_v23 = vpop.permute.xlu0 %4955  ;;  %v2508_v63 = vsel %vm390_vm7, %v4988_v31, %v5027_v30  ;;  %v2762_v31 = vsel %vm438_vm3, %v4842_v21, %v4843_v10 }
 0x585   : > { %11197 = vst [vmem:[#allocation25_spill] sm:$0xff] %v8540_v23  ;;  %v11201_v23 = vunpack.i.l.bf16 %v8257_v25  ;;  %v5344_v59 = vpack.i.bf16 %v2763_v46, %v2762_v31  ;;  %v2509_v25 = vsel %vm390_vm7, %v5027_v30, %v5028_v36 }
 0x586   : > { %v5354_v30 = vpack.i.bf16 %v5028_v36, %v2509_v25  ;;  %v5023_v25 = vunpack.i.h.bf16 %v8334_v18  ;;  %v5003_v18 = vunpack.i.h.bf16 %v8297_v50 }
 0x587   : > { %v5304_v1 = vpack.i.bf16 %v2508_v63, %v11201_v23  ;;  %v5093_v23 = vunpack.i.h.bf16 %v8474_v34  ;;  %v11208_v34 = vunpack.i.h.bf16 %v8405_v55 }
 0x589   : > { %5300 = vrot.lane.b32.xlu2 %v8393_v15, %s5805_s18  ;;  %5260 = vrot.lane.b32.xlu1 %v8395_v61, %s5805_s18  ;;  %v4993_v61 = vunpack.i.h.bf16 %v8271_v35 }
 0x58a   : > { %5430 = vrot.lane.b32.xlu0 %v5429_v33, %s5801_s14  ;;  %v2962_v33 = vsel %vm483_vm0, %v4942_v40, %v11200_v58  ;;  %v5032_v40 = vunpack.i.l.bf16 %v8230_v6 }
 0x58b   : > { %v8560_v8 = vpop.permute.xlu2 %5205  ;;  %v8562_v27 = vpop.permute.xlu1 %5150 }
 0x58c   : > { %v5153_v51 = vunpack.i.h.bf16 %v8562_v27  ;;  %v8570_v2 = vpop.permute.xlu0 %4960  ;;  %v11202_v10 = vunpack.i.l.bf16 %v8562_v27  ;;  %v2572_v63 = vsel %vm402_vm6, %v4993_v61, %v5032_v40 }
 0x58d   : > { %11199 = vst [vmem:[#allocation13_spill] sm:$0xff] %v8570_v2  ;;  %v11204_v2 = vunpack.i.h.bf16 %v8300_v52 }
 0x58e   : > { %v2580_v15 = vsel %vm402_vm6, %v5153_v51, %v10580_v4  ;;  %v4998_v4 = vunpack.i.h.bf16 %v8288_v20 }
 0x58f   : > { %v8585_v21 = vpack.i.bf16 %v2580_v15, %v11202_v10  ;;  %v2831_v58 = vsel %vm11205_vm11, %v11204_v2, %v11203_v42  ;;  %v5132_v2 = vunpack.i.l.bf16 %v8405_v55  ;;  %vm11279_vm11 = vmmov %vm11220_vm2 }
 0x590   : > { %v5434_v29 = vpack.i.bf16 %v2962_v33, %v2831_v58 }
 0x591   : > { %5305 = vrot.lane.b32.xlu1 %v5304_v1, %s5801_s14  ;;  %5345 = vrot.lane.b32.xlu2 %v5344_v59, %s5801_s14  ;;  %v10582_v1 = vunpack.i.l.bf16 %v8510_v57  ;;  %v2832_v61 = vsel %vm11206_vm12, %v5093_v23, %v5132_v2  ;;  %v5033_v59 = vunpack.i.h.bf16 %v8230_v6  ;;  %v2833_v36 = vsel %vm11209_vm15, %v5132_v2, %v11208_v34  ;;  %vm11281_vm12 = vmmov %vm11220_vm2 }
 0x592   : > { %5435 = vrot.lane.b32.xlu0 %v5434_v29, %s5801_s14  ;;  %v11207_v29 = vunpack.i.l.bf16 %v8271_v35  ;;  %v5037_v23 = vunpack.i.l.bf16 %v8244_v44  ;;  %v5469_v6 = vpack.i.bf16 %v2833_v36, %v2832_v61  ;;  %v10589_v35 = vunpack.i.l.bf16 %v8535_v13  ;;  %vm11287_vm15 = vmmov %vm11220_vm2 }
 0x593   : > { %v8599_v15 = vpop.permute.xlu2 %5210  ;;  %v8601_v51 = vpop.permute.xlu1 %5155 }
 0x594   : > { %v5158_v31 = vunpack.i.h.bf16 %v8601_v51  ;;  %v10583_v42 = vunpack.i.l.bf16 %v8601_v51  ;;  %v8608_v33 = vpop.permute.xlu0 %4965  ;;  %v5309_v58 = vpack.i.bf16 %v2572_v63, %v11207_v29  ;;  %v2573_v63 = vsel %vm402_vm6, %v5032_v40, %v5033_v59 }
 0x595   : > { %v4908_v29 = vunpack.i.h.bf16 %v8327_v54  ;;  %v5359_v55 = vpack.i.bf16 %v5033_v59, %v2573_v63  ;;  %v5207_v63 = vunpack.i.l.bf16 %v8560_v8 }
 0x596   : > { %v2644_v10 = vsel %vm414_vm5, %v5158_v31, %v10582_v1  ;;  %v2636_v31 = vsel %vm414_vm5, %v4998_v4, %v5037_v23  ;;  %v5038_v1 = vunpack.i.h.bf16 %v8244_v44 }
 0x597   : > { %v8620_v46 = vpack.i.bf16 %v2644_v10, %v10583_v42  ;;  %v10585_v10 = vunpack.i.l.bf16 %v8304_v45  ;;  %v5042_v45 = vunpack.i.l.bf16 %v8255_v9 }
 0x598   : > { %v2637_v59 = vsel %vm414_vm5, %v5037_v23, %v5038_v1 }
 0x599   : > { %5310 = vrot.lane.b32.xlu1 %v5309_v58, %s5801_s14  ;;  %5355 = vrot.lane.b32.xlu2 %v5354_v30, %s5801_s14  ;;  %v4907_v58 = vunpack.i.l.bf16 %v8327_v54  ;;  %v10590_v30 = vunpack.i.l.bf16 %v8533_v7  ;;  %v2956_v4 = vsel %vm483_vm0, %v5023_v25, %v10585_v10  ;;  %v11212_v25 = vunpack.i.l.bf16 %v8288_v20 }
 0x59a   : > { %5470 = vrot.lane.b32.xlu0 %v5469_v6, %s5801_s14  ;;  %v2515_v6 = vsel %vm390_vm7, %v4908_v29, %v10589_v35  ;;  %v10591_v35 = vunpack.i.h.bf16 %v8454_v16  ;;  %v10595_v20 = vunpack.i.h.bf16 %v8560_v8  ;;  %v8674_v50 = vsel %vm426_vm4, %v5003_v18, %v5042_v45 }
 0x59b   : > { %v8634_v34 = vpop.permute.xlu2 %5215  ;;  %v8636_v2 = vpop.permute.xlu1 %5160  ;;  %v5314_v10 = vpack.i.bf16 %v2636_v31, %v11212_v25  ;;  %v2514_v44 = vsel %vm390_vm7, %v4907_v58, %v4908_v29  ;;  %11213 = vst [vmem:[#allocation30_spill] sm:$0xff] %v8674_v50 }
 0x59c   : > { %v10593_v61 = vunpack.i.h.bf16 %v8634_v34  ;;  %v5163_v40 = vunpack.i.h.bf16 %v8636_v2  ;;  %v8646_v36 = vpop.permute.xlu0 %4970 }
 0x59e   : > { %v8654_v54 = vpack.i.bf16 %v2956_v4, %v10593_v61  ;;  %v8659_v42 = vsel %vm426_vm4, %v5163_v40, %v10590_v30  ;;  %v10592_v4 = vunpack.i.l.bf16 %v8454_v16  ;;  %v5494_v40 = vpack.i.bf16 %v2515_v6, %v2514_v44 }
 0x59f   : > { %11211 = vst [vmem:[#allocation12_spill] sm:$0xff] %v8659_v42  ;;  %v5364_v6 = vpack.i.bf16 %v5038_v1, %v2637_v59  ;;  %v8695_v44 = vsel %vm438_vm3, %v5207_v63, %v10595_v20  ;;  %v8708_v59 = vunpack.i.h.bf16 %v8255_v9  ;;  %v4852_v9 = vunpack.i.l.bf16 %v8219_v5 }
 0x5a0   : > { %11210 = vst [vmem:[#allocation75_spill] sm:$0xff] %v8654_v54  ;;  %v2961_v18 = vsel %vm483_vm0, %v10592_v4, %v10591_v35  ;;  %v10594_v35 = vunpack.i.l.bf16 %v8324_v19  ;;  %v4918_v61 = vunpack.i.h.bf16 %v8357_v53  ;;  %v5112_v54 = vunpack.i.l.bf16 %v8322_v11 }
 0x5a1   : > { %5315 = vrot.lane.b32.xlu1 %v5314_v10, %s5801_s14  ;;  %5360 = vrot.lane.b32.xlu2 %v5359_v55, %s5801_s14  ;;  %v4913_v10 = vunpack.i.h.bf16 %v8339_v56  ;;  %v4912_v55 = vunpack.i.l.bf16 %v8339_v56  ;;  %v11215_v56 = vunpack.i.l.bf16 %v8562_v27  ;;  %11216 = vst [vmem:[#allocation63_spill] sm:$0xff] %v8708_v59  ;;  %v5319_v27 = vpack.i.bf16 %v8674_v50, %v8403_v17 }
 0x5a2   : > { %5495 = vrot.lane.b32.xlu0 %v5494_v40, %s5801_s14 }
 0x5a3   : > { %v8676_v31 = vpop.permute.xlu2 %5220  ;;  %v8678_v29 = vpop.permute.xlu1 %5165  ;;  %v2579_v40 = vsel %vm402_vm6, %v4913_v10, %v11215_v56  ;;  %v2578_v56 = vsel %vm402_vm6, %v4912_v55, %v4913_v10  ;;  %v4917_v10 = vunpack.i.l.bf16 %v8357_v53  ;;  %v11218_v53 = vunpack.i.l.bf16 %v8601_v51 }
 0x5a4   : > { %11214 = vst [vmem:[#allocation9_spill] sm:$0xff] %v8676_v31  ;;  %v5168_v58 = vunpack.i.h.bf16 %v8678_v29  ;;  %v10596_v23 = vunpack.i.l.bf16 %v8678_v29  ;;  %v8690_v25 = vpop.permute.xlu0 %4975  ;;  %v5018_v51 = vunpack.i.h.bf16 %v8324_v19 }
 0x5a5   : > { %v2643_v20 = vsel %vm414_vm5, %v4918_v61, %v11218_v53  ;;  %v2642_v53 = vsel %vm414_vm5, %v4917_v10, %v4918_v61  ;;  %v4922_v10 = vunpack.i.l.bf16 %v8386_v3 }
 0x5a6   : > { %v8701_v30 = vsel %vm438_vm3, %v5168_v58, %v5207_v63  ;;  %v8705_v1 = vpack.i.bf16 %v10596_v23, %v2961_v18  ;;  %v4853_v63 = vunpack.i.h.bf16 %v8219_v5  ;;  %v5499_v58 = vpack.i.bf16 %v2579_v40, %v2578_v56 }
 0x5a7   : > { %v8722_v18 = vsel %vm426_vm4, %v5042_v45, %v8708_v59  ;;  %v10600_v5 = vunpack.i.h.bf16 %v8437_v22  ;;  %v5504_v50 = vpack.i.bf16 %v2643_v20, %v2642_v53  ;;  %v4923_v20 = vunpack.i.h.bf16 %v8386_v3 }
 0x5a8   : > { %11217 = vst [vmem:[#allocation73_spill] sm:$0xff] %v8722_v18  ;;  %v2891_v4 = vsel %vm468_vm1, %v4853_v63, %v10594_v35  ;;  %v2890_v35 = vsel %vm468_vm1, %v4852_v9, %v4853_v63  ;;  %v5369_v63 = vpack.i.bf16 %v8708_v59, %v8722_v18  ;;  %v5068_v9 = vunpack.i.h.bf16 %v8350_v0 }
 0x5a9   : > { %5320 = vrot.lane.b32.xlu1 %v5319_v27, %s5801_s14  ;;  %5365 = vrot.lane.b32.xlu2 %v5364_v6, %s5801_s14  ;;  %v10601_v6 = vunpack.i.l.bf16 %v8599_v15  ;;  %v5349_v17 = vpack.i.bf16 %v2891_v4, %v2890_v35  ;;  %v5107_v35 = vunpack.i.l.bf16 %v8313_v38  ;;  %v8767_v4 = vunpack.i.l.bf16 %v8636_v2 }
 0x5aa   : > { %5500 = vrot.lane.b32.xlu0 %v5499_v58, %s5801_s14  ;;  %v5108_v53 = vunpack.i.h.bf16 %v8313_v38  ;;  %v8792_v3 = vsel %vm426_vm4, %v4922_v10, %v4923_v20  ;;  %v4928_v10 = vunpack.i.h.bf16 %v8412_v32 }
 0x5ab   : > { %v8729_v55 = vpop.permute.xlu2 %5265  ;;  %v8731_v40 = vpop.permute.xlu1 %5170  ;;  %11221 = vst [vmem:[#allocation78_spill] sm:$0xff] %v8767_v4  ;;  %v8786_v59 = vsel %vm426_vm4, %v4923_v20, %v8767_v4 }
 0x5ac   : > { %v5173_v45 = vunpack.i.h.bf16 %v8731_v40  ;;  %v10599_v27 = vunpack.i.l.bf16 %v8731_v40  ;;  %v8738_v56 = vpop.permute.xlu0 %4980  ;;  %11223 = vst [vmem:[#allocation74_spill] sm:$0xff] %v8786_v59  ;;  %v2513_v38 = vsel %vm390_vm7, %v5107_v35, %v5108_v53 }
 0x5ad   : > { %11225 = vst [vmem:[#allocation59_spill] sm:$0xff] %v8792_v3 }
 0x5ae   : > { %v8747_v58 = vsel %vm11219_vm14, %v5173_v45, %v10601_v6  ;;  %v8754_v23 = vsel %vm11220_vm2, %v10600_v5, %v10599_v27  ;;  %v10604_v45 = vunpack.i.h.bf16 %v8295_v47  ;;  %v5057_v27 = vunpack.i.l.bf16 %v8295_v47 }
 0x5af   : > { %vm4060_vm14 = vcmask 240640  }
 0x5b0   : > { %v2892_v61 = vsel %vm468_vm1, %v5018_v51, %v5057_v27  ;;  %v2893_v2 = vsel %vm468_vm1, %v5057_v27, %v10604_v45  ;;  %v5509_v27 = vpack.i.bf16 %v8786_v59, %v8792_v3  ;;  %v5113_v45 = vunpack.i.h.bf16 %v8322_v11 }
 0x5b1   : > { %5350 = vrot.lane.b32.xlu1 %v5349_v17, %s5801_s14  ;;  %5370 = vrot.lane.b32.xlu2 %v5369_v63, %s5801_s14  ;;  %v2512_v17 = vsel %vm390_vm7, %v5068_v9, %v5107_v35  ;;  %v5073_v9 = vunpack.i.h.bf16 %v8377_v28  ;;  %v5379_v18 = vpack.i.bf16 %v2893_v2, %v2892_v61 }
 0x5b2   : > { %5505 = vrot.lane.b32.xlu0 %v5504_v50, %s5801_s14  ;;  %v11224_v50 = vunpack.i.l.bf16 %v8350_v0 }
 0x5b3   : > { %v8769_v5 = vpop.permute.xlu2 %5270  ;;  %v8771_v6 = vpop.permute.xlu1 %5175  ;;  %v2576_v61 = vsel %vm402_vm6, %v5073_v9, %v5112_v54  ;;  %v11228_v9 = vunpack.i.h.bf16 %v8676_v31 }
 0x5b4   : > { %11222 = vst [vmem:[#allocation20_spill] sm:$0xff] %v8771_v6  ;;  %v8778_v63 = vpop.permute.xlu0 %5325  ;;  %v5384_v51 = vpack.i.bf16 %v2512_v17, %v11224_v50  ;;  %v5222_v17 = vunpack.i.l.bf16 %v8676_v31  ;;  %v4927_v50 = vunpack.i.l.bf16 %v8412_v32  ;;  %v5078_v31 = vunpack.i.h.bf16 %v8407_v49 }
 0x5b6   : > { %v8818_v3 = vsel %vm483_vm0, %v5222_v17, %v11228_v9 }
 0x5b9   : > { %5385 = vrot.lane.b32.xlu1 %v5384_v51, %s5801_s14  ;;  %5380 = vrot.lane.b32.xlu2 %v5379_v18, %s5801_s14  ;;  %v5439_v51 = vpack.i.bf16 %v5108_v53, %v2513_v38  ;;  %v11230_v53 = vunpack.i.h.bf16 %v8479_v48  ;;  %v11231_v38 = vunpack.i.l.bf16 %v8377_v28  ;;  %v5178_v28 = vunpack.i.h.bf16 %v8771_v6 }
 0x5ba   : > { %5510 = vrot.lane.b32.xlu0 %v5509_v27, %s5801_s14  ;;  %v11229_v27 = vunpack.i.l.bf16 %v8678_v29  ;;  %v11232_v29 = vunpack.i.h.bf16 %v8560_v8  ;;  %v2577_v48 = vsel %vm402_vm6, %v5112_v54, %v5113_v45 }
 0x5bb   : > { %v8803_v2 = vpop.permute.xlu2 %5275  ;;  %v8805_v20 = vpop.permute.xlu1 %5180 }
 0x5bc   : > { %11226 = vst [vmem:[#allocation8_spill] sm:$0xff] %v8805_v20  ;;  %v5183_v18 = vunpack.i.h.bf16 %v8805_v20  ;;  %v10610_v35 = vunpack.i.l.bf16 %v8805_v20  ;;  %v8813_v0 = vpop.permute.xlu0 %5330  ;;  %v2771_v59 = vsel %vm438_vm3, %v4928_v10, %v11229_v27 }
 0x5bd   : > { %11227 = vst [vmem:[#allocation49_spill] sm:$0xff] %v8813_v0  ;;  %v5389_v0 = vpack.i.bf16 %v2576_v61, %v11231_v38 }
 0x5be   : > { %v8824_v32 = vsel %vm483_vm0, %v5183_v18, %v5222_v17  ;;  %v2963_v11 = vsel %vm483_vm0, %v11230_v53, %v10610_v35  ;;  %v2770_v17 = vsel %vm438_vm3, %v4927_v50, %v4928_v10  ;;  %v5117_v18 = vunpack.i.l.bf16 %v8332_v62 }
 0x5bf   : > { %v8838_v27 = vpack.i.bf16 %v11232_v29, %v2963_v11  ;;  %v5514_v20 = vpack.i.bf16 %v2771_v59, %v2770_v17  ;;  %v5217_v10 = vunpack.i.l.bf16 %v8634_v34  ;;  %v10612_v50 = vunpack.i.l.bf16 %v8729_v55 }
 0x5c0   : > { %v2640_v61 = vsel %vm414_vm5, %v5078_v31, %v5117_v18  ;;  %v5118_v31 = vunpack.i.h.bf16 %v8332_v62  ;;  %v11234_v29 = vunpack.i.l.bf16 %v8407_v49  ;;  %v5083_v17 = vunpack.i.h.bf16 %v8430_v43 }
 0x5c1   : > { %5390 = vrot.lane.b32.xlu1 %v5389_v0, %s5801_s14  ;;  %5440 = vrot.lane.b32.xlu2 %v5439_v51, %s5801_s14  ;;  %v5444_v51 = vpack.i.bf16 %v5113_v45, %v2577_v48  ;;  %v2900_v38 = vsel %vm468_vm1, %v5178_v28, %v5217_v10  ;;  %v5122_v45 = vunpack.i.l.bf16 %v8348_v14  ;;  %v4948_v43 = vunpack.i.h.bf16 %v8497_v26 }
 0x5c2   : > { %5515 = vrot.lane.b32.xlu0 %v5514_v20, %s5801_s14  ;;  %v5394_v20 = vpack.i.bf16 %v2640_v61, %v11234_v29  ;;  %v2641_v62 = vsel %vm414_vm5, %v5117_v18, %v5118_v31  ;;  %v8887_v29 = vunpack.i.h.bf16 %v8348_v14 }
 0x5c3   : > { %v8847_v53 = vpop.permute.xlu2 %5280  ;;  %v5226_v8 = vpop.permute.xlu1 %5225  ;;  %v8872_v49 = vsel %vm426_vm4, %v5083_v17, %v5122_v45 }
 0x5c4   : > { %v5228_v59 = vunpack.i.h.bf16 %v5226_v8  ;;  %v5227_v11 = vunpack.i.l.bf16 %v5226_v8  ;;  %v8852_v0 = vpop.permute.xlu0 %5335  ;;  %v11235_v8 = vunpack.i.h.bf16 %v8634_v34  ;;  %11236 = vst [vmem:[#allocation62_spill] sm:$0xff] %v8872_v49  ;;  %v4947_v34 = vunpack.i.l.bf16 %v8497_v26 }
 0x5c5   : > { %11233 = vst [vmem:[#allocation6_spill] sm:$0xff] %v8852_v0  ;;  %v5399_v26 = vpack.i.bf16 %v8872_v49, %v8508_v24  ;;  %v8901_v14 = vsel %vm426_vm4, %v5122_v45, %v8887_v29 }
 0x5c6   : > { %v2520_v54 = vsel %vm390_vm7, %v5228_v59, %v10612_v50  ;;  %v2901_v9 = vsel %vm468_vm1, %v5217_v10, %v11235_v8  ;;  %v2519_v18 = vsel %vm390_vm7, %v4948_v43, %v5227_v11  ;;  %11238 = vst [vmem:[#allocation79_spill] sm:$0xff] %v8887_v29  ;;  %v2518_v8 = vsel %vm390_vm7, %v4947_v34, %v4948_v43 }
 0x5c7   : > { %v8862_v35 = vpack.i.bf16 %v2520_v54, %v5227_v11  ;;  %v5554_v28 = vpack.i.bf16 %v2901_v9, %v2900_v38  ;;  %v10611_v9 = vunpack.i.l.bf16 %v8769_v5  ;;  %v4887_v11 = vunpack.i.l.bf16 %v8291_v37  ;;  %11239 = vst [vmem:[#allocation31_spill] sm:$0xff] %v8901_v14 }
 0x5c9   : > { %5395 = vrot.lane.b32.xlu1 %v5394_v20, %s5801_s14  ;;  %5445 = vrot.lane.b32.xlu2 %v5444_v51, %s5801_s14  ;;  %v5449_v51 = vpack.i.bf16 %v5118_v31, %v2641_v62  ;;  %v10613_v20 = vunpack.i.l.bf16 %v8456_v41  ;;  %v4888_v31 = vunpack.i.h.bf16 %v8291_v37 }
 0x5ca   : > { %5555 = vrot.lane.b32.xlu0 %v5554_v28, %s5801_s14  ;;  %v5594_v28 = vpack.i.bf16 %v2519_v18, %v2518_v8 }
 0x5cb   : > { %v8875_v48 = vpop.permute.xlu2 %5285  ;;  %v5231_v61 = vpop.permute.xlu1 %5230  ;;  %v2767_v62 = vsel %vm438_vm3, %v4888_v31, %v10613_v20  ;;  %v2766_v45 = vsel %vm438_vm3, %v4887_v11, %v4888_v31  ;;  %v10620_v31 = vunpack.i.h.bf16 %v8375_v60  ;;  %v11241_v11 = vld [vmem:[#allocation60_spill] sm:$0xff] }
 0x5cc   : > { %v5233_v10 = vunpack.i.h.bf16 %v5231_v61  ;;  %v5232_v59 = vunpack.i.l.bf16 %v5231_v61  ;;  %v8880_v38 = vpop.permute.xlu0 %5340  ;;  %v4953_v61 = vunpack.i.h.bf16 %v8517_v12  ;;  %v5137_v24 = vunpack.i.l.bf16 %v11241_v11 }
 0x5cd   : > { %11237 = vst [vmem:[#allocation41_spill] sm:$0xff] %v8880_v38 }
 0x5ce   : > { %v2584_v54 = vsel %vm402_vm6, %v5233_v10, %v10611_v9  ;;  %v4952_v10 = vunpack.i.l.bf16 %v8517_v12  ;;  %v5454_v9 = vpack.i.bf16 %v8887_v29, %v8901_v14  ;;  %v5098_v12 = vunpack.i.h.bf16 %v8492_v39 }
 0x5cf   : > { %v8890_v17 = vpack.i.bf16 %v2584_v54, %v5232_v59  ;;  %v11247_v39 = vunpack.i.l.bf16 %v8535_v13 }
 0x5d0   : > { %v2582_v20 = vsel %vm402_vm6, %v4952_v10, %v4953_v61 }
 0x5d1   : > { %5400 = vrot.lane.b32.xlu1 %v5399_v26, %s5801_s14  ;;  %5450 = vrot.lane.b32.xlu2 %v5449_v51, %s5801_s14  ;;  %v10616_v51 = vunpack.i.l.bf16 %v8803_v2  ;;  %v2583_v26 = vsel %vm402_vm6, %v4953_v61, %v5232_v59  ;;  %v5127_v59 = vunpack.i.l.bf16 %v8375_v60 }
 0x5d2   : > { %5595 = vrot.lane.b32.xlu0 %v5594_v28, %s5801_s14  ;;  %v5088_v28 = vunpack.i.h.bf16 %v8456_v41 }
 0x5d3   : > { %v8907_v43 = vpop.permute.xlu2 %5290  ;;  %v5236_v34 = vpop.permute.xlu1 %5235 }
 0x5d4   : > { %v5238_v37 = vunpack.i.h.bf16 %v5236_v34  ;;  %v5237_v18 = vunpack.i.l.bf16 %v5236_v34  ;;  %v8912_v54 = vpop.permute.xlu0 %5375  ;;  %v5424_v34 = vpack.i.bf16 %v2767_v62, %v2766_v45  ;;  %v10625_v45 = vunpack.i.l.bf16 %v8847_v53 }
 0x5d5   : > { %11240 = vst [vmem:[#allocation80_spill] sm:$0xff] %v8912_v54  ;;  %v5599_v54 = vpack.i.bf16 %v2583_v26, %v2582_v20 }
 0x5d6   : > { %v2648_v8 = vsel %vm414_vm5, %v5238_v37, %v10616_v51  ;;  %v2768_v37 = vsel %vm438_vm3, %v5088_v28, %v5127_v59  ;;  %v2896_v51 = vsel %vm468_vm1, %v5098_v12, %v5137_v24  ;;  %v2769_v28 = vsel %vm438_vm3, %v5127_v59, %v10620_v31 }
 0x5d7   : > { %v8923_v50 = vpack.i.bf16 %v2648_v8, %v5237_v18  ;;  %v11242_v8 = vld [vmem:[#allocation25_spill] sm:$0xff]  ;;  %v5148_v59 = vunpack.i.h.bf16 %v8535_v13 }
 0x5d8   : > { %v4958_v29 = vunpack.i.h.bf16 %v11242_v8  ;;  %v4957_v62 = vunpack.i.l.bf16 %v11242_v8 }
 0x5d9   : > { %5425 = vrot.lane.b32.xlu1 %v5424_v34, %s5801_s14  ;;  %5455 = vrot.lane.b32.xlu2 %v5454_v9, %s5801_s14  ;;  %v11243_v34 = vunpack.i.h.bf16 %v11241_v11  ;;  %v5459_v11 = vpack.i.bf16 %v2769_v28, %v2768_v37 }
 0x5da   : > { %5600 = vrot.lane.b32.xlu0 %v5599_v54, %s5801_s14  ;;  %v2647_v0 = vsel %vm414_vm5, %v4958_v29, %v5237_v18  ;;  %v10626_v18 = vunpack.i.l.bf16 %v8771_v6 }
 0x5db   : > { %v8935_v61 = vpop.permute.xlu2 %5295  ;;  %v5241_v10 = vpop.permute.xlu1 %5240  ;;  %v2897_v8 = vsel %vm468_vm1, %v5137_v24, %v11243_v34  ;;  %v2646_v24 = vsel %vm414_vm5, %v4957_v62, %v4958_v29  ;;  %v11244_v34 = vld [vmem:[#allocation21_spill] sm:$0xff]  ;;  %v4968_v29 = vunpack.i.h.bf16 %v8608_v33 }
 0x5dc   : > { %v10623_v20 = vunpack.i.h.bf16 %v8935_v61  ;;  %v10624_v26 = vunpack.i.l.bf16 %v8935_v61  ;;  %v5243_v9 = vunpack.i.h.bf16 %v5241_v10  ;;  %v8944_v12 = vpop.permute.xlu0 %5405  ;;  %v5464_v31 = vpack.i.bf16 %v2897_v8, %v2896_v51 }
 0x5dd   : > { %v5187_v14 = vunpack.i.l.bf16 %v11244_v34  ;;  %v5604_v47 = vpack.i.bf16 %v2647_v0, %v2646_v24  ;;  %v5287_v51 = vunpack.i.l.bf16 %v8875_v48  ;;  %v4967_v0 = vunpack.i.l.bf16 %v8608_v33 }
 0x5de   : > { %v8955_v54 = vsel %vm468_vm1, %v10624_v26, %v10623_v20  ;;  %v8960_v49 = vsel %vm426_vm4, %v5243_v9, %v10625_v45  ;;  %v11245_v20 = vld [vmem:[#allocation52_spill] sm:$0xff]  ;;  %v10630_v45 = vunpack.i.h.bf16 %v8875_v48 }
 0x5df   : > { %v4938_v26 = vunpack.i.h.bf16 %v11245_v20  ;;  %v4937_v9 = vunpack.i.l.bf16 %v11245_v20  ;;  %v2516_v37 = vsel %vm390_vm7, %v5148_v59, %v5187_v14 }
 0x5e0   : > { %v8991_v24 = vsel %vm438_vm3, %v5287_v51, %v10630_v45  ;;  %v5474_v6 = vpack.i.bf16 %v2516_v37, %v11247_v39  ;;  %v10633_v37 = vunpack.i.h.bf16 %v8646_v36 }
 0x5e1   : > { %5465 = vrot.lane.b32.xlu1 %v5464_v31, %s5801_s14  ;;  %5460 = vrot.lane.b32.xlu2 %v5459_v11, %s5801_s14  ;;  %v2899_v31 = vsel %vm468_vm1, %v4938_v26, %v10626_v18  ;;  %v2898_v59 = vsel %vm468_vm1, %v4937_v9, %v4938_v26  ;;  %v5188_v18 = vunpack.i.h.bf16 %v11244_v34  ;;  %v2774_v9 = vsel %vm438_vm3, %v4967_v0, %v4968_v29 }
 0x5e2   : > { %5605 = vrot.lane.b32.xlu0 %v5604_v47, %s5801_s14 }
 0x5e3   : > { %v8974_v62 = vpop.permute.xlu2 %5300  ;;  %v8976_v28 = vpop.permute.xlu1 %5245 }
 0x5e4   : > { %v5248_v20 = vunpack.i.h.bf16 %v8976_v28  ;;  %v10631_v8 = vunpack.i.l.bf16 %v8976_v28  ;;  %v8985_v11 = vpop.permute.xlu0 %5410 }
 0x5e5   : > { %11246 = vst [vmem:[#allocation45_spill] sm:$0xff] %v8985_v11  ;;  %v5519_v11 = vpack.i.bf16 %v2899_v31, %v2898_v59 }
 0x5e6   : > { %v8994_v47 = vsel %vm438_vm3, %v5248_v20, %v5287_v51  ;;  %v2775_v33 = vsel %vm438_vm3, %v4968_v29, %v10631_v8  ;;  %v9007_v51 = vunpack.i.l.bf16 %v5241_v10  ;;  %v2517_v20 = vsel %vm390_vm7, %v5187_v14, %v5188_v18  ;;  %v11249_v8 = vld [vmem:[#allocation13_spill] sm:$0xff]  ;;  %vm11254_vm3 = vmmov %vm11220_vm2 }
 0x5e7   : > { %v5609_v45 = vpack.i.bf16 %v2775_v33, %v2774_v9  ;;  %v4963_v34 = vunpack.i.h.bf16 %v11249_v8  ;;  %v4962_v39 = vunpack.i.l.bf16 %v11249_v8  ;;  %v5293_v29 = vunpack.i.h.bf16 %v8907_v43 }
 0x5e8   : > { %11248 = vst [vmem:[#allocation23_spill] sm:$0xff] %v9007_v51 }
 0x5e9   : > { %5475 = vrot.lane.b32.xlu1 %v5474_v6, %s5801_s14  ;;  %5520 = vrot.lane.b32.xlu2 %v5519_v11, %s5801_s14  ;;  %v9021_v10 = vsel %vm426_vm4, %v4963_v34, %v9007_v51  ;;  %v11255_v11 = vld [vmem:[#allocation34_spill] sm:$0xff]  ;;  %v9034_v33 = vsel %vm426_vm4, %v4962_v39, %v4963_v34  ;;  %v11258_v34 = vld [vmem:[#allocation77_spill] sm:$0xff] }
 0x5ea   : > { %5610 = vrot.lane.b32.xlu0 %v5609_v45, %s5801_s14  ;;  %11252 = vst [vmem:[#allocation81_spill] sm:$0xff] %v9021_v10  ;;  %v5534_v45 = vpack.i.bf16 %v5188_v18, %v2517_v20  ;;  %v5193_v59 = vunpack.i.h.bf16 %v11255_v11  ;;  %v5619_v9 = vpack.i.bf16 %v9021_v10, %v9034_v33  ;;  %v11257_v18 = vunpack.i.l.bf16 %v11255_v11 }
 0x5eb   : > { %v5251_v60 = vpop.permute.xlu1 %5250  ;;  %v9011_v13 = vpop.permute.xlu2 %5345  ;;  %11256 = vst [vmem:[#allocation71_spill] sm:$0xff] %v9034_v33  ;;  %v5103_v39 = vunpack.i.h.bf16 %v11258_v34  ;;  %v11261_v11 = vunpack.i.l.bf16 %v8454_v16  ;;  %v11262_v33 = vunpack.i.h.bf16 %v8935_v61 }
 0x5ec   : > { %11250 = vst [vmem:[#allocation27_spill] sm:$0xff] %v9011_v13  ;;  %v5252_v6 = vunpack.i.l.bf16 %v5251_v60  ;;  %v9017_v0 = vpop.permute.xlu0 %5415  ;;  %v2581_v20 = vsel %vm402_vm6, %v11257_v18, %v5193_v59 }
 0x5ed   : > { %11251 = vst [vmem:[#allocation72_spill] sm:$0xff] %v9017_v0  ;;  %v5539_v13 = vpack.i.bf16 %v5193_v59, %v2581_v20  ;;  %v2960_v18 = vsel %vm483_vm0, %v5103_v39, %v11261_v11  ;;  %v11264_v59 = vld [vmem:[#allocation55_spill] sm:$0xff]  ;;  %v11265_v39 = vunpack.i.l.bf16 %v8510_v57 }
 0x5ee   : > { %v9023_v14 = vpack.i.bf16 %v5252_v6, %v5293_v29  ;;  %v9028_v31 = vsel %vm11254_vm3, %v10633_v37, %v5252_v6  ;;  %v11259_v37 = vunpack.i.l.bf16 %v8935_v61  ;;  %v5664_v10 = vpack.i.bf16 %v2960_v18, %v11262_v33 }
 0x5ef   : > { %v10640_v20 = vunpack.i.h.bf16 %v11264_v59  ;;  %v4902_v0 = vunpack.i.l.bf16 %v11264_v59  ;;  %v4982_v18 = vunpack.i.l.bf16 %v8738_v56 }
 0x5f0   : > { %11253 = vst [vmem:[#allocation82_spill] sm:$0xff] %v9023_v14  ;;  %v5253_v14 = vunpack.i.h.bf16 %v5251_v60  ;;  %v4972_v60 = vunpack.i.l.bf16 %v8646_v36 }
 0x5f1   : > { %5480 = vrot.lane.b32.xlu1 %v8585_v21, %s5801_s14  ;;  %5535 = vrot.lane.b32.xlu2 %v5534_v45, %s5801_s14 }
 0x5f2   : > { %5620 = vrot.lane.b32.xlu0 %v5619_v9, %s5801_s14  ;;  %v5198_v9 = vunpack.i.h.bf16 %v8510_v57 }
 0x5f3   : > { %v9041_v26 = vpop.permute.xlu1 %5255  ;;  %v9043_v6 = vpop.permute.xlu2 %5355 }
 0x5f4   : > { %v5258_v8 = vunpack.i.h.bf16 %v9041_v26  ;;  %v9056_v45 = vpop.permute.xlu0 %5420  ;;  %v2645_v61 = vsel %vm414_vm5, %v11265_v39, %v5198_v9  ;;  %v10641_v33 = vunpack.i.l.bf16 %v9041_v26  ;;  %v5292_v39 = vunpack.i.l.bf16 %v8907_v43 }
 0x5f5   : > { %11260 = vst [vmem:[#allocation61_spill] sm:$0xff] %v9056_v45  ;;  %v5544_v11 = vpack.i.bf16 %v5198_v9, %v2645_v61  ;;  %v9094_v9 = vunpack.i.h.bf16 %v8533_v7  ;;  %v10647_v61 = vunpack.i.h.bf16 %v8778_v63 }
 0x5f6   : > { %v9054_v21 = vsel %vm468_vm1, %v5258_v8, %v11259_v37 }
 0x5f7   : > { %11267 = vst [vmem:[#allocation83_spill] sm:$0xff] %v9094_v9 }
 0x5f9   : > { %5485 = vrot.lane.b32.xlu1 %v8620_v46, %s5801_s14  ;;  %5540 = vrot.lane.b32.xlu2 %v5539_v13, %s5801_s14  ;;  %v5489_v46 = vpack.i.bf16 %v8659_v42, %v8767_v4  ;;  %v10643_v13 = vunpack.i.h.bf16 %v8738_v56  ;;  %v11271_v4 = vunpack.i.l.bf16 %v8533_v7 }
 0x5fa   : > { %5665 = vrot.lane.b32.xlu0 %v5664_v10, %s5801_s14  ;;  %v2958_v10 = vsel %vm483_vm0, %v4902_v0, %v10640_v20 }
 0x5fb   : > { %v9069_v37 = vpop.permute.xlu1 %5260  ;;  %v9071_v8 = vpop.permute.xlu2 %5360  ;;  %v5679_v57 = vpack.i.bf16 %v2958_v10, %v10641_v33  ;;  %v2966_v0 = vsel %vm483_vm0, %v4982_v18, %v10643_v13  ;;  %v9115_v18 = vsel %vm426_vm4, %v11271_v4, %v9094_v9  ;;  %v2841_v13 = vsel %vm11272_vm13, %v5292_v39, %v5293_v29 }
 0x5fc   : > { %11263 = vst [vmem:[#allocation58_spill] sm:$0xff] %v9071_v8  ;;  %v9087_v51 = vpop.permute.xlu0 %5430  ;;  %v11273_v4 = vunpack.i.h.bf16 %v8646_v36 }
 0x5fd   : > { %11266 = vst [vmem:[#allocation46_spill] sm:$0xff] %v9087_v51  ;;  %v5524_v51 = vpack.i.bf16 %v2966_v0, %v8754_v23 }
 0x5fe   : > { %v2838_v29 = vsel %vm11274_vm8, %v4972_v60, %v11273_v4  ;;  %v10653_v60 = vunpack.i.l.bf16 %v9071_v8 }
 0x5ff   : > { %v5699_v42 = vpack.i.bf16 %v2838_v29, %v2841_v13  ;;  %v4932_v13 = vunpack.i.l.bf16 %v8437_v22 }
 0x601   : > { %5490 = vrot.lane.b32.xlu1 %v5489_v46, %s5801_s14  ;;  %5545 = vrot.lane.b32.xlu2 %v5544_v11, %s5801_s14  ;;  %v2840_v11 = vsel %vm11270_vm9, %v5253_v14, %v5292_v39  ;;  %v10648_v46 = vunpack.i.l.bf16 %v9043_v6  ;;  %v5263_v39 = vunpack.i.h.bf16 %v9069_v37 }
 0x602   : > { %5680 = vrot.lane.b32.xlu0 %v5679_v57, %s5801_s14  ;;  %v5559_v7 = vpack.i.bf16 %v2840_v11, %v9115_v18 }
 0x603   : > { %v9102_v20 = vpop.permute.xlu1 %5305  ;;  %v9104_v10 = vpop.permute.xlu2 %5365 }
 0x604   : > { %11268 = vst [vmem:[#allocation84_spill] sm:$0xff] %v9102_v20  ;;  %v5308_v43 = vunpack.i.h.bf16 %v9102_v20  ;;  %v10646_v33 = vunpack.i.l.bf16 %v9102_v20  ;;  %v9141_v23 = vpop.permute.xlu0 %5435 }
 0x605   : > { %11269 = vst [vmem:[#allocation39_spill] sm:$0xff] %v9104_v10 }
 0x606   : > { %v9121_v57 = vsel %vm426_vm4, %v5308_v43, %v10648_v46  ;;  %v9128_v14 = vsel %vm426_vm4, %v10647_v61, %v10646_v33  ;;  %v10652_v43 = vunpack.i.h.bf16 %v8599_v15  ;;  %v10654_v33 = vunpack.i.h.bf16 %v8974_v62  ;;  %11275 = vst [vmem:[#allocation28_spill] sm:$0xff] %v9141_v23 }
 0x607   : > { %v5302_v61 = vunpack.i.l.bf16 %v8974_v62  ;;  %v11280_v46 = vunpack.i.h.bf16 %v8437_v22  ;;  %v10659_v22 = vunpack.i.l.bf16 %v9104_v10 }
 0x609   : > { %5525 = vrot.lane.b32.xlu1 %v5524_v51, %s5801_s14  ;;  %5560 = vrot.lane.b32.xlu2 %v5559_v7, %s5801_s14  ;;  %v2968_v51 = vsel %vm483_vm0, %v5263_v39, %v5302_v61  ;;  %v11278_v7 = vunpack.i.l.bf16 %v8599_v15  ;;  %v2969_v29 = vsel %vm483_vm0, %v5302_v61, %v10654_v33  ;;  %v2834_v20 = vsel %vm11281_vm12, %v4932_v13, %v11280_v46 }
 0x60a   : > { %5700 = vrot.lane.b32.xlu0 %v5699_v42, %s5801_s14  ;;  %v5262_v33 = vunpack.i.l.bf16 %v9069_v37 }
 0x60b   : > { %v9143_v0 = vpop.permute.xlu1 %5310  ;;  %v9145_v36 = vpop.permute.xlu2 %5370  ;;  %v2837_v4 = vsel %vm11279_vm11, %v11278_v7, %v10652_v43  ;;  %v4892_v7 = vunpack.i.l.bf16 %v8300_v52 }
 0x60c   : > { %11276 = vst [vmem:[#allocation22_spill] sm:$0xff] %v9143_v0  ;;  %v5313_v11 = vunpack.i.h.bf16 %v9143_v0  ;;  %v5564_v39 = vpack.i.bf16 %v2968_v51, %v2837_v4  ;;  %v5704_v0 = vpack.i.bf16 %v2834_v20, %v2969_v29  ;;  %v9179_v4 = vpop.permute.xlu0 %5470  ;;  %v11288_v29 = vunpack.i.l.bf16 %v8976_v28 }
 0x60d   : > { %11277 = vst [vmem:[#allocation18_spill] sm:$0xff] %v9145_v36 }
 0x60e   : > { %v9163_v42 = vsel %vm426_vm4, %v5313_v11, %v10653_v60  ;;  %v11284_v11 = vld [vmem:[#allocation66_spill] sm:$0xff]  ;;  %11285 = vst [vmem:[#allocation11_spill] sm:$0xff] %v9179_v4 }
 0x60f   : > { %v10663_v51 = vunpack.i.h.bf16 %v11284_v11 }
 0x611   : > { %5530 = vrot.lane.b32.xlu1 %v8838_v27, %s5801_s14  ;;  %5565 = vrot.lane.b32.xlu2 %v5564_v39, %s5801_s14  ;;  %v11286_v27 = vunpack.i.h.bf16 %v8300_v52  ;;  %v11289_v39 = vunpack.i.l.bf16 %v11284_v11  ;;  %v11290_v52 = vunpack.i.l.bf16 %v8456_v41  ;;  %v10657_v41 = vunpack.i.l.bf16 %v9145_v36  ;;  %v11333_v36 = vld [vmem:[#allocation44_spill] sm:$0xff] }
 0x612   : > { %5705 = vrot.lane.b32.xlu0 %v5704_v0, %s5801_s14 }
 0x613   : > { %v9172_v43 = vpop.permute.xlu1 %5315  ;;  %v9174_v61 = vpop.permute.xlu2 %5380  ;;  %v2830_v46 = vsel %vm11287_vm15, %v4892_v7, %v11286_v27  ;;  %v2957_v60 = vsel %vm483_vm0, %v11289_v39, %v10663_v51  ;;  %v11291_v7 = vpack.i.bf16 %v8695_v44, %v8701_v30  ;;  %v11293_v27 = vunpack.i.h.bf16 %v8738_v56 }
 0x614   : > { %11282 = vst [vmem:[#allocation14_spill] sm:$0xff] %v9172_v43  ;;  %v5318_v20 = vunpack.i.h.bf16 %v9172_v43  ;;  %v5589_v0 = vpack.i.bf16 %v2830_v46, %v11288_v29  ;;  %v5709_v4 = vpack.i.bf16 %v11290_v52, %v2957_v60  ;;  %v10658_v30 = vunpack.i.h.bf16 %v8880_v38  ;;  %v9217_v44 = vpop.permute.xlu0 %5495 }
 0x615   : > { %11283 = vst [vmem:[#allocation43_spill] sm:$0xff] %v9174_v61  ;;  %v2967_v37 = vsel %vm483_vm0, %v11293_v27, %v5262_v33  ;;  %v5268_v39 = vunpack.i.h.bf16 %v8729_v55  ;;  %v11297_v52 = vpack.i.bf16 %v8818_v3, %v8824_v32  ;;  %v11300_v27 = vld [vmem:[#allocation24_spill] sm:$0xff]  ;;  %v11302_v3 = vunpack.i.l.bf16 %v8324_v19 }
 0x616   : > { %v9188_v13 = vsel %vm426_vm4, %v5318_v20, %v10659_v22 }
 0x617   : > { %v5739_v32 = vpack.i.bf16 %v9094_v9, %v11302_v3  ;;  %v5278_v3 = vunpack.i.h.bf16 %v8803_v2  ;;  %v11334_v9 = vld [vmem:[#allocation75_spill] sm:$0xff] }
 0x619   : > { %5550 = vrot.lane.b32.xlu1 %v11291_v7, %s5801_s14  ;;  %5590 = vrot.lane.b32.xlu2 %v5589_v0, %s5801_s14 }
 0x61a   : > { %5710 = vrot.lane.b32.xlu0 %v5709_v4, %s5801_s14  ;;  %v11295_v4 = vunpack.i.h.bf16 %v8875_v48 }
 0x61b   : > { %v9205_v28 = vpop.permute.xlu1 %5320  ;;  %v9207_v20 = vpop.permute.xlu2 %5440 }
 0x61c   : > { %11292 = vst [vmem:[#allocation70_spill] sm:$0xff] %v9205_v28  ;;  %v5323_v60 = vunpack.i.h.bf16 %v9205_v28  ;;  %v10656_v46 = vunpack.i.l.bf16 %v9205_v28  ;;  %v5629_v56 = vpack.i.bf16 %v11295_v4, %v2967_v37  ;;  %v11301_v37 = vunpack.i.l.bf16 %v8729_v55 }
 0x61d   : > { %v10662_v19 = vunpack.i.l.bf16 %v9207_v20 }
 0x61e   : > { %v9222_v29 = vsel %vm426_vm4, %v5323_v60, %v10657_v41  ;;  %v9231_v0 = vsel %vm426_vm4, %v10658_v30, %v10656_v46  ;;  %v2521_v60 = vsel %vm390_vm7, %v11301_v37, %v5268_v39  ;;  %v5273_v46 = vunpack.i.h.bf16 %v8769_v5  ;;  %v9249_v41 = vpop.permute.xlu0 %5500 }
 0x61f   : > { %11294 = vst [vmem:[#allocation67_spill] sm:$0xff] %v9222_v29  ;;  %v5634_v4 = vpack.i.bf16 %v5268_v39, %v2521_v60  ;;  %v11335_v29 = vld [vmem:[#allocation56_spill] sm:$0xff] }
 0x620   : > { %11296 = vst [vmem:[#allocation85_spill] sm:$0xff] %v9231_v0 }
 0x621   : > { %5570 = vrot.lane.b32.xlu1 %v11297_v52, %s5801_s14  ;;  %5630 = vrot.lane.b32.xlu2 %v5629_v56, %s5801_s14  ;;  %v11303_v56 = vunpack.i.l.bf16 %v8769_v5 }
 0x622   : > { %5725 = vrot.lane.b32.xlu0 %v11300_v27, %s5801_s14  ;;  %v10661_v27 = vunpack.i.h.bf16 %v8944_v12 }
 0x623   : > { %v9239_v7 = vpop.permute.xlu1 %5350  ;;  %v9241_v48 = vpop.permute.xlu2 %5445  ;;  %v2585_v55 = vsel %vm402_vm6, %v11303_v56, %v5273_v46 }
 0x624   : > { %11298 = vst [vmem:[#allocation69_spill] sm:$0xff] %v9239_v7 }
 0x625   : > { %11299 = vst [vmem:[#allocation15_spill] sm:$0xff] %v9241_v48 }
 0x629   : > { %5575 = vrot.lane.b32.xlu1 %v8862_v35, %s5801_s14  ;;  %5635 = vrot.lane.b32.xlu2 %v5634_v4, %s5801_s14  ;;  %v5639_v4 = vpack.i.bf16 %v5273_v46, %v2585_v55  ;;  %v11308_v46 = vunpack.i.l.bf16 %v8803_v2  ;;  %v4978_v2 = vunpack.i.h.bf16 %v8690_v25 }
 0x62a   : > { %5740 = vrot.lane.b32.xlu0 %v5739_v32, %s5801_s14  ;;  %v11305_v32 = vunpack.i.l.bf16 %v8731_v40  ;;  %v10664_v40 = vunpack.i.l.bf16 %v9241_v48 }
 0x62b   : > { %v9260_v52 = vpop.permute.xlu1 %5385  ;;  %v9262_v39 = vpop.permute.xlu2 %5450  ;;  %v2649_v55 = vsel %vm414_vm5, %v11308_v46, %v5278_v3 }
 0x62c   : > { %11304 = vst [vmem:[#allocation10_spill] sm:$0xff] %v9260_v52  ;;  %v5388_v37 = vunpack.i.h.bf16 %v9260_v52  ;;  %v10660_v35 = vunpack.i.l.bf16 %v9260_v52  ;;  %v5754_v56 = vpack.i.bf16 %v5262_v33, %v11305_v32  ;;  %v11340_v52 = vld [vmem:[#allocation40_spill] sm:$0xff] }
 0x62d   : > { %v11341_v7 = vunpack.i.h.bf16 %v11340_v52 }
 0x62e   : > { %v9272_v5 = vsel %vm426_vm4, %v5388_v37, %v10662_v19  ;;  %v9279_v60 = vsel %vm426_vm4, %v10661_v27, %v10660_v35  ;;  %v9287_v37 = vpop.permute.xlu0 %5505  ;;  %v5644_v35 = vpack.i.bf16 %v5278_v3, %v2649_v55  ;;  %v11310_v27 = vunpack.i.h.bf16 %v8454_v16 }
 0x62f   : > { %v11312_v3 = vunpack.i.l.bf16 %v9041_v26  ;;  %v11313_v26 = vpack.i.bf16 %v8991_v24, %v8994_v47  ;;  %v11317_v47 = vld [vmem:[#allocation37_spill] sm:$0xff] }
 0x630   : > { %v10671_v0 = vunpack.i.l.bf16 %v11317_v47 }
 0x631   : > { %5580 = vrot.lane.b32.xlu1 %v8890_v17, %s5801_s14  ;;  %5640 = vrot.lane.b32.xlu2 %v5639_v4, %s5801_s14  ;;  %v11309_v4 = vld [vmem:[#allocation68_spill] sm:$0xff]  ;;  %v2903_v16 = vsel %vm468_vm1, %v4978_v2, %v11312_v3 }
 0x632   : > { %5755 = vrot.lane.b32.xlu0 %v5754_v56, %s5801_s14  ;;  %v5053_v32 = vunpack.i.h.bf16 %v11309_v4  ;;  %v4977_v56 = vunpack.i.l.bf16 %v8690_v25 }
 0x633   : > { %v9289_v30 = vpop.permute.xlu1 %5390  ;;  %v9291_v22 = vpop.permute.xlu2 %5455 }
 0x634   : > { %11306 = vst [vmem:[#allocation17_spill] sm:$0xff] %v9289_v30  ;;  %v5393_v33 = vunpack.i.h.bf16 %v9289_v30  ;;  %v5769_v19 = vpack.i.bf16 %v11310_v27, %v5053_v32  ;;  %v10665_v27 = vunpack.i.l.bf16 %v9262_v39 }
 0x635   : > { %11307 = vst [vmem:[#allocation53_spill] sm:$0xff] %v9291_v22 }
 0x636   : > { %v9302_v17 = vsel %vm426_vm4, %v5393_v33, %v10664_v40  ;;  %v9321_v55 = vpop.permute.xlu0 %5510  ;;  %v10666_v40 = vunpack.i.l.bf16 %v9291_v22  ;;  %v5022_v22 = vunpack.i.l.bf16 %v11333_v36 }
 0x639   : > { %5585 = vrot.lane.b32.xlu1 %v8923_v50, %s5801_s14  ;;  %5645 = vrot.lane.b32.xlu2 %v5644_v35, %s5801_s14  ;;  %v2902_v35 = vsel %vm468_vm1, %v4977_v56, %v4978_v2  ;;  %vm11320_vm1 = vmmov %vm11220_vm2 }
 0x63a   : > { %5770 = vrot.lane.b32.xlu0 %v5769_v19, %s5801_s14  ;;  %v5614_v33 = vpack.i.bf16 %v2903_v16, %v2902_v35  ;;  %vm11321_vm5 = vmmov %vm11320_vm1 }
 0x63b   : > { %v9312_v46 = vpop.permute.xlu1 %5395  ;;  %v9314_v51 = vpop.permute.xlu2 %5460  ;;  %vm11326_vm6 = vmmov %vm11320_vm1 }
 0x63c   : > { %11311 = vst [vmem:[#allocation54_spill] sm:$0xff] %v9312_v46  ;;  %v5398_v50 = vunpack.i.h.bf16 %v9312_v46  ;;  %vm11327_vm7 = vmmov %vm11320_vm1 }
 0x63e   : > { %v9328_v25 = vsel %vm426_vm4, %v5398_v50, %v10665_v27  ;;  %v10669_v50 = vunpack.i.h.bf16 %v9056_v45  ;;  %v9343_v16 = vpop.permute.xlu0 %5515  ;;  %v11319_v27 = vpack.i.bf16 %v8955_v54, %v9054_v21  ;;  %v11322_v54 = vld [vmem:[#allocation50_spill] sm:$0xff] }
 0x63f   : > { %v4847_v21 = vunpack.i.l.bf16 %v11322_v54 }
 0x641   : > { %5615 = vrot.lane.b32.xlu1 %v5614_v33, %s5801_s14  ;;  %5650 = vrot.lane.b32.xlu2 %v11313_v26, %s5801_s14  ;;  %v5013_v33 = vunpack.i.h.bf16 %v11317_v47  ;;  %v11318_v26 = vpack.i.bf16 %v8747_v58, %v9028_v31  ;;  %v4848_v31 = vunpack.i.h.bf16 %v11322_v54 }
 0x643   : > { %v9335_v19 = vpop.permute.xlu1 %5400  ;;  %v9337_v3 = vpop.permute.xlu2 %5520 }
 0x644   : > { %11314 = vst [vmem:[#allocation7_spill] sm:$0xff] %v9335_v19  ;;  %v5403_v2 = vunpack.i.h.bf16 %v9335_v19  ;;  %v10668_v56 = vunpack.i.l.bf16 %v9335_v19 }
 0x646   : > { %v9348_v35 = vsel %vm426_vm4, %v5403_v2, %v10666_v40  ;;  %v9355_v24 = vsel %vm426_vm4, %v10669_v50, %v10668_v56  ;;  %v5052_v2 = vunpack.i.l.bf16 %v11309_v4  ;;  %v9374_v58 = vpop.permute.xlu0 %5555  ;;  %v9382_v4 = vunpack.i.h.bf16 %v8847_v53 }
 0x647   : > { %11315 = vst [vmem:[#allocation35_spill] sm:$0xff] %v9348_v35 }
 0x648   : > { %11316 = vst [vmem:[#allocation38_spill] sm:$0xff] %v9355_v24  ;;  %v2828_v56 = vsel %vm11320_vm1, %v5013_v33, %v5052_v2  ;;  %v2829_v50 = vsel %vm11321_vm5, %v5052_v2, %v5053_v32  ;;  %v10672_v33 = vunpack.i.l.bf16 %v11258_v34 }
 0x649   : > { %5625 = vrot.lane.b32.xlu1 %v11318_v26, %s5801_s14  ;;  %5655 = vrot.lane.b32.xlu2 %v11319_v27, %s5801_s14  ;;  %v5659_v19 = vpack.i.bf16 %v2829_v50, %v2828_v56  ;;  %11323 = vst [vmem:[#allocation4_spill] sm:$0xff] %v9382_v4  ;;  %v2827_v56 = vsel %vm11326_vm6, %v4848_v31, %v10671_v0  ;;  %v10682_v0 = vunpack.i.h.bf16 %v9217_v44 }
 0x64a   : > { %v2826_v50 = vsel %vm11327_vm7, %v4847_v21, %v4848_v31  ;;  %v11329_v31 = vunpack.i.h.bf16 %v11264_v59 }
 0x64b   : > { %v9367_v40 = vpop.permute.xlu1 %5425  ;;  %v9369_v28 = vpop.permute.xlu2 %5535  ;;  %v5674_v2 = vpack.i.bf16 %v2827_v56, %v2826_v50 }
 0x64c   : > { %v10678_v56 = vunpack.i.l.bf16 %v9369_v28 }
 0x64e   : > { %v9403_v54 = vpop.permute.xlu0 %5595 }
 0x651   : > { %5670 = vrot.lane.b32.xlu1 %v8705_v1, %s5801_s14  ;;  %5660 = vrot.lane.b32.xlu2 %v5659_v19, %s5801_s14  ;;  %v11328_v1 = vunpack.i.l.bf16 %v8847_v53  ;;  %v2959_v53 = vsel %vm483_vm0, %v11329_v31, %v10672_v33  ;;  %v11331_v31 = vld [vmem:[#allocation51_spill] sm:$0xff] }
 0x652   : > { %v11332_v33 = vunpack.i.h.bf16 %v11331_v31 }
 0x653   : > { %v9384_v27 = vpop.permute.xlu1 %5465  ;;  %v9386_v32 = vpop.permute.xlu2 %5540  ;;  %v9396_v19 = vsel %vm426_vm4, %v11328_v1, %v9382_v4 }
 0x654   : > { %11324 = vst [vmem:[#allocation32_spill] sm:$0xff] %v9384_v27  ;;  %v5684_v26 = vpack.i.bf16 %v9396_v19, %v8960_v49  ;;  %v5689_v24 = vpack.i.bf16 %v11332_v33, %v2959_v53  ;;  %v10689_v33 = vunpack.i.l.bf16 %v9386_v32 }
 0x655   : > { %11325 = vst [vmem:[#allocation2_spill] sm:$0xff] %v9386_v32 }
 0x659   : > { %5685 = vrot.lane.b32.xlu1 %v5684_v26, %s5801_s14  ;;  %5675 = vrot.lane.b32.xlu2 %v5674_v2, %s5801_s14 }
 0x65b   : > { %v9410_v21 = vpop.permute.xlu1 %5475  ;;  %v9412_v1 = vpop.permute.xlu2 %5545 }
 0x65c   : > { %11330 = vst [vmem:[#allocation3_spill] sm:$0xff] %v9410_v21  ;;  %v5478_v50 = vunpack.i.h.bf16 %v9410_v21  ;;  %v10681_v26 = vunpack.i.l.bf16 %v9410_v21 }
 0x65e   : > { %v9421_v2 = vsel %vm426_vm4, %v5478_v50, %v10678_v56  ;;  %v9428_v59 = vsel %vm426_vm4, %v10682_v0, %v10681_v26  ;;  %v4858_v50 = vunpack.i.h.bf16 %v11335_v29  ;;  %v4857_v56 = vunpack.i.l.bf16 %v11335_v29  ;;  %v9443_v0 = vpop.permute.xlu0 %5600  ;;  %v11338_v29 = vld [vmem:[#allocation20_spill] sm:$0xff] }
 0x65f   : > { %v11339_v53 = vunpack.i.l.bf16 %v11338_v29 }
 0x660   : > { %v2955_v26 = vsel %vm483_vm0, %v4858_v50, %v5022_v22 }
 0x661   : > { %5690 = vrot.lane.b32.xlu1 %v5689_v24, %s5801_s14  ;;  %5695 = vrot.lane.b32.xlu2 %v11334_v9, %s5801_s14  ;;  %v2954_v24 = vsel %vm483_vm0, %v4857_v56, %v4858_v50  ;;  %v5719_v61 = vpack.i.bf16 %v11341_v7, %v2955_v26  ;;  %v10692_v56 = vunpack.i.l.bf16 %v9412_v1  ;;  %v11343_v7 = vld [vmem:[#allocation42_spill] sm:$0xff] }
 0x662   : > { %v5714_v31 = vpack.i.bf16 %v2954_v24, %v11339_v53  ;;  %v11344_v52 = vunpack.i.l.bf16 %v11343_v7  ;;  %v11347_v53 = vld [vmem:[#allocation23_spill] sm:$0xff] }
 0x663   : > { %v9438_v38 = vpop.permute.xlu1 %5480  ;;  %v9440_v35 = vpop.permute.xlu2 %5560 }
 0x664   : > { %11336 = vst [vmem:[#allocation5_spill] sm:$0xff] %v9438_v38  ;;  %v5483_v36 = vunpack.i.h.bf16 %v9438_v38  ;;  %v5729_v26 = vpack.i.bf16 %v9382_v4, %v11344_v52 }
 0x665   : > { %11337 = vst [vmem:[#allocation60_spill] sm:$0xff] %v9440_v35 }
 0x666   : > { %v9451_v9 = vsel %vm426_vm4, %v5483_v36, %v10689_v33  ;;  %v9465_v36 = vpop.permute.xlu0 %5605  ;;  %v10699_v33 = vunpack.i.l.bf16 %v9141_v23 }
 0x669   : > { %5715 = vrot.lane.b32.xlu1 %v5714_v31, %s5801_s14  ;;  %5720 = vrot.lane.b32.xlu2 %v5719_v61, %s5801_s14  ;;  %v11345_v61 = vld [vmem:[#allocation65_spill] sm:$0xff] }
 0x66a   : > { %v11346_v29 = vunpack.i.h.bf16 %v11345_v61 }
 0x66b   : > { %v9459_v45 = vpop.permute.xlu1 %5485  ;;  %v9461_v21 = vpop.permute.xlu2 %5565 }
 0x66c   : > { %11342 = vst [vmem:[#allocation25_spill] sm:$0xff] %v9461_v21  ;;  %v5488_v50 = vunpack.i.h.bf16 %v9459_v45  ;;  %v5734_v31 = vpack.i.bf16 %v11347_v53, %v11346_v29  ;;  %v10701_v29 = vunpack.i.h.bf16 %v9321_v55  ;;  %v11353_v53 = vunpack.i.h.bf16 %v8974_v62 }
 0x66e   : > { %v9470_v24 = vsel %vm426_vm4, %v5488_v50, %v10692_v56  ;;  %v10700_v50 = vunpack.i.l.bf16 %v9440_v35  ;;  %v11352_v56 = vunpack.i.h.bf16 %v8599_v15  ;;  %v9511_v35 = vpop.permute.xlu0 %5610 }
 0x670   : > { %v5749_v4 = vpack.i.bf16 %v11353_v53, %v11352_v56 }
 0x671   : > { %5730 = vrot.lane.b32.xlu1 %v5729_v26, %s5801_s14  ;;  %5735 = vrot.lane.b32.xlu2 %v5734_v31, %s5801_s14 }
 0x673   : > { %v9481_v21 = vpop.permute.xlu1 %5490  ;;  %v9483_v27 = vpop.permute.xlu2 %5590 }
 0x674   : > { %11348 = vst [vmem:[#allocation21_spill] sm:$0xff] %v9481_v21  ;;  %v5493_v7 = vunpack.i.h.bf16 %v9481_v21  ;;  %v10698_v52 = vunpack.i.l.bf16 %v9481_v21  ;;  %v5593_v61 = vunpack.i.h.bf16 %v9483_v27  ;;  %v11363_v21 = vld [vmem:[#allocation64_spill] sm:$0xff] }
 0x675   : > { %11349 = vst [vmem:[#allocation52_spill] sm:$0xff] %v9483_v27 }
 0x676   : > { %v9493_v26 = vsel %vm426_vm4, %v5493_v7, %v10700_v50  ;;  %v9498_v31 = vsel %vm426_vm4, %v5593_v61, %v10699_v33  ;;  %v9509_v27 = vsel %vm426_vm4, %v10701_v29, %v10698_v52  ;;  %v11355_v7 = vld [vmem:[#allocation82_spill] sm:$0xff]  ;;  %v11361_v50 = vld [vmem:[#allocation9_spill] sm:$0xff] }
 0x677   : > { %11350 = vst [vmem:[#allocation13_spill] sm:$0xff] %v9493_v26  ;;  %v11359_v52 = vld [vmem:[#allocation26_spill] sm:$0xff]  ;;  %v11362_v29 = vunpack.i.h.bf16 %v11361_v50 }
 0x678   : > { %11351 = vst [vmem:[#allocation34_spill] sm:$0xff] %v9498_v31  ;;  %v11360_v33 = vunpack.i.h.bf16 %v11359_v52  ;;  %v5438_v52 = vunpack.i.h.bf16 %v9141_v23 }
 0x679   : > { %11354 = vst [vmem:[#allocation77_spill] sm:$0xff] %v9509_v27  ;;  %5745 = vrot.lane.b32.xlu1 %v11355_v7, %s5801_s14  ;;  %5750 = vrot.lane.b32.xlu2 %v5749_v4, %s5801_s14  ;;  %v11364_v4 = vunpack.i.l.bf16 %v11363_v21  ;;  %v11365_v27 = vld [vmem:[#allocation8_spill] sm:$0xff] }
 0x67a   : > { %v5759_v7 = vpack.i.bf16 %v11362_v29, %v11360_v33  ;;  %v11366_v31 = vunpack.i.l.bf16 %v11365_v27 }
 0x67b   : > { %v9516_v61 = vpop.permute.xlu1 %5525  ;;  %v9518_v15 = vpop.permute.xlu2 %5630 }
 0x67c   : > { %11356 = vst [vmem:[#allocation55_spill] sm:$0xff] %v9516_v61  ;;  %v5528_v62 = vunpack.i.h.bf16 %v9516_v61  ;;  %v10707_v56 = vunpack.i.l.bf16 %v9518_v15  ;;  %v5764_v26 = vpack.i.bf16 %v11366_v31, %v11364_v4  ;;  %v9537_v61 = vpop.permute.xlu0 %5620  ;;  %v11371_v4 = vunpack.i.l.bf16 %v11258_v34 }
 0x67d   : > { %11357 = vst [vmem:[#allocation66_spill] sm:$0xff] %v9518_v15 }
 0x67e   : > { %v9525_v53 = vsel %vm426_vm4, %v5528_v62, %v10707_v56 }
 0x67f   : > { %11358 = vst [vmem:[#allocation24_spill] sm:$0xff] %v9525_v53  ;;  %v11376_v53 = vunpack.i.l.bf16 %v9369_v28 }
 0x681   : > { %5760 = vrot.lane.b32.xlu1 %v5759_v7, %s5801_s14  ;;  %5765 = vrot.lane.b32.xlu2 %v5764_v26, %s5801_s14  ;;  %v11369_v26 = vunpack.i.h.bf16 %v11284_v11  ;;  %v11370_v7 = vunpack.i.l.bf16 %v11317_v47 }
 0x683   : > { %v9539_v15 = vpop.permute.xlu1 %5530  ;;  %v9541_v62 = vpop.permute.xlu2 %5635  ;;  %v5779_v31 = vpack.i.bf16 %v5022_v22, %v11369_v26  ;;  %v5774_v56 = vpack.i.bf16 %v11371_v4, %v11370_v7  ;;  %v5597_v7 = vunpack.i.l.bf16 %v9403_v54  ;;  %v10726_v4 = vunpack.i.h.bf16 %v9369_v28 }
 0x684   : > { %11367 = vst [vmem:[#allocation68_spill] sm:$0xff] %v9539_v15  ;;  %v10712_v50 = vunpack.i.l.bf16 %v9539_v15  ;;  %v10709_v33 = vunpack.i.h.bf16 %v9541_v62  ;;  %v5637_v21 = vunpack.i.l.bf16 %v9541_v62  ;;  %v9567_v15 = vpop.permute.xlu0 %5665 }
 0x685   : > { %11373 = vst [vmem:[#allocation51_spill] sm:$0xff] %v9567_v15 }
 0x686   : > { %v3386_v27 = vsel %vm426_vm4, %v5637_v21, %v10709_v33  ;;  %v9553_v29 = vsel %vm426_vm4, %v5438_v52, %v10712_v50 }
 0x687   : > { %11368 = vst [vmem:[#allocation37_spill] sm:$0xff] %v9553_v29  ;;  %3817 = vmatpush.msrb.mxu0 %v3386_v27  ;;  %v5598_v27 = vunpack.i.h.bf16 %v9403_v54 }
 0x689   : > { %5775 = vrot.lane.b32.xlu1 %v5774_v56, %s5801_s14  ;;  %5780 = vrot.lane.b32.xlu2 %v5779_v31, %s5801_s14  ;;  %v3383_v54 = vsel %vm426_vm4, %v5597_v7, %v5598_v27  ;;  %v11378_v7 = vunpack.i.h.bf16 %v9217_v44 }
 0x68b   : > { %v9563_v23 = vpop.permute.xlu1 %5550  ;;  %v9565_v33 = vpop.permute.xlu2 %5640 }
 0x68c   : > { %11372 = vst [vmem:[#allocation50_spill] sm:$0xff] %v9565_v33  ;;  %v9575_v47 = vpop.permute.xlu0 %5680 }
 0x68d   : > { %11375 = vst [vmem:[#allocation75_spill] sm:$0xff] %v9575_v47 }
 0x693   : > { %v9569_v52 = vpop.permute.xlu1 %5570  ;;  %v9571_v11 = vpop.permute.xlu2 %5645 }
 0x694   : > { %11374 = vst [vmem:[#allocation44_spill] sm:$0xff] %v9571_v11  ;;  %v10714_v22 = vunpack.i.h.bf16 %v9571_v11  ;;  %v5647_v34 = vunpack.i.l.bf16 %v9571_v11  ;;  %v10725_v11 = vunpack.i.h.bf16 %v9207_v20  ;;  %v9595_v15 = vpop.permute.xlu0 %5700 }
 0x696   : > { %v3418_v56 = vsel %vm426_vm4, %v5647_v34, %v10714_v22  ;;  %v5497_v22 = vunpack.i.l.bf16 %v9217_v44 }
 0x697   : > { %3837 = vmatpush.msrb.mxu1 %v3418_v56 }
 0x69b   : > { %v9581_v26 = vpop.permute.xlu1 %5575  ;;  %v9583_v31 = vpop.permute.xlu2 %5650 }
 0x69c   : > { %v5578_v50 = vunpack.i.h.bf16 %v9581_v26  ;;  %v10717_v29 = vunpack.i.l.bf16 %v9581_v26 }
 0x69e   : > { %v3385_v47 = vsel %vm426_vm4, %v5578_v50, %v5637_v21  ;;  %v3384_v56 = vsel %vm426_vm4, %v5598_v27, %v10717_v29  ;;  %v3382_v50 = vsel %vm426_vm4, %v11376_v53, %v10726_v4  ;;  %v10724_v27 = vunpack.i.h.bf16 %v9043_v6 }
 0x69f   : > { %3717 = vmatpush.msra.mxu2 %v3385_v47  ;;  %3818 = vmatpush.msrb.mxu0 %v3384_v56  ;;  %v5407_v56 = vunpack.i.l.bf16 %v8944_v12  ;;  %v3379_v29 = vsel %vm426_vm4, %v5497_v22, %v11378_v7  ;;  %v11379_v53 = vunpack.i.l.bf16 %v9207_v20  ;;  %v11381_v22 = vunpack.i.l.bf16 %v9043_v6 }
 0x6a0   : > { %v10731_v4 = vunpack.i.h.bf16 %v9563_v23 }
 0x6a1   : > { %3718 = vmatpush.msra.mxu2 %v3383_v54  ;;  %3819 = vmatpush.msrb.mxu0 %v3382_v50  ;;  %v3378_v54 = vsel %vm426_vm4, %v11379_v53, %v10725_v11  ;;  %v3374_v50 = vsel %vm426_vm4, %v11381_v22, %v10724_v27  ;;  %v11383_v22 = vld [vmem:[#allocation81_spill] sm:$0xff] }
 0x6a2   : > { %v11399_v27 = vld [vmem:[#allocation33_spill] sm:$0xff] }
 0x6a3   : > { %v9603_v21 = vpop.permute.xlu1 %5580  ;;  %v9605_v47 = vpop.permute.xlu2 %5655  ;;  %3719 = vmatpush.msra.mxu2 %v9421_v2  ;;  %3820 = vmatpush.msrb.mxu0 %v9428_v59  ;;  %v5327_v2 = vunpack.i.l.bf16 %v8778_v63  ;;  %v11380_v59 = vunpack.i.h.bf16 %v8944_v12  ;;  %v11382_v12 = vunpack.i.h.bf16 %v8778_v63 }
 0x6a4   : > { %11377 = vst [vmem:[#allocation56_spill] sm:$0xff] %v9603_v21 }
 0x6a5   : > { %3720 = vmatpush.msra.mxu2 %v3379_v29  ;;  %3821 = vmatpush.msrb.mxu0 %v3378_v54  ;;  %v3375_v44 = vsel %vm426_vm4, %v5407_v56, %v11380_v59  ;;  %v9630_v29 = vpop.permute.xlu0 %5705  ;;  %v5607_v56 = vunpack.i.l.bf16 %v9465_v36 }
 0x6a7   : > { %3721 = vmatpush.msra.mxu2 %v9272_v5  ;;  %3822 = vmatpush.msrb.mxu0 %v9279_v60  ;;  %v3371_v5 = vsel %vm426_vm4, %v5327_v2, %v11382_v12  ;;  %v5608_v60 = vunpack.i.h.bf16 %v9465_v36  ;;  %v5508_v36 = vunpack.i.h.bf16 %v9287_v37  ;;  %v5507_v2 = vunpack.i.l.bf16 %v9287_v37 }
 0x6a8   : > { %v11385_v12 = vunpack.i.l.bf16 %v9412_v1  ;;  %v10719_v37 = vunpack.i.l.bf16 %v9312_v46 }
 0x6a9   : > { %3722 = vmatpush.msra.mxu2 %v3375_v44  ;;  %3823 = vmatpush.msrb.mxu0 %v3374_v50  ;;  %v10722_v44 = vunpack.i.h.bf16 %v9412_v1  ;;  %v11384_v50 = vld [vmem:[#allocation71_spill] sm:$0xff] }
 0x6ab   : > { %v9632_v7 = vpop.permute.xlu1 %5585  ;;  %v9634_v53 = vpop.permute.xlu2 %5660  ;;  %3723 = vmatpush.msra.mxu2 %v9121_v57  ;;  %3824 = vmatpush.msrb.mxu0 %v9128_v14  ;;  %v10718_v14 = vunpack.i.l.bf16 %v9459_v45 }
 0x6ac   : > { %v5588_v54 = vunpack.i.h.bf16 %v9632_v7  ;;  %v10723_v59 = vunpack.i.l.bf16 %v9632_v7 }
 0x6ad   : > { %3724 = vmatpush.msra.mxu2 %v3371_v5  ;;  %3825 = vmatpush.msrb.mxu0 %v9396_v19  ;;  %v3415_v19 = vsel %vm426_vm4, %v5607_v56, %v5608_v60  ;;  %v3412_v56 = vsel %vm426_vm4, %v5508_v36, %v10718_v14  ;;  %v11391_v14 = vld [vmem:[#allocation31_spill] sm:$0xff] }
 0x6ae   : > { %v3417_v57 = vsel %vm426_vm4, %v5588_v54, %v5647_v34  ;;  %v3416_v63 = vsel %vm426_vm4, %v5608_v60, %v10723_v59  ;;  %v10720_v34 = vunpack.i.h.bf16 %v9262_v39  ;;  %v11386_v60 = vld [vmem:[#allocation12_spill] sm:$0xff]  ;;  %v11398_v59 = vld [vmem:[#allocation30_spill] sm:$0xff] }
 0x6af   : > { %3725 = vmatpush.msra.mxu2 %v8960_v49  ;;  %3737 = vmatpush.msra.mxu3 %v3417_v57  ;;  %v3414_v49 = vsel %vm426_vm4, %v11385_v12, %v10722_v44  ;;  %v11387_v57 = vld [vmem:[#allocation72_spill] sm:$0xff]  ;;  %v3411_v12 = vsel %vm426_vm4, %v5507_v2, %v5508_v36  ;;  %v11392_v36 = vld [vmem:[#allocation62_spill] sm:$0xff] }
 0x6b0   : > { %3826 = vmatpush.msrb.mxu0 %v11383_v22  ;;  %3838 = vmatpush.msrb.mxu1 %v3416_v63  ;;  %v5418_v63 = vunpack.i.h.bf16 %v11387_v57  ;;  %v5417_v22 = vunpack.i.l.bf16 %v11387_v57  ;;  %v357_v57 = vld [vmem:[%s10363_s6] sm:$0xff] }
 0x6b1   : > { %3726 = vmatpush.msra.mxu2 %v11384_v50  ;;  %3738 = vmatpush.msra.mxu3 %v3415_v19  ;;  %v9678_v19 = vpop.permute.xlu0 %5710  ;;  %v11388_v50 = vld [vmem:[#allocation74_spill] sm:$0xff]  ;;  %2973 = vst [vmem:[#allocation1] ss:$2 sm:$0xff] %v357_v57 }
 0x6b2   : > { %3827 = vmatpush.msrb.mxu0 %v9115_v18  ;;  %3839 = vmatpush.msrb.mxu1 %v3414_v49  ;;  %v10721_v18 = vunpack.i.h.bf16 %v9104_v10  ;;  %v11389_v49 = vld [vmem:[#allocation59_spill] sm:$0xff]  ;;  %v3408_v2 = vsel %vm426_vm4, %v5418_v63, %v10719_v37  ;;  %v10732_v37 = vunpack.i.h.bf16 %v9583_v31 }
 0x6b3   : > { %v9666_v5 = vpop.permute.xlu1 %5615  ;;  %v9668_v54 = vpop.permute.xlu2 %5675  ;;  %3727 = vmatpush.msra.mxu2 %v11386_v60  ;;  %3739 = vmatpush.msra.mxu3 %v9470_v24  ;;  %v11390_v24 = vunpack.i.l.bf16 %v9262_v39 }
 0x6b4   : > { %3828 = vmatpush.msrb.mxu0 %v11388_v50  ;;  %3840 = vmatpush.msrb.mxu1 %v3412_v56  ;;  %v10727_v56 = vunpack.i.l.bf16 %v9172_v43  ;;  %v11393_v50 = vld [vmem:[#allocation6_spill] sm:$0xff] }
 0x6b5   : > { %3728 = vmatpush.msra.mxu2 %v11389_v49  ;;  %3740 = vmatpush.msra.mxu3 %v3411_v12  ;;  %v3410_v60 = vsel %vm426_vm4, %v11390_v24, %v10720_v34  ;;  %v5338_v12 = vunpack.i.h.bf16 %v11393_v50  ;;  %v5337_v49 = vunpack.i.l.bf16 %v11393_v50  ;;  %v11394_v24 = vld [vmem:[#allocation16_spill] sm:$0xff]  ;;  %v5652_v34 = vunpack.i.l.bf16 %v9583_v31 }
 0x6b6   : > { %3829 = vmatpush.msrb.mxu0 %v11391_v14  ;;  %3841 = vmatpush.msrb.mxu1 %v3410_v60  ;;  %v3407_v14 = vsel %vm426_vm4, %v5417_v22, %v5418_v63  ;;  %v11395_v60 = vunpack.i.l.bf16 %v9104_v10  ;;  %v11396_v50 = vld [vmem:[#allocation48_spill] sm:$0xff]  ;;  %v11397_v63 = vld [vmem:[#allocation73_spill] sm:$0xff]  ;;  %v10730_v22 = vunpack.i.h.bf16 %v9511_v35  ;;  %v11469_v10 = vld [vmem:[#allocation34_spill] sm:$0xff] }
 0x6b7   : > { %3729 = vmatpush.msra.mxu2 %v11392_v36  ;;  %3741 = vmatpush.msra.mxu3 %v9328_v25  ;;  %v10728_v25 = vunpack.i.h.bf16 %v9565_v33  ;;  %v5642_v36 = vunpack.i.l.bf16 %v9565_v33  ;;  %v3403_v11 = vsel %vm426_vm4, %v5337_v49, %v5338_v12  ;;  %v11453_v33 = vld [vmem:[#allocation4_spill] sm:$0xff] }
 0x6b8   : > { %3830 = vmatpush.msrb.mxu0 %v11394_v24  ;;  %3842 = vmatpush.msrb.mxu1 %v3408_v2  ;;  %v3406_v57 = vsel %vm426_vm4, %v11395_v60, %v10721_v18  ;;  %v5583_v2 = vunpack.i.h.bf16 %v9603_v21  ;;  %v5612_v24 = vunpack.i.l.bf16 %v9511_v35  ;;  %v10729_v60 = vunpack.i.l.bf16 %v9603_v21  ;;  %v11449_v21 = vld [vmem:[#allocation67_spill] sm:$0xff] }
 0x6b9   : > { %3730 = vmatpush.msra.mxu2 %v11396_v50  ;;  %3742 = vmatpush.msra.mxu3 %v3407_v14  ;;  %v3404_v14 = vsel %vm426_vm4, %v5338_v12, %v10727_v56  ;;  %v5602_v50 = vunpack.i.l.bf16 %v9443_v0  ;;  %v3402_v56 = vsel %vm426_vm4, %v5642_v36, %v10728_v25  ;;  %v10734_v12 = vunpack.i.h.bf16 %v9343_v16  ;;  %v9746_v49 = vpop.permute.xlu0 %5725 }
 0x6ba   : > { %3831 = vmatpush.msrb.mxu0 %v11397_v63  ;;  %3843 = vmatpush.msrb.mxu1 %v3406_v57  ;;  %v5603_v57 = vunpack.i.h.bf16 %v9443_v0  ;;  %v3449_v0 = vsel %vm426_vm4, %v5652_v34, %v10732_v37  ;;  %v9740_v63 = vld.sshfl [vmem:[#allocation1] sm:$0xff pattern:$0x75316420]  ;;  %v3447_v25 = vsel %vm426_vm4, %v5612_v24, %v10730_v22  ;;  %v11402_v24 = vunpack.i.l.bf16 %v9386_v32 }
 0x6bb   : > { %v9717_v18 = vpop.permute.xlu1 %5625  ;;  %v9719_v44 = vpop.permute.xlu2 %5695  ;;  %3731 = vmatpush.msra.mxu2 %v11398_v59  ;;  %3743 = vmatpush.msra.mxu3 %v9188_v13  ;;  %v5552_v59 = vunpack.i.l.bf16 %v9563_v23  ;;  %v11400_v13 = vld [vmem:[#allocation76_spill] sm:$0xff] }
 0x6bc   : > { %3832 = vmatpush.msrb.mxu0 %v11399_v27  ;;  %3844 = vmatpush.msrb.mxu1 %v3404_v14  ;;  %v358_v27 = vld [vmem:[%s10363_s6 + $0x8] sm:$0xff]  ;;  %v5517_v14 = vunpack.i.l.bf16 %v9343_v16  ;;  %v3400_v34 = vsel %vm426_vm4, %v5603_v57, %v10729_v60  ;;  %v11401_v60 = vunpack.i.h.bf16 %v9386_v32 }
 0x6bd   : > { %3732 = vmatpush.msra.mxu2 %v11400_v13  ;;  %3744 = vmatpush.msra.mxu3 %v3403_v11  ;;  %v3401_v11 = vsel %vm426_vm4, %v5583_v2, %v5642_v36  ;;  %2975 = vst [vmem:[#allocation1 + $0x10] ss:$2 sm:$0xff] %v358_v27  ;;  %v10733_v13 = vunpack.i.l.bf16 %v9438_v38  ;;  %v5502_v36 = vunpack.i.l.bf16 %v9249_v41  ;;  %v10735_v2 = vunpack.i.h.bf16 %v9241_v48 }
 0x6be   : > { %3845 = vmatpush.msrb.mxu1 %v3402_v56  ;;  %3733 = vmatmul.f32.vlgmr.msra.gmra.mxu2 %v9740_v63  ;;  %v5503_v56 = vunpack.i.h.bf16 %v9249_v41  ;;  %v10736_v27 = vunpack.i.h.bf16 %v9314_v51  ;;  %v3398_v22 = vsel %vm426_vm4, %v11402_v24, %v11401_v60  ;;  %v3445_v41 = vsel %vm426_vm4, %v5552_v59, %v10731_v4  ;;  %v11408_v24 = vld [vmem:[#allocation22_spill] sm:$0xff] }
 0x6bf   : > { %3757 = vmatpush.msrb.mxu2 %v3449_v0  ;;  %3745 = vmatpush.msra.mxu3 %v3401_v11  ;;  %v3399_v0 = vsel %vm426_vm4, %v5602_v50, %v5603_v57  ;;  %v5462_v11 = vunpack.i.l.bf16 %v9314_v51  ;;  %v5427_v50 = vunpack.i.l.bf16 %v9367_v40  ;;  %v3443_v59 = vsel %vm426_vm4, %v5517_v14, %v10734_v12 }
 0x6c0   : > { %3846 = vmatpush.msrb.mxu1 %v3400_v34  ;;  %3833 = vmatmul.f32.vlgmr.msrb.gmra.mxu0 %v9740_v63  ;;  %v3396_v60 = vsel %vm426_vm4, %v5503_v56, %v10733_v13  ;;  %v3395_v57 = vsel %vm426_vm4, %v5502_v36, %v5503_v56  ;;  %v11405_v13 = vunpack.i.l.bf16 %v9241_v48  ;;  %v11407_v56 = vld [vmem:[#allocation27_spill] sm:$0xff]  ;;  %v11412_v36 = vunpack.i.l.bf16 %v9071_v8 }
 0x6c1   : > { %3758 = vmatpush.msrb.mxu2 %v3447_v25  ;;  %3746 = vmatpush.msra.mxu3 %v3399_v0  ;;  %v3441_v12 = vsel %vm426_vm4, %v5462_v11, %v10736_v27  ;;  %v11410_v11 = vunpack.i.h.bf16 %v9367_v40  ;;  %v9813_v48 = vpop.permute.xlu0 %5740  ;;  %v11431_v38 = vunpack.i.h.bf16 %v9207_v20 }
 0x6c2   : > { %3847 = vmatpush.msrb.mxu1 %v3398_v22  ;;  %v11403_v22 = vld [vmem:[#allocation80_spill] sm:$0xff]  ;;  %v3394_v14 = vsel %vm426_vm4, %v11405_v13, %v10735_v2  ;;  %v11409_v13 = vunpack.i.l.bf16 %v9289_v30 }
 0x6c3   : > { %3759 = vmatpush.msrb.mxu2 %v3445_v41  ;;  %v9776_v34 = vpop.permute.xlu1 %5670  ;;  %v9778_v0 = vpop.permute.xlu2 %5720  ;;  %3747 = vmatpush.msra.mxu3 %v9451_v9  ;;  %v11404_v41 = vld [vmem:[#allocation45_spill] sm:$0xff]  ;;  %v5377_v9 = vunpack.i.l.bf16 %v11403_v22  ;;  %v3439_v27 = vsel %vm426_vm4, %v5427_v50, %v11410_v11  ;;  %v11413_v25 = vunpack.i.h.bf16 %v11403_v22 }
 0x6c4   : > { %v5413_v4 = vunpack.i.h.bf16 %v11404_v41  ;;  %v5412_v37 = vunpack.i.l.bf16 %v11404_v41  ;;  %3848 = vmatpush.msrb.mxu1 %v3396_v60  ;;  %v11406_v41 = vld [vmem:[#allocation49_spill] sm:$0xff]  ;;  %v11466_v43 = vunpack.i.l.bf16 %v9776_v34  ;;  %v10757_v46 = vunpack.i.l.bf16 %v9778_v0 }
 0x6c5   : > { %3760 = vmatpush.msrb.mxu2 %v3443_v59  ;;  %3748 = vmatpush.msra.mxu3 %v3395_v57  ;;  %v5333_v60 = vunpack.i.h.bf16 %v11406_v41  ;;  %v5332_v59 = vunpack.i.l.bf16 %v11406_v41  ;;  %v5347_v57 = vunpack.i.l.bf16 %v11407_v56  ;;  %v5657_v41 = vunpack.i.l.bf16 %v9605_v47 }
 0x6c6   : > { %3849 = vmatpush.msrb.mxu1 %v3394_v14  ;;  %v3392_v2 = vsel %vm426_vm4, %v5413_v4, %v11409_v13  ;;  %v3437_v50 = vsel %vm426_vm4, %v5377_v9, %v11413_v25  ;;  %v11414_v25 = vunpack.i.l.bf16 %v11408_v24  ;;  %v5557_v14 = vunpack.i.l.bf16 %v9374_v58  ;;  %v11430_v24 = vld [vmem:[#allocation43_spill] sm:$0xff] }
 0x6c7   : > { %3761 = vmatpush.msrb.mxu2 %v3441_v12  ;;  %3749 = vmatpush.msra.mxu3 %v9302_v17  ;;  %v3391_v12 = vsel %vm426_vm4, %v5412_v37, %v5413_v4  ;;  %v11411_v17 = vunpack.i.h.bf16 %v9071_v8  ;;  %v359_v4 = vld [vmem:[%s10363_s6 + $0x10] sm:$0xf]  ;;  %v5382_v30 = vunpack.i.l.bf16 %v11430_v24  ;;  %v11434_v8 = vld [vmem:[#allocation10_spill] sm:$0xff] }
 0x6c8   : > { %3850 = vmatpush.msrb.mxu1 %v3392_v2  ;;  %v3387_v2 = vsel %vm426_vm4, %v5332_v59, %v5333_v60  ;;  %v3388_v9 = vsel %vm426_vm4, %v5333_v60, %v11414_v25  ;;  %v11415_v59 = vunpack.i.h.bf16 %v11407_v56  ;;  %2977 = vst [vmem:[#allocation1 + $0x20] ss:$2 sm:$0xff] %v359_v4  ;;  %v11416_v60 = vunpack.i.h.bf16 %v9541_v62  ;;  %v9854_v25 = vld.sshfl [vmem:[#allocation1 + $0x8] sm:$0xff pattern:$0x75316420] }
 0x6c9   : > { %3762 = vmatpush.msrb.mxu2 %v3439_v27  ;;  %3750 = vmatpush.msra.mxu3 %v3391_v12  ;;  %v3390_v13 = vsel %vm426_vm4, %v11412_v36, %v11411_v17  ;;  %v5617_v27 = vunpack.i.l.bf16 %v9666_v5  ;;  %v10739_v17 = vunpack.i.h.bf16 %v9537_v61  ;;  %11418 = vst [vmem:[#allocation20_spill] sm:$0xff] %v9854_v25  ;;  %v11419_v62 = vunpack.i.l.bf16 %v9581_v26 }
 0x6ca   : > { %3851 = vmatpush.msrb.mxu1 %v3390_v13  ;;  %v3435_v36 = vsel %vm426_vm4, %v5347_v57, %v11415_v59  ;;  %v5622_v13 = vunpack.i.l.bf16 %v9537_v61  ;;  %v11417_v57 = vunpack.i.h.bf16 %v9605_v47  ;;  %v11422_v59 = vunpack.i.h.bf16 %v9369_v28  ;;  %v11426_v28 = vld [vmem:[#allocation13_spill] sm:$0xff] }
 0x6cb   : > { %3763 = vmatpush.msrb.mxu2 %v3437_v50  ;;  %v9832_v11 = vpop.permute.xlu1 %5685  ;;  %v9834_v12 = vpop.permute.xlu2 %5735  ;;  %3751 = vmatpush.msra.mxu3 %v9163_v42  ;;  %v10740_v42 = vunpack.i.h.bf16 %v9374_v58  ;;  %v11435_v32 = vunpack.i.l.bf16 %v11434_v8 }
 0x6cc   : > { %v10738_v50 = vunpack.i.h.bf16 %v9832_v11  ;;  %v5687_v37 = vunpack.i.l.bf16 %v9832_v11  ;;  %3852 = vmatpush.msrb.mxu1 %v3388_v9  ;;  %v3481_v4 = vsel %vm426_vm4, %v5657_v41, %v11417_v57  ;;  %v11421_v57 = vld [vmem:[#allocation32_spill] sm:$0xff] }
 0x6cd   : > { %3764 = vmatpush.msrb.mxu2 %v3435_v36  ;;  %3752 = vmatpush.msra.mxu3 %v3387_v2  ;;  %v5522_v36 = vunpack.i.l.bf16 %v9337_v3  ;;  %v11420_v2 = vunpack.i.h.bf16 %v9666_v5  ;;  %v3477_v26 = vsel %vm426_vm4, %v5557_v14, %v10740_v42 }
 0x6ce   : > { %3917 = vmatpush.msra.mxu1 %v11416_v60  ;;  %v3433_v9 = vsel %vm426_vm4, %v5687_v37, %v10738_v50  ;;  %v5512_v60 = vunpack.i.l.bf16 %v9321_v55  ;;  %v3431_v37 = vsel %vm426_vm4, %v5622_v13, %v10739_v17  ;;  %v5467_v50 = vunpack.i.l.bf16 %v11421_v57  ;;  %v11424_v13 = vld [vmem:[#allocation3_spill] sm:$0xff]  ;;  %3753 = vmatmul.f32.vlgmr.msra.gmra.mxu3 %v9854_v25 }
 0x6cf   : > { %3777 = vmatpush.msrb.mxu3 %v3481_v4  ;;  %3853 = vmatmul.f32.vlgmr.msrb.gmra.mxu1 %v9854_v25  ;;  %v3479_v41 = vsel %vm426_vm4, %v5617_v27, %v11420_v2  ;;  %v9878_v27 = vpop.permute.xlu0 %5755  ;;  %v11465_v25 = vld [vmem:[#allocation79_spill] sm:$0xff] }
 0x6d0   : > { %3918 = vmatpush.msra.mxu1 %v11419_v62  ;;  %3765 = vmatpush.msrb.mxu2 %v3433_v9  ;;  %v11423_v9 = vld [vmem:[#allocation46_spill] sm:$0xff]  ;;  %v11441_v8 = vunpack.i.h.bf16 %v9878_v27 }
 0x6d1   : > { %3778 = vmatpush.msrb.mxu3 %v3479_v41  ;;  %v5432_v2 = vunpack.i.l.bf16 %v11423_v9  ;;  %v11425_v41 = vunpack.i.l.bf16 %v11424_v13  ;;  %v11429_v13 = vunpack.i.h.bf16 %v9321_v55 }
 0x6d2   : > { %3919 = vmatpush.msra.mxu1 %v11422_v59  ;;  %3766 = vmatpush.msrb.mxu2 %v3431_v37  ;;  %v11427_v59 = vunpack.i.h.bf16 %v9337_v3  ;;  %v11428_v37 = vld [vmem:[#allocation61_spill] sm:$0xff] }
 0x6d3   : > { %3779 = vmatpush.msrb.mxu3 %v3477_v26  ;;  %v9884_v17 = vpop.permute.xlu1 %5690  ;;  %v9886_v4 = vpop.permute.xlu2 %5750  ;;  %v5422_v42 = vunpack.i.l.bf16 %v11428_v37  ;;  %v5707_v26 = vunpack.i.l.bf16 %v9630_v29 }
 0x6d4   : > { %3920 = vmatpush.msra.mxu1 %v11425_v41  ;;  %3767 = vmatpush.msrb.mxu2 %v11426_v28  ;;  %v3475_v14 = vsel %vm426_vm4, %v5522_v36, %v11427_v59  ;;  %v10746_v62 = vunpack.i.h.bf16 %v9886_v4  ;;  %v3427_v41 = vsel %vm426_vm4, %v5512_v60, %v11429_v13  ;;  %v11432_v36 = vunpack.i.h.bf16 %v11421_v57  ;;  %v11433_v60 = vld [vmem:[#allocation69_spill] sm:$0xff]  ;;  %v11436_v28 = vld [vmem:[#allocation35_spill] sm:$0xff] }
 0x6d5   : > { %3780 = vmatpush.msrb.mxu3 %v3475_v14  ;;  %v5352_v13 = vunpack.i.l.bf16 %v11433_v60  ;;  %v11440_v14 = vunpack.i.h.bf16 %v9043_v6  ;;  %v5572_v6 = vunpack.i.l.bf16 %v9569_v52 }
 0x6d6   : > { %3921 = vmatpush.msra.mxu1 %v11431_v38  ;;  %3768 = vmatpush.msrb.mxu2 %v3427_v41  ;;  %v3473_v59 = vsel %vm426_vm4, %v5467_v50, %v11432_v36  ;;  %v3498_v55 = vsel %vm426_vm4, %v5707_v26, %v10746_v62  ;;  %v11437_v38 = vunpack.i.h.bf16 %v11423_v9  ;;  %v11438_v41 = vld [vmem:[#allocation41_spill] sm:$0xff] }
 0x6d7   : > { %3781 = vmatpush.msrb.mxu3 %v3473_v59  ;;  %v5342_v50 = vunpack.i.l.bf16 %v11438_v41  ;;  %3905 = vmatpush.msra.mxu0 %v3498_v55  ;;  %v11439_v59 = vunpack.i.h.bf16 %v11428_v37  ;;  %v11445_v55 = vld [vmem:[#allocation60_spill] sm:$0xff]  ;;  %v11446_v37 = vld [vmem:[#allocation25_spill] sm:$0xff] }
 0x6d8   : > { %3922 = vmatpush.msra.mxu1 %v11435_v32  ;;  %3769 = vmatpush.msrb.mxu2 %v11436_v28  ;;  %v3471_v20 = vsel %vm426_vm4, %v5432_v2, %v11437_v38  ;;  %v11442_v32 = vld [vmem:[#allocation66_spill] sm:$0xff]  ;;  %v11444_v38 = vunpack.i.h.bf16 %v11430_v24 }
 0x6d9   : > { %3782 = vmatpush.msrb.mxu3 %v3471_v20  ;;  %v3423_v62 = vsel %vm426_vm4, %v5422_v42, %v11439_v59  ;;  %v11443_v28 = vunpack.i.l.bf16 %v11442_v32  ;;  %v5563_v20 = vunpack.i.h.bf16 %v11445_v55  ;;  %v5568_v42 = vunpack.i.h.bf16 %v11446_v37 }
 0x6da   : > { %3923 = vmatpush.msra.mxu1 %v11440_v14  ;;  %3770 = vmatpush.msrb.mxu2 %v3423_v62  ;;  %v3469_v36 = vsel %vm426_vm4, %v5382_v30, %v11444_v38  ;;  %v11447_v14 = vld [vmem:[#allocation84_spill] sm:$0xff]  ;;  %v5703_v30 = vunpack.i.h.bf16 %v9595_v15  ;;  %v11452_v38 = vunpack.i.l.bf16 %v9595_v15 }
 0x6db   : > { %v3496_v2 = vsel %vm426_vm4, %v11443_v28, %v11441_v8  ;;  %3783 = vmatpush.msrb.mxu3 %v3469_v36  ;;  %v11448_v62 = vunpack.i.l.bf16 %v11447_v14  ;;  %v9937_v59 = vpop.permute.xlu1 %5715  ;;  %v11450_v8 = vunpack.i.h.bf16 %v11433_v60  ;;  %v11451_v36 = vunpack.i.h.bf16 %v11438_v41  ;;  %v9955_v41 = vld.sshfl [vmem:[#allocation1 + $0x10] sm:$0xff pattern:$0x75316420] }
 0x6dc   : > { %3906 = vmatpush.msra.mxu0 %v3496_v2  ;;  %3771 = vmatpush.msrb.mxu2 %v11449_v21  ;;  %v3465_v14 = vsel %vm426_vm4, %v5563_v20, %v11452_v38  ;;  %v5628_v21 = vunpack.i.h.bf16 %v9717_v18  ;;  %v11454_v20 = vld [vmem:[#allocation23_spill] sm:$0xff] }
 0x6dd   : > { %3924 = vmatpush.msra.mxu1 %v11448_v62  ;;  %v3467_v28 = vsel %vm426_vm4, %v5352_v13, %v11450_v8  ;;  %v3419_v2 = vsel %vm426_vm4, %v5342_v50, %v11451_v36  ;;  %v10750_v62 = vunpack.i.h.bf16 %v9569_v52  ;;  %v3497_v13 = vsel %vm426_vm4, %v5568_v42, %v5707_v26  ;;  %v11457_v42 = vld [vmem:[#allocation24_spill] sm:$0xff]  ;;  %v11458_v38 = vld [vmem:[#allocation55_spill] sm:$0xff] }
 0x6de   : > { %3784 = vmatpush.msrb.mxu3 %v3467_v28  ;;  %3772 = vmatpush.msrb.mxu2 %v3419_v2  ;;  %v10749_v50 = vunpack.i.l.bf16 %v11446_v37  ;;  %v5708_v8 = vunpack.i.h.bf16 %v9630_v29  ;;  %v11455_v28 = vunpack.i.l.bf16 %v9717_v18  ;;  %v11459_v29 = vld [vmem:[#allocation83_spill] sm:$0xff]  ;;  %v11461_v2 = vld [vmem:[#allocation78_spill] sm:$0xff] }
 0x6df   : > { %3925 = vmatpush.msra.mxu1 %v11453_v33  ;;  %v11456_v33 = vld [vmem:[#allocation11_spill] sm:$0xff]  ;;  %3773 = vmatmul.f32.vlgmr.msrb.gmra.mxu2 %v9955_v41 }
 0x6e0   : > { %3785 = vmatpush.msrb.mxu3 %v3465_v14  ;;  %3805 = vmatpush.msra.mxu2 %v3497_v13  ;;  %v3463_v36 = vsel %vm426_vm4, %v5703_v30, %v11455_v28  ;;  %v5472_v26 = vunpack.i.l.bf16 %v11456_v33  ;;  %v10753_v14 = vunpack.i.l.bf16 %v11458_v38  ;;  %v3493_v30 = vsel %vm426_vm4, %v5572_v6, %v10750_v62  ;;  %v11460_v28 = vld [vmem:[#allocation51_spill] sm:$0xff]  ;;  %v11463_v6 = vld [vmem:[#allocation37_spill] sm:$0xff] }
 0x6e1   : > { %3926 = vmatpush.msra.mxu1 %v11454_v20  ;;  %v3461_v20 = vsel %vm426_vm4, %v5628_v21, %v10749_v50 }
 0x6e2   : > { %3786 = vmatpush.msrb.mxu3 %v3463_v36  ;;  %3806 = vmatpush.msra.mxu2 %v11457_v42  ;;  %v5668_v36 = vunpack.i.h.bf16 %v11460_v28  ;;  %v3459_v21 = vsel %vm426_vm4, %v5708_v8, %v10753_v14  ;;  %v5662_v42 = vunpack.i.l.bf16 %v9634_v53  ;;  %v11468_v14 = vunpack.i.l.bf16 %v9884_v17 }
 0x6e3   : > { %3927 = vmatpush.msra.mxu1 %v11459_v29  ;;  %v9980_v13 = vpop.permute.xlu1 %5730  ;;  %v11462_v29 = vld [vmem:[#allocation75_spill] sm:$0xff] }
 0x6e4   : > { %3787 = vmatpush.msrb.mxu3 %v3461_v20  ;;  %3807 = vmatpush.msra.mxu2 %v3493_v30  ;;  %v5683_v50 = vunpack.i.h.bf16 %v11462_v29  ;;  %v11464_v20 = vunpack.i.h.bf16 %v11456_v33  ;;  %v3489_v8 = vsel %vm426_vm4, %v5668_v36, %v11466_v43  ;;  %v11470_v43 = vld [vmem:[#allocation63_spill] sm:$0xff]  ;;  %v11471_v36 = vunpack.i.h.bf16 %v9634_v53 }
 0x6e5   : > { %3928 = vmatpush.msra.mxu1 %v11461_v2  ;;  %v5698_v2 = vunpack.i.h.bf16 %v9719_v44 }
 0x6e6   : > { %3788 = vmatpush.msrb.mxu3 %v3459_v21  ;;  %3808 = vmatpush.msra.mxu2 %v11463_v6  ;;  %v3457_v30 = vsel %vm426_vm4, %v5472_v26, %v11464_v20  ;;  %v10756_v21 = vunpack.i.l.bf16 %v9678_v19  ;;  %v5677_v26 = vunpack.i.l.bf16 %v9668_v54  ;;  %v11467_v20 = vld [vmem:[#allocation19_spill] sm:$0xff]  ;;  %v3487_v62 = vsel %vm426_vm4, %v5683_v50, %v11468_v14  ;;  %v10015_v50 = vld.sshfl [vmem:[#allocation1 + $0x18] sm:$0xff pattern:$0x75316420] }
 0x6e7   : > { %3929 = vmatpush.msra.mxu1 %v11465_v25  ;;  %v5718_v25 = vunpack.i.h.bf16 %v9937_v59  ;;  %v11473_v14 = vld [vmem:[#allocation36_spill] sm:$0xff] }
 0x6e8   : > { %3789 = vmatpush.msrb.mxu3 %v3457_v30  ;;  %3809 = vmatpush.msra.mxu2 %v3489_v8  ;;  %v3453_v30 = vsel %vm426_vm4, %v5662_v42, %v11471_v36  ;;  %v3485_v8 = vsel %vm426_vm4, %v5698_v2, %v10756_v21  ;;  %v11474_v42 = vunpack.i.h.bf16 %v9668_v54  ;;  %v11475_v36 = vunpack.i.h.bf16 %v9886_v4 }
 0x6e9   : > { %3930 = vmatpush.msra.mxu1 %v11467_v20  ;;  %v11472_v20 = vld [vmem:[#allocation52_spill] sm:$0xff]  ;;  %v10762_v21 = vunpack.i.l.bf16 %v11462_v29 }
 0x6ea   : > { %3790 = vmatpush.msrb.mxu3 %v11469_v10  ;;  %3810 = vmatpush.msra.mxu2 %v3487_v62  ;;  %v10760_v6 = vunpack.i.l.bf16 %v11472_v20  ;;  %v10759_v10 = vunpack.i.l.bf16 %v11460_v28  ;;  %v10758_v62 = vunpack.i.h.bf16 %v11442_v32  ;;  %v3451_v2 = vsel %vm426_vm4, %v5677_v26, %v11474_v42 }
 0x6eb   : > { %3931 = vmatpush.msra.mxu1 %v11470_v43  ;;  %v10020_v43 = vpop.permute.xlu1 %5745  ;;  %v11476_v26 = vunpack.i.h.bf16 %v9583_v31  ;;  %v10763_v31 = vunpack.i.h.bf16 %v9776_v34 }
 0x6ec   : > { %3791 = vmatpush.msrb.mxu3 %v3453_v30  ;;  %3811 = vmatpush.msra.mxu2 %v3485_v8  ;;  %v3483_v30 = vsel %vm426_vm4, %v5718_v25, %v10757_v46  ;;  %v10030_v8 = vld.sshfl [vmem:[#allocation1 + $0x20] sm:$0xff pattern:$0x75316420]  ;;  %v11479_v46 = vld [vmem:[#allocation68_spill] sm:$0xff] }
 0x6ed   : > { %3932 = vmatpush.msra.mxu1 %v11473_v14  ;;  %v3450_v42 = vsel %vm426_vm4, %v11476_v26, %v10758_v62  ;;  %v5533_v14 = vunpack.i.h.bf16 %v11479_v46  ;;  %v10761_v26 = vunpack.i.l.bf16 %v9937_v59  ;;  %v10053_v62 = vpop.permute.xlu2 %5765 }
 0x6ee   : > { %3792 = vmatpush.msrb.mxu3 %v3451_v2  ;;  %3812 = vmatpush.msra.mxu2 %v3483_v30  ;;  %v11477_v2 = vunpack.i.h.bf16 %v9605_v47  ;;  %v11480_v47 = vunpack.i.h.bf16 %v9878_v27 }
 0x6ef   : > { %4005 = vmatpush.msrb.mxu1 %v11475_v36  ;;  %3793 = vmatmul.f32.vlgmr.msrb.gmra.mxu3 %v10015_v50  ;;  %v11478_v36 = vunpack.i.h.bf16 %v9511_v35  ;;  %v11481_v35 = vunpack.i.h.bf16 %v9666_v5 }
 0x6f0   : > { %v3482_v25 = vsel %vm426_vm4, %v11477_v2, %v10759_v10  ;;  %3857 = vmatpush.msra.mxu3 %v3450_v42  ;;  %4200 = vmatmul.msk.f32.vlgmr.msra.gmra.mxu2 %vm1585_vm10, %v10030_v8  ;;  %v5727_v2 = vunpack.i.l.bf16 %v9746_v49  ;;  %v11483_v10 = vunpack.i.l.bf16 %v9719_v44 }
 0x6f1   : > { %3877 = vmatpush.msrb.mxu2 %v3482_v25  ;;  %v3448_v30 = vsel %vm426_vm4, %v11478_v36, %v10760_v6  ;;  %4006 = vmatpush.msrb.mxu1 %v11480_v47  ;;  %v3480_v42 = vsel %vm426_vm4, %v11481_v35, %v10762_v21  ;;  %v5693_v25 = vunpack.i.h.bf16 %v9884_v17  ;;  %v11482_v36 = vunpack.i.h.bf16 %v9563_v23 }
 0x6f2   : > { %3858 = vmatpush.msra.mxu3 %v3448_v30  ;;  %v11484_v6 = vunpack.i.h.bf16 %v9374_v58  ;;  %3933 = vmatmul.f32.vlgmr.msra.gmra.mxu1 %v9740_v63  ;;  %v5713_v30 = vunpack.i.h.bf16 %v9678_v19  ;;  %v5732_v35 = vunpack.i.l.bf16 %v9980_v13  ;;  %v11485_v23 = vunpack.i.h.bf16 %v9343_v16 }
 0x6f3   : > { %3878 = vmatpush.msrb.mxu2 %v3480_v42  ;;  %v3446_v47 = vsel %vm426_vm4, %v11482_v36, %v5533_v14  ;;  %v10079_v42 = vpop.permute.xlu1 %5760  ;;  %v11486_v58 = vunpack.i.h.bf16 %v9337_v3  ;;  %v5737_v16 = vunpack.i.l.bf16 %v9834_v12  ;;  %v5728_v21 = vunpack.i.h.bf16 %v9746_v49 }
 0x6f4   : > { %v3478_v5 = vsel %vm426_vm4, %v11484_v6, %v11483_v10  ;;  %3859 = vmatpush.msra.mxu3 %v3446_v47  ;;  %v3444_v36 = vsel %vm426_vm4, %v11485_v23, %v10763_v31  ;;  %v5768_v6 = vunpack.i.h.bf16 %v10053_v62  ;;  %v5763_v10 = vunpack.i.h.bf16 %v10079_v42  ;;  %v10093_v47 = vpop.permute.xlu0 %5770 }
 0x6f5   : > { %3879 = vmatpush.msrb.mxu2 %v3478_v5  ;;  %v3476_v63 = vsel %vm426_vm4, %v11486_v58, %v10761_v26  ;;  %v5723_v5 = vunpack.i.h.bf16 %v9778_v0  ;;  %v11487_v23 = vunpack.i.h.bf16 %v9314_v51  ;;  %v11488_v58 = vunpack.i.h.bf16 %v11421_v57 }
 0x6f6   : > { %3860 = vmatpush.msra.mxu3 %v3444_v36  ;;  %v11489_v36 = vunpack.i.h.bf16 %v9569_v52  ;;  %v10764_v31 = vunpack.i.l.bf16 %v9813_v48  ;;  %4007 = vmatpush.msrb.mxu1 %v5763_v10  ;;  %v11490_v51 = vunpack.i.h.bf16 %v9367_v40  ;;  %v11491_v57 = vunpack.i.h.bf16 %v11423_v9  ;;  %v5781_v40 = vpop.permute.xlu2 %5780 }
 0x6f7   : > { %3880 = vmatpush.msrb.mxu2 %v3476_v63  ;;  %v3442_v3 = vsel %vm426_vm4, %v11487_v23, %v5693_v25  ;;  %v3474_v26 = vsel %vm426_vm4, %v11488_v58, %v5727_v2  ;;  %v5773_v52 = vunpack.i.h.bf16 %v10093_v47  ;;  %v5733_v58 = vunpack.i.h.bf16 %v9980_v13  ;;  %v11542_v13 = vld [vmem:[#allocation50_spill] sm:$0xff] }
 0x6f8   : > { %3861 = vmatpush.msra.mxu3 %v3442_v3  ;;  %v3494_v63 = vsel %vm426_vm4, %v11489_v36, %v5763_v10  ;;  %v3440_v23 = vsel %vm426_vm4, %v11490_v51, %v5713_v30  ;;  %v11492_v3 = vunpack.i.l.bf16 %v11479_v46  ;;  %v5747_v36 = vunpack.i.l.bf16 %v10020_v43  ;;  %4008 = vmatpush.msrb.mxu1 %v5768_v6 }
 0x6f9   : > { %3881 = vmatpush.msrb.mxu2 %v3474_v26  ;;  %v3472_v26 = vsel %vm426_vm4, %v11491_v57, %v5732_v35  ;;  %3907 = vmatpush.msra.mxu0 %v3494_v63  ;;  %v11493_v9 = vunpack.i.h.bf16 %v11403_v22  ;;  %v11494_v51 = vunpack.i.h.bf16 %v11430_v24  ;;  %v11495_v57 = vunpack.i.l.bf16 %v9776_v34 }
 0x6fa   : > { %3862 = vmatpush.msra.mxu3 %v3440_v23  ;;  %v3492_v10 = vsel %vm426_vm4, %v11492_v3, %v5768_v6  ;;  %v5738_v6 = vunpack.i.h.bf16 %v9834_v12  ;;  %v5748_v3 = vunpack.i.h.bf16 %v10020_v43  ;;  %4009 = vmatpush.msrb.mxu1 %v5773_v52  ;;  %v11496_v24 = vunpack.i.h.bf16 %v11407_v56  ;;  %v11544_v12 = vld [vmem:[#allocation56_spill] sm:$0xff]  ;;  %v11554_v43 = vld [vmem:[#allocation15_spill] sm:$0xff] }
 0x6fb   : > { %3882 = vmatpush.msrb.mxu2 %v3472_v26  ;;  %v3438_v63 = vsel %vm426_vm4, %v11493_v9, %v5723_v5  ;;  %v3470_v23 = vsel %vm426_vm4, %v11494_v51, %v5737_v16  ;;  %3908 = vmatpush.msra.mxu0 %v3492_v10  ;;  %v3490_v26 = vsel %vm426_vm4, %v11495_v57, %v5773_v52  ;;  %v10143_v22 = vpop.permute.xlu1 %5775  ;;  %v11497_v10 = vunpack.i.h.bf16 %v11433_v60 }
 0x6fc   : > { %3863 = vmatpush.msra.mxu3 %v3438_v63  ;;  %v3436_v9 = vsel %vm426_vm4, %v11496_v24, %v5728_v21  ;;  %v5782_v51 = vunpack.i.l.bf16 %v5781_v40  ;;  %v5743_v52 = vunpack.i.h.bf16 %v9813_v48  ;;  %v5752_v57 = vunpack.i.l.bf16 %v9886_v4 }
 0x6fd   : > { %3883 = vmatpush.msrb.mxu2 %v3470_v23  ;;  %v3468_v63 = vsel %vm426_vm4, %v11497_v10, %v10764_v31  ;;  %3909 = vmatpush.msra.mxu0 %v3490_v26  ;;  %v5778_v23 = vunpack.i.h.bf16 %v10143_v22  ;;  %v11498_v56 = vunpack.i.h.bf16 %v9832_v11  ;;  %v11499_v60 = vunpack.i.l.bf16 %v9595_v15 }
 0x6fe   : > { %3864 = vmatpush.msra.mxu3 %v3436_v9  ;;  %v5783_v10 = vunpack.i.h.bf16 %v5781_v40  ;;  %v11500_v9 = vunpack.i.l.bf16 %v9884_v17  ;;  %v5757_v31 = vunpack.i.l.bf16 %v9878_v27  ;;  %v11501_v11 = vunpack.i.h.bf16 %v9537_v61  ;;  %v11560_v27 = vld [vmem:[#allocation22_spill] sm:$0xff] }
 0x6ff   : > { %3884 = vmatpush.msrb.mxu2 %v3468_v63  ;;  %v3434_v24 = vsel %vm426_vm4, %v11498_v56, %v5733_v58  ;;  %v3466_v26 = vsel %vm426_vm4, %v11499_v60, %v5747_v36  ;;  %4010 = vmatpush.msrb.mxu1 %v5778_v23  ;;  %v11502_v15 = vunpack.i.l.bf16 %v9717_v18  ;;  %v11505_v61 = vunpack.i.l.bf16 %v11445_v55 }
 0x700   : > { %3865 = vmatpush.msra.mxu3 %v3434_v24  ;;  %v3488_v63 = vsel %vm426_vm4, %v11500_v9, %v5778_v23  ;;  %v3432_v56 = vsel %vm426_vm4, %v11501_v11, %v5738_v6  ;;  %v11503_v24 = vunpack.i.l.bf16 %v9678_v19  ;;  %v11504_v23 = vld [vmem:[#allocation53_spill] sm:$0xff]  ;;  %v5762_v9 = vunpack.i.l.bf16 %v10079_v42 }
 0x701   : > { %3885 = vmatpush.msrb.mxu2 %v3466_v26  ;;  %v3464_v40 = vsel %vm426_vm4, %v11502_v15, %v5748_v3  ;;  %3910 = vmatpush.msra.mxu0 %v3488_v63  ;;  %v5458_v26 = vunpack.i.h.bf16 %v11504_v23  ;;  %v3430_v18 = vsel %vm426_vm4, %v11505_v61, %v5743_v52  ;;  %v11506_v63 = vunpack.i.l.bf16 %v11446_v37  ;;  %v11509_v37 = vld [vmem:[#allocation77_spill] sm:$0xff] }
 0x702   : > { %3866 = vmatpush.msra.mxu3 %v3432_v56  ;;  %v3486_v60 = vsel %vm426_vm4, %v11503_v24, %v5782_v51  ;;  %4011 = vmatpush.msrb.mxu1 %v5782_v51  ;;  %v11507_v56 = vunpack.i.l.bf16 %v9778_v0  ;;  %v5767_v51 = vunpack.i.l.bf16 %v10053_v62  ;;  %v11508_v55 = vunpack.i.l.bf16 %v11458_v38  ;;  %v11510_v24 = vld [vmem:[#allocation18_spill] sm:$0xff] }
 0x703   : > { %3886 = vmatpush.msrb.mxu2 %v3464_v40  ;;  %v3462_v11 = vsel %vm426_vm4, %v11506_v63, %v5752_v57  ;;  %3911 = vmatpush.msra.mxu0 %v3486_v60  ;;  %v5373_v60 = vunpack.i.h.bf16 %v11510_v24  ;;  %v5772_v61 = vunpack.i.l.bf16 %v10093_v47  ;;  %v11513_v38 = vunpack.i.h.bf16 %v11456_v33  ;;  %v376_v47 = vld [vmem:[%s10364_s7] sm:$0xf] }
 0x704   : > { %3867 = vmatpush.msra.mxu3 %v3430_v18  ;;  %v3484_v15 = vsel %vm426_vm4, %v11507_v56, %v5783_v10  ;;  %4012 = vmatpush.msrb.mxu1 %v5783_v10  ;;  %v3460_v40 = vsel %vm426_vm4, %v11508_v55, %v5757_v31  ;;  %v11511_v18 = vunpack.i.h.bf16 %v11442_v32  ;;  %v11512_v10 = vunpack.i.l.bf16 %v11504_v23 }
 0x705   : > { %3887 = vmatpush.msrb.mxu2 %v3462_v11  ;;  %3912 = vmatpush.msra.mxu0 %v3484_v15  ;;  %v3458_v11 = vsel %vm426_vm4, %v11513_v38, %v5762_v9  ;;  %v5777_v32 = vunpack.i.l.bf16 %v10143_v22  ;;  %v11514_v56 = vunpack.i.l.bf16 %v11472_v20  ;;  %v11515_v15 = vld [vmem:[#allocation28_spill] sm:$0xff]  ;;  %v11518_v33 = vunpack.i.l.bf16 %v11510_v24 }
 0x706   : > { %3868 = vmatpush.msra.mxu3 %v11509_v37  ;;  %v3426_v63 = vsel %vm426_vm4, %v11512_v10, %v5458_v26  ;;  %4202 = vmatmul.msk.f32.vlgmr.msrb.gmra.mxu1 %vm1585_vm10, %v10030_v8  ;;  %v11516_v55 = vunpack.i.l.bf16 %v11515_v15  ;;  %v11517_v37 = vld [vmem:[#allocation38_spill] sm:$0xff]  ;;  %v11519_v20 = vunpack.i.h.bf16 %v9634_v53  ;;  %v11520_v10 = vunpack.i.h.bf16 %v9776_v34  ;;  %v11523_v53 = vld [vmem:[#allocation44_spill] sm:$0xff] }
 0x707   : > { %3888 = vmatpush.msrb.mxu2 %v3460_v40  ;;  %3957 = vmatpush.msrb.mxu0 %v11511_v18  ;;  %v3422_v18 = vsel %vm426_vm4, %v11518_v33, %v5373_v60  ;;  %v11524_v24 = vunpack.i.h.bf16 %v11523_v53  ;;  %v11525_v38 = vunpack.i.l.bf16 %v11460_v28  ;;  %v11527_v34 = vunpack.i.l.bf16 %v11462_v29  ;;  %v11539_v29 = vld [vmem:[#allocation21_spill] sm:$0xff] }
 0x708   : > { %3869 = vmatpush.msra.mxu3 %v3426_v63  ;;  %v3456_v40 = vsel %vm426_vm4, %v11516_v55, %v5767_v51  ;;  %v3454_v22 = vsel %vm426_vm4, %v11519_v20, %v5772_v61  ;;  %v11521_v63 = vunpack.i.h.bf16 %v9668_v54  ;;  %v11526_v54 = vunpack.i.l.bf16 %v9632_v7  ;;  %4201 = vmatmul.msk.f32.vlgmr.msra.gmra.mxu0 %vm1585_vm10, %v10030_v8 }
 0x709   : > { %3889 = vmatpush.msrb.mxu2 %v3458_v11  ;;  %3958 = vmatpush.msrb.mxu0 %v11514_v56  ;;  %v11528_v17 = vunpack.i.h.bf16 %v9412_v1  ;;  %v11529_v28 = vunpack.i.l.bf16 %v9719_v44  ;;  %v11530_v19 = vunpack.i.l.bf16 %v9459_v45  ;;  %v11531_v7 = vunpack.i.l.bf16 %v9937_v59  ;;  %v11533_v1 = vld [vmem:[#allocation54_spill] sm:$0xff]  ;;  %v11535_v45 = vld [vmem:[#allocation39_spill] sm:$0xff] }
 0x70a   : > { %3870 = vmatpush.msra.mxu3 %v11517_v37  ;;  %v3452_v46 = vsel %vm426_vm4, %v11521_v63, %v5777_v32  ;;  %v11532_v0 = vunpack.i.h.bf16 %v9262_v39  ;;  %v11534_v44 = vunpack.i.l.bf16 %v11533_v1  ;;  %v11536_v59 = vunpack.i.h.bf16 %v11535_v45  ;;  %v11537_v39 = vld [vmem:[#allocation14_spill] sm:$0xff]  ;;  %v11564_v1 = vld [vmem:[#allocation29_spill] sm:$0xff] }
 0x70b   : > { %3890 = vmatpush.msrb.mxu2 %v3456_v40  ;;  %3959 = vmatpush.msrb.mxu0 %v5533_v14  ;;  %v11522_v14 = vld [vmem:[#allocation85_spill] sm:$0xff]  ;;  %v11538_v49 = vunpack.i.l.bf16 %v11537_v39  ;;  %v11541_v8 = vunpack.i.l.bf16 %v9813_v48  ;;  %v11548_v48 = vld [vmem:[#allocation2_spill] sm:$0xff]  ;;  %vm4026_vm4 = vcmask 310272   ;;  %vm4047_vm10 = vcmask 1043456  }
 0x70c   : > { %3871 = vmatpush.msra.mxu3 %v3422_v18 }
 0x70d   : > { %3891 = vmatpush.msrb.mxu2 %v3454_v22  ;;  %3960 = vmatpush.msrb.mxu0 %v11520_v10 }
 0x70e   : > { %3872 = vmatpush.msra.mxu3 %v11522_v14 }
 0x70f   : > { %3892 = vmatpush.msrb.mxu2 %v3452_v46  ;;  %3873 = vmatmul.f32.vlgmr.msra.gmra.mxu3 %v9955_v41 }
 0x710   : > { %3961 = vmatpush.msrb.mxu0 %v5693_v25  ;;  %3937 = vmatpush.msrb.mxu3 %v11524_v24  ;;  %v11545_v25 = vunpack.i.l.bf16 %v11544_v12 }
 0x711   : > { %3977 = vmatpush.msra.mxu2 %v11525_v38 }
 0x712   : > { %3893 = vmatmul.f32.vlgmr.msrb.gmra.mxu2 %v10015_v50  ;;  %3962 = vmatpush.msrb.mxu0 %v5713_v30  ;;  %v11546_v30 = vld [vmem:[#allocation7_spill] sm:$0xff] }
 0x713   : > { %3938 = vmatpush.msrb.mxu3 %v11526_v54  ;;  %3978 = vmatpush.msra.mxu2 %v11527_v34 }
 0x714   : > { %3963 = vmatpush.msrb.mxu0 %v5723_v5  ;;  %v11549_v5 = vunpack.i.h.bf16 %v11548_v48 }
 0x715   : > { %3939 = vmatpush.msrb.mxu3 %v11528_v17  ;;  %3979 = vmatpush.msra.mxu2 %v11529_v28 }
 0x716   : > { %3964 = vmatpush.msrb.mxu0 %v5728_v21  ;;  %v11540_v21 = vunpack.i.l.bf16 %v11539_v29 }
 0x717   : > { %3940 = vmatpush.msrb.mxu3 %v11530_v19  ;;  %3980 = vmatpush.msra.mxu2 %v11531_v7  ;;  %v11563_v19 = vld [vmem:[#allocation57_spill] sm:$0xff] }
 0x718   : > { %3965 = vmatpush.msrb.mxu0 %v5733_v58 }
 0x719   : > { %3941 = vmatpush.msrb.mxu3 %v11532_v0  ;;  %3981 = vmatpush.msra.mxu2 %v5727_v2  ;;  %v11543_v2 = vunpack.i.h.bf16 %v11542_v13 }
 0x71a   : > { %3966 = vmatpush.msrb.mxu0 %v5738_v6 }
 0x71b   : > { %3942 = vmatpush.msrb.mxu3 %v11534_v44  ;;  %3982 = vmatpush.msra.mxu2 %v5732_v35  ;;  %v11547_v35 = vunpack.i.l.bf16 %v11546_v30 }
 0x71c   : > { %3967 = vmatpush.msrb.mxu0 %v5743_v52  ;;  %v11556_v52 = vld [vmem:[#allocation17_spill] sm:$0xff] }
 0x71d   : > { %3943 = vmatpush.msrb.mxu3 %v11536_v59  ;;  %3983 = vmatpush.msra.mxu2 %v5737_v16  ;;  %v11550_v16 = vld [vmem:[#allocation5_spill] sm:$0xff]  ;;  %v11557_v4 = vunpack.i.l.bf16 %v11556_v52 }
 0x71e   : > { %3968 = vmatpush.msrb.mxu0 %v11540_v21  ;;  %v11551_v58 = vunpack.i.l.bf16 %v11550_v16 }
 0x71f   : > { %3944 = vmatpush.msrb.mxu3 %v11538_v49  ;;  %3984 = vmatpush.msra.mxu2 %v11541_v8  ;;  %v11565_v8 = vld [vmem:[#allocation47_spill] sm:$0xff] }
 0x720   : > { %3969 = vmatpush.msrb.mxu0 %v5458_v26 }
 0x721   : > { %3945 = vmatpush.msrb.mxu3 %v11543_v2  ;;  %3985 = vmatpush.msra.mxu2 %v5747_v36  ;;  %v11552_v36 = vld [vmem:[#allocation70_spill] sm:$0xff] }
 0x722   : > { %3970 = vmatpush.msrb.mxu0 %v11547_v35  ;;  %v11553_v6 = vunpack.i.l.bf16 %v11552_v36 }
 0x723   : > { %3946 = vmatpush.msrb.mxu3 %v11545_v25  ;;  %3986 = vmatpush.msra.mxu2 %v5748_v3  ;;  %v11555_v3 = vunpack.i.h.bf16 %v11554_v43 }
 0x724   : > { %3971 = vmatpush.msrb.mxu0 %v5373_v60 }
 0x725   : > { %3947 = vmatpush.msrb.mxu3 %v11549_v5  ;;  %3987 = vmatpush.msra.mxu2 %v5752_v57  ;;  %v11558_v57 = vld [vmem:[#allocation58_spill] sm:$0xff] }
 0x726   : > { %3972 = vmatpush.msrb.mxu0 %v11553_v6  ;;  %v11559_v23 = vunpack.i.h.bf16 %v11558_v57 }
 0x727   : > { %3948 = vmatpush.msrb.mxu3 %v11551_v58  ;;  %3988 = vmatpush.msra.mxu2 %v5757_v31  ;;  %v11562_v31 = vld [vmem:[#allocation20_spill] sm:$0xff] }
 0x728   : > { %3973 = vmatmul.f32.vlgmr.msrb.gmra.mxu0 %v9955_v41  ;;  %v11561_v41 = vunpack.i.l.bf16 %v11560_v27 }
 0x729   : > { %3949 = vmatpush.msrb.mxu3 %v11555_v3  ;;  %3989 = vmatpush.msra.mxu2 %v5762_v9 }
 0x72b   : > { %3950 = vmatpush.msrb.mxu3 %v11557_v4  ;;  %3990 = vmatpush.msra.mxu2 %v5767_v51 }
 0x72d   : > { %3951 = vmatpush.msrb.mxu3 %v11559_v23  ;;  %3991 = vmatpush.msra.mxu2 %v5772_v61 }
 0x72f   : > { %3952 = vmatpush.msrb.mxu3 %v11561_v41  ;;  %3992 = vmatpush.msra.mxu2 %v5777_v32 }
 0x730   : > { %3953 = vmatmul.f32.vlgmr.msrb.gmra.mxu3 %v11562_v31  ;;  %3993 = vmatmul.f32.vlgmr.msra.gmra.mxu2 %v10015_v50 }
 0x73d   : > { %v3834_v61 = vpop.f32.mrf.mxu0 }
 0x741   : > { %v3734_v42 = vpop.f32.mrf.mxu2 }
 0x74c   : > { %v3854_v32 = vpop.f32.mrf.mxu1 }
 0x74d   : > { %v3855_v55 = vadd.f32 %v3854_v32, %v3834_v61 }
 0x751   : > { %v3754_v26 = vpop.f32.mrf.mxu3 }
 0x752   : > { %v3755_v60 = vadd.f32 %v3754_v26, %v3734_v42 }
 0x762   : > { %v3774_v9 = vpop.f32.mrf.mxu2 }
 0x763   : > { %v3775_v62 = vadd.f32 %v3774_v9, %v3755_v60 }
 0x76f   : > { %v3934_v22 = vpop.f32.mrf.mxu1 }
 0x772   : > { %v3794_v51 = vpop.f32.mrf.mxu3 }
 0x773   : > { %v3795_v11 = vadd.f32 %v3794_v51, %v3775_v62  ;;  %v3814_v56 = vpop.f32.mrf.mxu2 }
 0x775   : > { %v3815_v15 = vadd.f32 %v3814_v56, %v3795_v11 }
 0x777   : > { %4020 = vrot.lane.b32.xlu0 %v3815_v15, %s5808_s17 }
 0x77f   : > { %4037 = vperm.xlu0 %4283, %v376_v47  }
 0x783   : > { %v4014_v24 = vpop.f32.mrf.mxu1 }
 0x785   : > { %v3914_v18 = vpop.f32.mrf.mxu0 }
 0x792   : > { %v3874_v50 = vpop.f32.mrf.mxu3 }
 0x793   : > { %v3875_v40 = vadd.f32 %v3874_v50, %v3855_v55 }
 0x795   : > { %v3894_v37 = vpop.f32.mrf.mxu2 }
 0x796   : > { %v3895_v33 = vadd.f32 %v3894_v37, %v3875_v40 }
 0x798   : > { %v3915_v20 = vadd.f32 %v3914_v18, %v3895_v33 }
 0x79a   : > { %4022 = vrot.lane.b32.xlu1 %v3915_v20, %s5808_s17 }
 0x7a5   : > { %v3974_v63 = vpop.f32.mrf.mxu0 }
 0x7b3   : > { %v3954_v10 = vpop.f32.mrf.mxu3  ;;  %v3994_v14 = vpop.f32.mrf.mxu2 }
 0x7b4   : > { %v3955_v46 = vadd.f32 %v3954_v10, %v3934_v22 }
 0x7b6   : > { %v3975_v53 = vadd.f32 %v3974_v63, %v3955_v46 }
 0x7b8   : > { %v3995_v38 = vadd.f32 %v3994_v14, %v3975_v53 }
 0x7ba   : > { %v4015_v54 = vadd.f32 %v4014_v24, %v3995_v38 }
 0x7bc   : > { %4024 = vrot.lane.b32.xlu2 %v4015_v54, %s5808_s17 }
 0x7e9   : > { %v4021_v34 = vpop.permute.xlu0 %4020 }
 0x7ea   : > { %v4032_v44 = vadd.f32 %v4021_v34, %v11564_v1 }
 0x7f1   : > { %v4038_v0 = vpop.permute.xlu0 %4037 }
 0x7f2   : > { %v4040_v59 = vadd.f32 %v4038_v0, %v4032_v44 }
 0x80c   : > { %v4023_v17 = vpop.permute.xlu1 %4022 }
 0x80d   : > { %v4027_v28 = vsel %vm4026_vm4, %v4021_v34, %v4023_v17 }
 0x80e   : > { %v4033_v7 = vadd.f32 %v4027_v28, %v11563_v19 }
 0x810   : > { %v4041_v45 = vadd.f32 %v4038_v0, %v4033_v7 }
 0x812   : > { %v4046_v39 = vrot.slane %v4041_v45, 4 }
 0x814   : > { %v4048_v49 = vsel %vm4047_vm10, %v4040_v59, %v4046_v39 }
 0x815   : > { %4049 = vrot.lane.b32.xlu1 %v4048_v49, %s5805_s18 }
 0x816   : > { %v4025_v29 = vpop.permute.xlu2 %4024 }
 0x817   : > { %v4028_v21 = vsel %vm4026_vm4, %v4023_v17, %v4025_v29 }
 0x818   : > { %v4034_v13 = vadd.f32 %v4028_v21, %v11565_v8 }
 0x81a   : > { %v4042_v2 = vadd.f32 %v4038_v0, %v4034_v13 }
 0x81c   : > { %4051 = vrot.lane.b32.xlu2 %v4042_v2, %s5805_s18 }
 0x876   : > { %v4052_v12 = vpop.permute.xlu2 %4051 }
 0x877   : > { %4061 = vst.msk [vmem:[%s305_s25 + $0x8] sm:$0xf] %vm4060_vm14, %v4052_v12  ;;  %v4054_v30 = vrot.slane %v4052_v12, 4 }
 0x887   : > { %v4050_v25 = vpop.permute.xlu1 %4049 }
 0x888   : > { %v4053_v35 = vrot.slane %v4050_v25, 4 }
 0x88a   : > { %v4055_v48 = vsel %vm4047_vm10, %v4053_v35, %v4054_v30 }
 0x88b   : > { %v4056_v5 = vsel %vm483_vm0, %v4050_v25, %v4055_v48 }
 0x88c   : > { %4059 = vst [vmem:[%s305_s25] sm:$0xff] %v4056_v5 }
 0x88d PF: > { %s18_s27 = sadd.s32 1, %s5796_s27  }
 0x88e   : > { %p15_p4 = scmp.ge.s32.totalorder %s18_s27, 4  }
 0x890   :  { %17 = sbr.rel (!%p15_p4) target bundleno = 1 (0x1), region = 84 }

</bundles_post_ra>
